<compile_context>
chip_gen: v6e
topology: v6e:2x2x1
jax: 0.10.0
libtpu: 0.0.40
codegen_flags: <defaults>
</compile_context>

<pallas_src>
import functools
import math

import jax
import jax.numpy as jnp
from jax.experimental import pallas as pl
from jax.experimental.pallas import tpu as pltpu


# ---------------------------------------------------------------------------
# Fused GhostBlock kernel: one batch element per grid step.
#   x_ref:    (1, Cin, H*W)   VMEM   (lane-dense spatial)
#   mask_ref: (2, H*W)        VMEM   row0: valid-when-reading-(w-1), row1: (w+1)
#   w1_ref:   (Cinit, Cin)            SMEM scalar table (1x1 conv)
#   w2_ref:   (Cnew, Cinit*9)         SMEM scalar table (3x3 conv, k = (dy+1)*3+(dx+1))
#   o_ref:    (1, oup, H*W)   VMEM   final NCHW output tile
# ---------------------------------------------------------------------------
def _ghost_block_kernel(x_ref, mask_ref, w1_ref, w2_ref, o_ref, *,
                        H, W, cin, cinit, cnew, oup):
    HW = H * W
    x = x_ref[0].astype(jnp.float32)                    # (cin, HW)

    # ---------------- 1x1 conv + ReLU (VPU scalar FMAs) ----------------
    x1_rows = []
    for co in range(cinit):
        acc = w1_ref[co, 0] * x[0:1, :]
        for ci in range(1, cin):
            acc = acc + w1_ref[co, ci] * x[ci:ci + 1, :]
        x1_rows.append(jnp.maximum(acc, 0.0))           # (1, HW)

    # ------------- 3x3 same-conv + ReLU via masked lane shifts -------------
    n_x2 = min(cnew, max(oup - cinit, 0))
    x2_rows = []
    if n_x2 > 0:
        x1 = jnp.concatenate(x1_rows, axis=0)           # (cinit, HW)
        # Zero-extend the flat spatial axis by (W+1) on each side so a static
        # slice at offset (W+1) + dy*W + dx reads x1[ci, h+dy, w+dx] with zeros
        # for rows outside the image.  Column wrap (w+dx outside [0, W)) is
        # removed with the precomputed edge masks.
        zpad = jnp.zeros((cinit, W + 1), jnp.float32)
        x1p = jnp.concatenate([zpad, x1, zpad], axis=-1)  # (cinit, HW + 2W + 2)

        m_left = mask_ref[0:1, :].astype(jnp.float32)     # valid reading w-1
        m_right = mask_ref[1:2, :].astype(jnp.float32)    # valid reading w+1

        accs = [jnp.zeros((1, HW), jnp.float32) for _ in range(n_x2)]
        k = 0
        for dy in (-1, 0, 1):
            for dx in (-1, 0, 1):
                start = (W + 1) + dy * W + dx
                sh = x1p[:, start:start + HW]             # (cinit, HW)
                if dx == -1:
                    sh = sh * m_left
                elif dx == 1:
                    sh = sh * m_right
                for co in range(n_x2):
                    a = accs[co]
                    for ci in range(cinit):
                        a = a + w2_ref[co, ci * 9 + k] * sh[ci:ci + 1, :]
                    accs[co] = a
                k += 1
        x2_rows = [jnp.maximum(a, 0.0) for a in accs]

    # ------------- concat + [:oup] slice, single lane-dense store -------------
    rows = (x1_rows + x2_rows)[:oup]
    out = jnp.concatenate(rows, axis=0)                  # (oup, HW)
    o_ref[...] = out.reshape(1, oup, HW).astype(o_ref.dtype)


# ---------------------------------------------------------------------------
# Wrapper: NCHW in / NCHW out, only free reshapes outside the kernel.
# ---------------------------------------------------------------------------
def ghost_block_forward(x_nchw, w_primary, w_cheap, oup):
    """w_primary: (Cinit, Cin, 1, 1), w_cheap: (Cnew, Cinit, 3, 3) — PyTorch OIHW."""
    B, Cin, H, W = x_nchw.shape
    Cinit = w_primary.shape[0]
    Cnew = w_cheap.shape[0]
    HW = H * W
    dtype = x_nchw.dtype

    x_flat = x_nchw.reshape(B, Cin, HW)                         # lane-dense spatial
    w1 = w_primary.reshape(Cinit, Cin).astype(jnp.float32)      # SMEM scalar table
    w2 = w_cheap.reshape(Cnew, Cinit * 9).astype(jnp.float32)   # SMEM scalar table

    # Column-edge validity masks for the +/-1 lane shifts of the 3x3 conv.
    col = jnp.arange(HW, dtype=jnp.int32) % W
    edge_mask = jnp.stack([(col != 0), (col != W - 1)]).astype(jnp.float32)  # (2, HW)

    kernel = functools.partial(_ghost_block_kernel, H=H, W=W, cin=Cin,
                               cinit=Cinit, cnew=Cnew, oup=oup)

    # TODO(synk): for very large feature maps (whole image >> VMEM) add a second
    # grid axis over H row-strips with a 1-row halo; at PDNet feature-map sizes
    # one image per step fits VMEM comfortably on v5e/v6e/v7x.
    out_flat = pl.pallas_call(
        kernel,
        out_shape=jax.ShapeDtypeStruct((B, oup, HW), dtype),
        grid=(B,),
        in_specs=[
            pl.BlockSpec((1, Cin, HW), lambda b: (b, 0, 0)),
            pl.BlockSpec((2, HW), lambda b: (0, 0)),            # fetched once (revisited)
            pl.BlockSpec(memory_space=pltpu.MemorySpace.SMEM),  # w1
            pl.BlockSpec(memory_space=pltpu.MemorySpace.SMEM),  # w2
        ],
        out_specs=pl.BlockSpec((1, oup, HW), lambda b: (b, 0, 0)),
        compiler_params=pltpu.CompilerParams(dimension_semantics=("parallel",)),
    )(x_flat, edge_mask, w1, w2)

    return out_flat.reshape(B, oup, H, W)


# ---------------------------------------------------------------------------
# Pure-JAX reference for correctness checking.
# ---------------------------------------------------------------------------
def ghost_block_reference(x_nchw, w_primary, w_cheap, oup):
    dn = ("NCHW", "OIHW", "NCHW")
    x1 = jax.lax.conv_general_dilated(x_nchw, w_primary, (1, 1),
                                      [(0, 0), (0, 0)], dimension_numbers=dn)
    x1 = jnp.maximum(x1, 0.0)
    x2 = jax.lax.conv_general_dilated(x1, w_cheap, (1, 1),
                                      [(1, 1), (1, 1)], dimension_numbers=dn)
    x2 = jnp.maximum(x2, 0.0)
    return jnp.concatenate([x1, x2], axis=1)[:, :oup, :, :]


if __name__ == "__main__":
    # Small shapes consistent with GhostBlock(inp=4, oup=8) defaults.
    inp, oup, ratio = 4, 8, 2
    init_channels = math.ceil(oup / ratio)          # 4
    new_channels = init_channels * (ratio - 1)      # 4
    B, H, W = 2, 16, 16

    key = jax.random.PRNGKey(0)
    kx, kw1, kw2 = jax.random.split(key, 3)
    x = jax.random.normal(kx, (B, inp, H, W), dtype=jnp.float32)
    w_primary = (jax.random.normal(kw1, (init_channels, inp, 1, 1),
                                   dtype=jnp.float32) * 0.1)
    w_cheap = (jax.random.normal(kw2, (new_channels, init_channels, 3, 3),
                                 dtype=jnp.float32) * 0.1)

    out = ghost_block_forward(x, w_primary, w_cheap, oup)
    out = jax.block_until_ready(out)

    ref = ghost_block_reference(x, w_primary, w_cheap, oup)
    assert out.shape == (B, oup, H, W), out.shape
    assert jnp.allclose(out, ref, atol=1e-4, rtol=1e-4), "mismatch vs reference"

    print("KERNEL_OK")
</pallas_src>

<mosaic_0001>
module attributes {stable_mosaic.version = 11 : i64} {
  func.func @_ghost_block_kernel(%arg0: i32, %arg1: memref<1x4x256xf32, #tpu.memory_space<vmem>>, %arg2: memref<2x256xf32, #tpu.memory_space<vmem>>, %arg3: memref<4x4xf32, #tpu.memory_space<smem>>, %arg4: memref<4x36xf32, #tpu.memory_space<smem>>, %arg5: memref<1x8x256xf32, #tpu.memory_space<vmem>>) attributes {dimension_semantics = [#tpu.dimension_semantics<parallel>], iteration_bounds = array<i64: 2>, scalar_prefetch = 0 : i64, scratch_operands = 0 : i64, tpu.core_type = #tpu.core_type<tc>, window_params = [{transform_indices = @transform_0, window_bounds = array<i64: 1, 4, 256>}, {pipeline_mode = #tpu.pipeline_mode<synchronous>, transform_indices = @transform_1, window_bounds = array<i64: 2, 256>}, {transform_indices = @transform_2, window_bounds = array<i64: 4, 4>}, {transform_indices = @transform_3, window_bounds = array<i64: 4, 36>}, {transform_indices = @transform_4, window_bounds = array<i64: 1, 8, 256>}]} {
    %c0 = arith.constant 0 : index
    %c0_0 = arith.constant 0 : index
    %c0_1 = arith.constant 0 : index
    %0 = vector.load %arg1[%c0, %c0_0, %c0_1] : memref<1x4x256xf32, #tpu.memory_space<vmem>>, vector<1x4x256xf32>
    %1 = vector.shape_cast %0 : vector<1x4x256xf32> to vector<4x256xf32>
    %c0_2 = arith.constant 0 : index
    %c0_3 = arith.constant 0 : index
    %2 = memref.load %arg3[%c0_2, %c0_3] : memref<4x4xf32, #tpu.memory_space<smem>>
    %3 = vector.extract_strided_slice %1 {offsets = [0, 0], sizes = [1, 256], strides = [1, 1]} : vector<4x256xf32> to vector<1x256xf32>
    %4 = vector.broadcast %2 : f32 to vector<1x256xf32>
    %5 = arith.mulf %4, %3 : vector<1x256xf32>
    %c0_4 = arith.constant 0 : index
    %c1 = arith.constant 1 : index
    %6 = memref.load %arg3[%c0_4, %c1] : memref<4x4xf32, #tpu.memory_space<smem>>
    %7 = vector.extract_strided_slice %1 {offsets = [1, 0], sizes = [1, 256], strides = [1, 1]} : vector<4x256xf32> to vector<1x256xf32>
    %8 = vector.broadcast %6 : f32 to vector<1x256xf32>
    %9 = arith.mulf %8, %7 : vector<1x256xf32>
    %10 = arith.addf %5, %9 : vector<1x256xf32>
    %c0_5 = arith.constant 0 : index
    %c2 = arith.constant 2 : index
    %11 = memref.load %arg3[%c0_5, %c2] : memref<4x4xf32, #tpu.memory_space<smem>>
    %12 = vector.extract_strided_slice %1 {offsets = [2, 0], sizes = [1, 256], strides = [1, 1]} : vector<4x256xf32> to vector<1x256xf32>
    %13 = vector.broadcast %11 : f32 to vector<1x256xf32>
    %14 = arith.mulf %13, %12 : vector<1x256xf32>
    %15 = arith.addf %10, %14 : vector<1x256xf32>
    %c0_6 = arith.constant 0 : index
    %c3 = arith.constant 3 : index
    %16 = memref.load %arg3[%c0_6, %c3] : memref<4x4xf32, #tpu.memory_space<smem>>
    %17 = vector.extract_strided_slice %1 {offsets = [3, 0], sizes = [1, 256], strides = [1, 1]} : vector<4x256xf32> to vector<1x256xf32>
    %18 = vector.broadcast %16 : f32 to vector<1x256xf32>
    %19 = arith.mulf %18, %17 : vector<1x256xf32>
    %20 = arith.addf %15, %19 : vector<1x256xf32>
    %cst = arith.constant 0.000000e+00 : f32
    %21 = vector.broadcast %cst : f32 to vector<1x256xf32>
    %22 = arith.maximumf %20, %21 : vector<1x256xf32>
    %c1_7 = arith.constant 1 : index
    %c0_8 = arith.constant 0 : index
    %23 = memref.load %arg3[%c1_7, %c0_8] : memref<4x4xf32, #tpu.memory_space<smem>>
    %24 = vector.extract_strided_slice %1 {offsets = [0, 0], sizes = [1, 256], strides = [1, 1]} : vector<4x256xf32> to vector<1x256xf32>
    %25 = vector.broadcast %23 : f32 to vector<1x256xf32>
    %26 = arith.mulf %25, %24 : vector<1x256xf32>
    %c1_9 = arith.constant 1 : index
    %c1_10 = arith.constant 1 : index
    %27 = memref.load %arg3[%c1_9, %c1_10] : memref<4x4xf32, #tpu.memory_space<smem>>
    %28 = vector.extract_strided_slice %1 {offsets = [1, 0], sizes = [1, 256], strides = [1, 1]} : vector<4x256xf32> to vector<1x256xf32>
    %29 = vector.broadcast %27 : f32 to vector<1x256xf32>
    %30 = arith.mulf %29, %28 : vector<1x256xf32>
    %31 = arith.addf %26, %30 : vector<1x256xf32>
    %c1_11 = arith.constant 1 : index
    %c2_12 = arith.constant 2 : index
    %32 = memref.load %arg3[%c1_11, %c2_12] : memref<4x4xf32, #tpu.memory_space<smem>>
    %33 = vector.extract_strided_slice %1 {offsets = [2, 0], sizes = [1, 256], strides = [1, 1]} : vector<4x256xf32> to vector<1x256xf32>
    %34 = vector.broadcast %32 : f32 to vector<1x256xf32>
    %35 = arith.mulf %34, %33 : vector<1x256xf32>
    %36 = arith.addf %31, %35 : vector<1x256xf32>
    %c1_13 = arith.constant 1 : index
    %c3_14 = arith.constant 3 : index
    %37 = memref.load %arg3[%c1_13, %c3_14] : memref<4x4xf32, #tpu.memory_space<smem>>
    %38 = vector.extract_strided_slice %1 {offsets = [3, 0], sizes = [1, 256], strides = [1, 1]} : vector<4x256xf32> to vector<1x256xf32>
    %39 = vector.broadcast %37 : f32 to vector<1x256xf32>
    %40 = arith.mulf %39, %38 : vector<1x256xf32>
    %41 = arith.addf %36, %40 : vector<1x256xf32>
    %cst_15 = arith.constant 0.000000e+00 : f32
    %42 = vector.broadcast %cst_15 : f32 to vector<1x256xf32>
    %43 = arith.maximumf %41, %42 : vector<1x256xf32>
    %c2_16 = arith.constant 2 : index
    %c0_17 = arith.constant 0 : index
    %44 = memref.load %arg3[%c2_16, %c0_17] : memref<4x4xf32, #tpu.memory_space<smem>>
    %45 = vector.extract_strided_slice %1 {offsets = [0, 0], sizes = [1, 256], strides = [1, 1]} : vector<4x256xf32> to vector<1x256xf32>
    %46 = vector.broadcast %44 : f32 to vector<1x256xf32>
    %47 = arith.mulf %46, %45 : vector<1x256xf32>
    %c2_18 = arith.constant 2 : index
    %c1_19 = arith.constant 1 : index
    %48 = memref.load %arg3[%c2_18, %c1_19] : memref<4x4xf32, #tpu.memory_space<smem>>
    %49 = vector.extract_strided_slice %1 {offsets = [1, 0], sizes = [1, 256], strides = [1, 1]} : vector<4x256xf32> to vector<1x256xf32>
    %50 = vector.broadcast %48 : f32 to vector<1x256xf32>
    %51 = arith.mulf %50, %49 : vector<1x256xf32>
    %52 = arith.addf %47, %51 : vector<1x256xf32>
    %c2_20 = arith.constant 2 : index
    %c2_21 = arith.constant 2 : index
    %53 = memref.load %arg3[%c2_20, %c2_21] : memref<4x4xf32, #tpu.memory_space<smem>>
    %54 = vector.extract_strided_slice %1 {offsets = [2, 0], sizes = [1, 256], strides = [1, 1]} : vector<4x256xf32> to vector<1x256xf32>
    %55 = vector.broadcast %53 : f32 to vector<1x256xf32>
    %56 = arith.mulf %55, %54 : vector<1x256xf32>
    %57 = arith.addf %52, %56 : vector<1x256xf32>
    %c2_22 = arith.constant 2 : index
    %c3_23 = arith.constant 3 : index
    %58 = memref.load %arg3[%c2_22, %c3_23] : memref<4x4xf32, #tpu.memory_space<smem>>
    %59 = vector.extract_strided_slice %1 {offsets = [3, 0], sizes = [1, 256], strides = [1, 1]} : vector<4x256xf32> to vector<1x256xf32>
    %60 = vector.broadcast %58 : f32 to vector<1x256xf32>
    %61 = arith.mulf %60, %59 : vector<1x256xf32>
    %62 = arith.addf %57, %61 : vector<1x256xf32>
    %cst_24 = arith.constant 0.000000e+00 : f32
    %63 = vector.broadcast %cst_24 : f32 to vector<1x256xf32>
    %64 = arith.maximumf %62, %63 : vector<1x256xf32>
    %c3_25 = arith.constant 3 : index
    %c0_26 = arith.constant 0 : index
    %65 = memref.load %arg3[%c3_25, %c0_26] : memref<4x4xf32, #tpu.memory_space<smem>>
    %66 = vector.extract_strided_slice %1 {offsets = [0, 0], sizes = [1, 256], strides = [1, 1]} : vector<4x256xf32> to vector<1x256xf32>
    %67 = vector.broadcast %65 : f32 to vector<1x256xf32>
    %68 = arith.mulf %67, %66 : vector<1x256xf32>
    %c3_27 = arith.constant 3 : index
    %c1_28 = arith.constant 1 : index
    %69 = memref.load %arg3[%c3_27, %c1_28] : memref<4x4xf32, #tpu.memory_space<smem>>
    %70 = vector.extract_strided_slice %1 {offsets = [1, 0], sizes = [1, 256], strides = [1, 1]} : vector<4x256xf32> to vector<1x256xf32>
    %71 = vector.broadcast %69 : f32 to vector<1x256xf32>
    %72 = arith.mulf %71, %70 : vector<1x256xf32>
    %73 = arith.addf %68, %72 : vector<1x256xf32>
    %c3_29 = arith.constant 3 : index
    %c2_30 = arith.constant 2 : index
    %74 = memref.load %arg3[%c3_29, %c2_30] : memref<4x4xf32, #tpu.memory_space<smem>>
    %75 = vector.extract_strided_slice %1 {offsets = [2, 0], sizes = [1, 256], strides = [1, 1]} : vector<4x256xf32> to vector<1x256xf32>
    %76 = vector.broadcast %74 : f32 to vector<1x256xf32>
    %77 = arith.mulf %76, %75 : vector<1x256xf32>
    %78 = arith.addf %73, %77 : vector<1x256xf32>
    %c3_31 = arith.constant 3 : index
    %c3_32 = arith.constant 3 : index
    %79 = memref.load %arg3[%c3_31, %c3_32] : memref<4x4xf32, #tpu.memory_space<smem>>
    %80 = vector.extract_strided_slice %1 {offsets = [3, 0], sizes = [1, 256], strides = [1, 1]} : vector<4x256xf32> to vector<1x256xf32>
    %81 = vector.broadcast %79 : f32 to vector<1x256xf32>
    %82 = arith.mulf %81, %80 : vector<1x256xf32>
    %83 = arith.addf %78, %82 : vector<1x256xf32>
    %cst_33 = arith.constant 0.000000e+00 : f32
    %84 = vector.broadcast %cst_33 : f32 to vector<1x256xf32>
    %85 = arith.maximumf %83, %84 : vector<1x256xf32>
    %86 = tpu.concatenate %22, %43, %64, %85 in 0 : vector<1x256xf32>, vector<1x256xf32>, vector<1x256xf32>, vector<1x256xf32> -> vector<4x256xf32>
    %cst_34 = arith.constant 0.000000e+00 : f32
    %87 = vector.broadcast %cst_34 : f32 to vector<4x17xf32>
    %88 = tpu.concatenate %87, %86, %87 in 1 : vector<4x17xf32>, vector<4x256xf32>, vector<4x17xf32> -> vector<4x290xf32>
    %c0_35 = arith.constant 0 : index
    %c0_36 = arith.constant 0 : index
    %89 = vector.load %arg2[%c0_35, %c0_36] : memref<2x256xf32, #tpu.memory_space<vmem>>, vector<1x256xf32>
    %c1_37 = arith.constant 1 : index
    %c0_38 = arith.constant 0 : index
    %90 = vector.load %arg2[%c1_37, %c0_38] : memref<2x256xf32, #tpu.memory_space<vmem>>, vector<1x256xf32>
    %cst_39 = arith.constant 0.000000e+00 : f32
    %91 = vector.broadcast %cst_39 : f32 to vector<1x256xf32>
    %cst_40 = arith.constant 0.000000e+00 : f32
    %92 = vector.broadcast %cst_40 : f32 to vector<1x256xf32>
    %cst_41 = arith.constant 0.000000e+00 : f32
    %93 = vector.broadcast %cst_41 : f32 to vector<1x256xf32>
    %cst_42 = arith.constant 0.000000e+00 : f32
    %94 = vector.broadcast %cst_42 : f32 to vector<1x256xf32>
    %95 = vector.extract_strided_slice %88 {offsets = [0, 0], sizes = [4, 256], strides = [1, 1]} : vector<4x290xf32> to vector<4x256xf32>
    %96 = vector.broadcast %89 : vector<1x256xf32> to vector<4x256xf32>
    %97 = arith.mulf %95, %96 : vector<4x256xf32>
    %c0_43 = arith.constant 0 : index
    %c0_44 = arith.constant 0 : index
    %98 = memref.load %arg4[%c0_43, %c0_44] : memref<4x36xf32, #tpu.memory_space<smem>>
    %99 = vector.extract_strided_slice %97 {offsets = [0, 0], sizes = [1, 256], strides = [1, 1]} : vector<4x256xf32> to vector<1x256xf32>
    %100 = vector.broadcast %98 : f32 to vector<1x256xf32>
    %101 = arith.mulf %100, %99 : vector<1x256xf32>
    %102 = arith.addf %91, %101 : vector<1x256xf32>
    %c0_45 = arith.constant 0 : index
    %c9 = arith.constant 9 : index
    %103 = memref.load %arg4[%c0_45, %c9] : memref<4x36xf32, #tpu.memory_space<smem>>
    %104 = vector.extract_strided_slice %97 {offsets = [1, 0], sizes = [1, 256], strides = [1, 1]} : vector<4x256xf32> to vector<1x256xf32>
    %105 = vector.broadcast %103 : f32 to vector<1x256xf32>
    %106 = arith.mulf %105, %104 : vector<1x256xf32>
    %107 = arith.addf %102, %106 : vector<1x256xf32>
    %c0_46 = arith.constant 0 : index
    %c18 = arith.constant 18 : index
    %108 = memref.load %arg4[%c0_46, %c18] : memref<4x36xf32, #tpu.memory_space<smem>>
    %109 = vector.extract_strided_slice %97 {offsets = [2, 0], sizes = [1, 256], strides = [1, 1]} : vector<4x256xf32> to vector<1x256xf32>
    %110 = vector.broadcast %108 : f32 to vector<1x256xf32>
    %111 = arith.mulf %110, %109 : vector<1x256xf32>
    %112 = arith.addf %107, %111 : vector<1x256xf32>
    %c0_47 = arith.constant 0 : index
    %c27 = arith.constant 27 : index
    %113 = memref.load %arg4[%c0_47, %c27] : memref<4x36xf32, #tpu.memory_space<smem>>
    %114 = vector.extract_strided_slice %97 {offsets = [3, 0], sizes = [1, 256], strides = [1, 1]} : vector<4x256xf32> to vector<1x256xf32>
    %115 = vector.broadcast %113 : f32 to vector<1x256xf32>
    %116 = arith.mulf %115, %114 : vector<1x256xf32>
    %117 = arith.addf %112, %116 : vector<1x256xf32>
    %c1_48 = arith.constant 1 : index
    %c0_49 = arith.constant 0 : index
    %118 = memref.load %arg4[%c1_48, %c0_49] : memref<4x36xf32, #tpu.memory_space<smem>>
    %119 = vector.extract_strided_slice %97 {offsets = [0, 0], sizes = [1, 256], strides = [1, 1]} : vector<4x256xf32> to vector<1x256xf32>
    %120 = vector.broadcast %118 : f32 to vector<1x256xf32>
    %121 = arith.mulf %120, %119 : vector<1x256xf32>
    %122 = arith.addf %92, %121 : vector<1x256xf32>
    %c1_50 = arith.constant 1 : index
    %c9_51 = arith.constant 9 : index
    %123 = memref.load %arg4[%c1_50, %c9_51] : memref<4x36xf32, #tpu.memory_space<smem>>
    %124 = vector.extract_strided_slice %97 {offsets = [1, 0], sizes = [1, 256], strides = [1, 1]} : vector<4x256xf32> to vector<1x256xf32>
    %125 = vector.broadcast %123 : f32 to vector<1x256xf32>
    %126 = arith.mulf %125, %124 : vector<1x256xf32>
    %127 = arith.addf %122, %126 : vector<1x256xf32>
    %c1_52 = arith.constant 1 : index
    %c18_53 = arith.constant 18 : index
    %128 = memref.load %arg4[%c1_52, %c18_53] : memref<4x36xf32, #tpu.memory_space<smem>>
    %129 = vector.extract_strided_slice %97 {offsets = [2, 0], sizes = [1, 256], strides = [1, 1]} : vector<4x256xf32> to vector<1x256xf32>
    %130 = vector.broadcast %128 : f32 to vector<1x256xf32>
    %131 = arith.mulf %130, %129 : vector<1x256xf32>
    %132 = arith.addf %127, %131 : vector<1x256xf32>
    %c1_54 = arith.constant 1 : index
    %c27_55 = arith.constant 27 : index
    %133 = memref.load %arg4[%c1_54, %c27_55] : memref<4x36xf32, #tpu.memory_space<smem>>
    %134 = vector.extract_strided_slice %97 {offsets = [3, 0], sizes = [1, 256], strides = [1, 1]} : vector<4x256xf32> to vector<1x256xf32>
    %135 = vector.broadcast %133 : f32 to vector<1x256xf32>
    %136 = arith.mulf %135, %134 : vector<1x256xf32>
    %137 = arith.addf %132, %136 : vector<1x256xf32>
    %c2_56 = arith.constant 2 : index
    %c0_57 = arith.constant 0 : index
    %138 = memref.load %arg4[%c2_56, %c0_57] : memref<4x36xf32, #tpu.memory_space<smem>>
    %139 = vector.extract_strided_slice %97 {offsets = [0, 0], sizes = [1, 256], strides = [1, 1]} : vector<4x256xf32> to vector<1x256xf32>
    %140 = vector.broadcast %138 : f32 to vector<1x256xf32>
    %141 = arith.mulf %140, %139 : vector<1x256xf32>
    %142 = arith.addf %93, %141 : vector<1x256xf32>
    %c2_58 = arith.constant 2 : index
    %c9_59 = arith.constant 9 : index
    %143 = memref.load %arg4[%c2_58, %c9_59] : memref<4x36xf32, #tpu.memory_space<smem>>
    %144 = vector.extract_strided_slice %97 {offsets = [1, 0], sizes = [1, 256], strides = [1, 1]} : vector<4x256xf32> to vector<1x256xf32>
    %145 = vector.broadcast %143 : f32 to vector<1x256xf32>
    %146 = arith.mulf %145, %144 : vector<1x256xf32>
    %147 = arith.addf %142, %146 : vector<1x256xf32>
    %c2_60 = arith.constant 2 : index
    %c18_61 = arith.constant 18 : index
    %148 = memref.load %arg4[%c2_60, %c18_61] : memref<4x36xf32, #tpu.memory_space<smem>>
    %149 = vector.extract_strided_slice %97 {offsets = [2, 0], sizes = [1, 256], strides = [1, 1]} : vector<4x256xf32> to vector<1x256xf32>
    %150 = vector.broadcast %148 : f32 to vector<1x256xf32>
    %151 = arith.mulf %150, %149 : vector<1x256xf32>
    %152 = arith.addf %147, %151 : vector<1x256xf32>
    %c2_62 = arith.constant 2 : index
    %c27_63 = arith.constant 27 : index
    %153 = memref.load %arg4[%c2_62, %c27_63] : memref<4x36xf32, #tpu.memory_space<smem>>
    %154 = vector.extract_strided_slice %97 {offsets = [3, 0], sizes = [1, 256], strides = [1, 1]} : vector<4x256xf32> to vector<1x256xf32>
    %155 = vector.broadcast %153 : f32 to vector<1x256xf32>
    %156 = arith.mulf %155, %154 : vector<1x256xf32>
    %157 = arith.addf %152, %156 : vector<1x256xf32>
    %c3_64 = arith.constant 3 : index
    %c0_65 = arith.constant 0 : index
    %158 = memref.load %arg4[%c3_64, %c0_65] : memref<4x36xf32, #tpu.memory_space<smem>>
    %159 = vector.extract_strided_slice %97 {offsets = [0, 0], sizes = [1, 256], strides = [1, 1]} : vector<4x256xf32> to vector<1x256xf32>
    %160 = vector.broadcast %158 : f32 to vector<1x256xf32>
    %161 = arith.mulf %160, %159 : vector<1x256xf32>
    %162 = arith.addf %94, %161 : vector<1x256xf32>
    %c3_66 = arith.constant 3 : index
    %c9_67 = arith.constant 9 : index
    %163 = memref.load %arg4[%c3_66, %c9_67] : memref<4x36xf32, #tpu.memory_space<smem>>
    %164 = vector.extract_strided_slice %97 {offsets = [1, 0], sizes = [1, 256], strides = [1, 1]} : vector<4x256xf32> to vector<1x256xf32>
    %165 = vector.broadcast %163 : f32 to vector<1x256xf32>
    %166 = arith.mulf %165, %164 : vector<1x256xf32>
    %167 = arith.addf %162, %166 : vector<1x256xf32>
    %c3_68 = arith.constant 3 : index
    %c18_69 = arith.constant 18 : index
    %168 = memref.load %arg4[%c3_68, %c18_69] : memref<4x36xf32, #tpu.memory_space<smem>>
    %169 = vector.extract_strided_slice %97 {offsets = [2, 0], sizes = [1, 256], strides = [1, 1]} : vector<4x256xf32> to vector<1x256xf32>
    %170 = vector.broadcast %168 : f32 to vector<1x256xf32>
    %171 = arith.mulf %170, %169 : vector<1x256xf32>
    %172 = arith.addf %167, %171 : vector<1x256xf32>
    %c3_70 = arith.constant 3 : index
    %c27_71 = arith.constant 27 : index
    %173 = memref.load %arg4[%c3_70, %c27_71] : memref<4x36xf32, #tpu.memory_space<smem>>
    %174 = vector.extract_strided_slice %97 {offsets = [3, 0], sizes = [1, 256], strides = [1, 1]} : vector<4x256xf32> to vector<1x256xf32>
    %175 = vector.broadcast %173 : f32 to vector<1x256xf32>
    %176 = arith.mulf %175, %174 : vector<1x256xf32>
    %177 = arith.addf %172, %176 : vector<1x256xf32>
    %178 = vector.extract_strided_slice %88 {offsets = [0, 1], sizes = [4, 256], strides = [1, 1]} : vector<4x290xf32> to vector<4x256xf32>
    %c0_72 = arith.constant 0 : index
    %c1_73 = arith.constant 1 : index
    %179 = memref.load %arg4[%c0_72, %c1_73] : memref<4x36xf32, #tpu.memory_space<smem>>
    %180 = vector.extract_strided_slice %178 {offsets = [0, 0], sizes = [1, 256], strides = [1, 1]} : vector<4x256xf32> to vector<1x256xf32>
    %181 = vector.broadcast %179 : f32 to vector<1x256xf32>
    %182 = arith.mulf %181, %180 : vector<1x256xf32>
    %183 = arith.addf %117, %182 : vector<1x256xf32>
    %c0_74 = arith.constant 0 : index
    %c10 = arith.constant 10 : index
    %184 = memref.load %arg4[%c0_74, %c10] : memref<4x36xf32, #tpu.memory_space<smem>>
    %185 = vector.extract_strided_slice %178 {offsets = [1, 0], sizes = [1, 256], strides = [1, 1]} : vector<4x256xf32> to vector<1x256xf32>
    %186 = vector.broadcast %184 : f32 to vector<1x256xf32>
    %187 = arith.mulf %186, %185 : vector<1x256xf32>
    %188 = arith.addf %183, %187 : vector<1x256xf32>
    %c0_75 = arith.constant 0 : index
    %c19 = arith.constant 19 : index
    %189 = memref.load %arg4[%c0_75, %c19] : memref<4x36xf32, #tpu.memory_space<smem>>
    %190 = vector.extract_strided_slice %178 {offsets = [2, 0], sizes = [1, 256], strides = [1, 1]} : vector<4x256xf32> to vector<1x256xf32>
    %191 = vector.broadcast %189 : f32 to vector<1x256xf32>
    %192 = arith.mulf %191, %190 : vector<1x256xf32>
    %193 = arith.addf %188, %192 : vector<1x256xf32>
    %c0_76 = arith.constant 0 : index
    %c28 = arith.constant 28 : index
    %194 = memref.load %arg4[%c0_76, %c28] : memref<4x36xf32, #tpu.memory_space<smem>>
    %195 = vector.extract_strided_slice %178 {offsets = [3, 0], sizes = [1, 256], strides = [1, 1]} : vector<4x256xf32> to vector<1x256xf32>
    %196 = vector.broadcast %194 : f32 to vector<1x256xf32>
    %197 = arith.mulf %196, %195 : vector<1x256xf32>
    %198 = arith.addf %193, %197 : vector<1x256xf32>
    %c1_77 = arith.constant 1 : index
    %c1_78 = arith.constant 1 : index
    %199 = memref.load %arg4[%c1_77, %c1_78] : memref<4x36xf32, #tpu.memory_space<smem>>
    %200 = vector.extract_strided_slice %178 {offsets = [0, 0], sizes = [1, 256], strides = [1, 1]} : vector<4x256xf32> to vector<1x256xf32>
    %201 = vector.broadcast %199 : f32 to vector<1x256xf32>
    %202 = arith.mulf %201, %200 : vector<1x256xf32>
    %203 = arith.addf %137, %202 : vector<1x256xf32>
    %c1_79 = arith.constant 1 : index
    %c10_80 = arith.constant 10 : index
    %204 = memref.load %arg4[%c1_79, %c10_80] : memref<4x36xf32, #tpu.memory_space<smem>>
    %205 = vector.extract_strided_slice %178 {offsets = [1, 0], sizes = [1, 256], strides = [1, 1]} : vector<4x256xf32> to vector<1x256xf32>
    %206 = vector.broadcast %204 : f32 to vector<1x256xf32>
    %207 = arith.mulf %206, %205 : vector<1x256xf32>
    %208 = arith.addf %203, %207 : vector<1x256xf32>
    %c1_81 = arith.constant 1 : index
    %c19_82 = arith.constant 19 : index
    %209 = memref.load %arg4[%c1_81, %c19_82] : memref<4x36xf32, #tpu.memory_space<smem>>
    %210 = vector.extract_strided_slice %178 {offsets = [2, 0], sizes = [1, 256], strides = [1, 1]} : vector<4x256xf32> to vector<1x256xf32>
    %211 = vector.broadcast %209 : f32 to vector<1x256xf32>
    %212 = arith.mulf %211, %210 : vector<1x256xf32>
    %213 = arith.addf %208, %212 : vector<1x256xf32>
    %c1_83 = arith.constant 1 : index
    %c28_84 = arith.constant 28 : index
    %214 = memref.load %arg4[%c1_83, %c28_84] : memref<4x36xf32, #tpu.memory_space<smem>>
    %215 = vector.extract_strided_slice %178 {offsets = [3, 0], sizes = [1, 256], strides = [1, 1]} : vector<4x256xf32> to vector<1x256xf32>
    %216 = vector.broadcast %214 : f32 to vector<1x256xf32>
    %217 = arith.mulf %216, %215 : vector<1x256xf32>
    %218 = arith.addf %213, %217 : vector<1x256xf32>
    %c2_85 = arith.constant 2 : index
    %c1_86 = arith.constant 1 : index
    %219 = memref.load %arg4[%c2_85, %c1_86] : memref<4x36xf32, #tpu.memory_space<smem>>
    %220 = vector.extract_strided_slice %178 {offsets = [0, 0], sizes = [1, 256], strides = [1, 1]} : vector<4x256xf32> to vector<1x256xf32>
    %221 = vector.broadcast %219 : f32 to vector<1x256xf32>
    %222 = arith.mulf %221, %220 : vector<1x256xf32>
    %223 = arith.addf %157, %222 : vector<1x256xf32>
    %c2_87 = arith.constant 2 : index
    %c10_88 = arith.constant 10 : index
    %224 = memref.load %arg4[%c2_87, %c10_88] : memref<4x36xf32, #tpu.memory_space<smem>>
    %225 = vector.extract_strided_slice %178 {offsets = [1, 0], sizes = [1, 256], strides = [1, 1]} : vector<4x256xf32> to vector<1x256xf32>
    %226 = vector.broadcast %224 : f32 to vector<1x256xf32>
    %227 = arith.mulf %226, %225 : vector<1x256xf32>
    %228 = arith.addf %223, %227 : vector<1x256xf32>
    %c2_89 = arith.constant 2 : index
    %c19_90 = arith.constant 19 : index
    %229 = memref.load %arg4[%c2_89, %c19_90] : memref<4x36xf32, #tpu.memory_space<smem>>
    %230 = vector.extract_strided_slice %178 {offsets = [2, 0], sizes = [1, 256], strides = [1, 1]} : vector<4x256xf32> to vector<1x256xf32>
    %231 = vector.broadcast %229 : f32 to vector<1x256xf32>
    %232 = arith.mulf %231, %230 : vector<1x256xf32>
    %233 = arith.addf %228, %232 : vector<1x256xf32>
    %c2_91 = arith.constant 2 : index
    %c28_92 = arith.constant 28 : index
    %234 = memref.load %arg4[%c2_91, %c28_92] : memref<4x36xf32, #tpu.memory_space<smem>>
    %235 = vector.extract_strided_slice %178 {offsets = [3, 0], sizes = [1, 256], strides = [1, 1]} : vector<4x256xf32> to vector<1x256xf32>
    %236 = vector.broadcast %234 : f32 to vector<1x256xf32>
    %237 = arith.mulf %236, %235 : vector<1x256xf32>
    %238 = arith.addf %233, %237 : vector<1x256xf32>
    %c3_93 = arith.constant 3 : index
    %c1_94 = arith.constant 1 : index
    %239 = memref.load %arg4[%c3_93, %c1_94] : memref<4x36xf32, #tpu.memory_space<smem>>
    %240 = vector.extract_strided_slice %178 {offsets = [0, 0], sizes = [1, 256], strides = [1, 1]} : vector<4x256xf32> to vector<1x256xf32>
    %241 = vector.broadcast %239 : f32 to vector<1x256xf32>
    %242 = arith.mulf %241, %240 : vector<1x256xf32>
    %243 = arith.addf %177, %242 : vector<1x256xf32>
    %c3_95 = arith.constant 3 : index
    %c10_96 = arith.constant 10 : index
    %244 = memref.load %arg4[%c3_95, %c10_96] : memref<4x36xf32, #tpu.memory_space<smem>>
    %245 = vector.extract_strided_slice %178 {offsets = [1, 0], sizes = [1, 256], strides = [1, 1]} : vector<4x256xf32> to vector<1x256xf32>
    %246 = vector.broadcast %244 : f32 to vector<1x256xf32>
    %247 = arith.mulf %246, %245 : vector<1x256xf32>
    %248 = arith.addf %243, %247 : vector<1x256xf32>
    %c3_97 = arith.constant 3 : index
    %c19_98 = arith.constant 19 : index
    %249 = memref.load %arg4[%c3_97, %c19_98] : memref<4x36xf32, #tpu.memory_space<smem>>
    %250 = vector.extract_strided_slice %178 {offsets = [2, 0], sizes = [1, 256], strides = [1, 1]} : vector<4x256xf32> to vector<1x256xf32>
    %251 = vector.broadcast %249 : f32 to vector<1x256xf32>
    %252 = arith.mulf %251, %250 : vector<1x256xf32>
    %253 = arith.addf %248, %252 : vector<1x256xf32>
    %c3_99 = arith.constant 3 : index
    %c28_100 = arith.constant 28 : index
    %254 = memref.load %arg4[%c3_99, %c28_100] : memref<4x36xf32, #tpu.memory_space<smem>>
    %255 = vector.extract_strided_slice %178 {offsets = [3, 0], sizes = [1, 256], strides = [1, 1]} : vector<4x256xf32> to vector<1x256xf32>
    %256 = vector.broadcast %254 : f32 to vector<1x256xf32>
    %257 = arith.mulf %256, %255 : vector<1x256xf32>
    %258 = arith.addf %253, %257 : vector<1x256xf32>
    %259 = vector.extract_strided_slice %88 {offsets = [0, 2], sizes = [4, 256], strides = [1, 1]} : vector<4x290xf32> to vector<4x256xf32>
    %260 = vector.broadcast %90 : vector<1x256xf32> to vector<4x256xf32>
    %261 = arith.mulf %259, %260 : vector<4x256xf32>
    %c0_101 = arith.constant 0 : index
    %c2_102 = arith.constant 2 : index
    %262 = memref.load %arg4[%c0_101, %c2_102] : memref<4x36xf32, #tpu.memory_space<smem>>
    %263 = vector.extract_strided_slice %261 {offsets = [0, 0], sizes = [1, 256], strides = [1, 1]} : vector<4x256xf32> to vector<1x256xf32>
    %264 = vector.broadcast %262 : f32 to vector<1x256xf32>
    %265 = arith.mulf %264, %263 : vector<1x256xf32>
    %266 = arith.addf %198, %265 : vector<1x256xf32>
    %c0_103 = arith.constant 0 : index
    %c11 = arith.constant 11 : index
    %267 = memref.load %arg4[%c0_103, %c11] : memref<4x36xf32, #tpu.memory_space<smem>>
    %268 = vector.extract_strided_slice %261 {offsets = [1, 0], sizes = [1, 256], strides = [1, 1]} : vector<4x256xf32> to vector<1x256xf32>
    %269 = vector.broadcast %267 : f32 to vector<1x256xf32>
    %270 = arith.mulf %269, %268 : vector<1x256xf32>
    %271 = arith.addf %266, %270 : vector<1x256xf32>
    %c0_104 = arith.constant 0 : index
    %c20 = arith.constant 20 : index
    %272 = memref.load %arg4[%c0_104, %c20] : memref<4x36xf32, #tpu.memory_space<smem>>
    %273 = vector.extract_strided_slice %261 {offsets = [2, 0], sizes = [1, 256], strides = [1, 1]} : vector<4x256xf32> to vector<1x256xf32>
    %274 = vector.broadcast %272 : f32 to vector<1x256xf32>
    %275 = arith.mulf %274, %273 : vector<1x256xf32>
    %276 = arith.addf %271, %275 : vector<1x256xf32>
    %c0_105 = arith.constant 0 : index
    %c29 = arith.constant 29 : index
    %277 = memref.load %arg4[%c0_105, %c29] : memref<4x36xf32, #tpu.memory_space<smem>>
    %278 = vector.extract_strided_slice %261 {offsets = [3, 0], sizes = [1, 256], strides = [1, 1]} : vector<4x256xf32> to vector<1x256xf32>
    %279 = vector.broadcast %277 : f32 to vector<1x256xf32>
    %280 = arith.mulf %279, %278 : vector<1x256xf32>
    %281 = arith.addf %276, %280 : vector<1x256xf32>
    %c1_106 = arith.constant 1 : index
    %c2_107 = arith.constant 2 : index
    %282 = memref.load %arg4[%c1_106, %c2_107] : memref<4x36xf32, #tpu.memory_space<smem>>
    %283 = vector.extract_strided_slice %261 {offsets = [0, 0], sizes = [1, 256], strides = [1, 1]} : vector<4x256xf32> to vector<1x256xf32>
    %284 = vector.broadcast %282 : f32 to vector<1x256xf32>
    %285 = arith.mulf %284, %283 : vector<1x256xf32>
    %286 = arith.addf %218, %285 : vector<1x256xf32>
    %c1_108 = arith.constant 1 : index
    %c11_109 = arith.constant 11 : index
    %287 = memref.load %arg4[%c1_108, %c11_109] : memref<4x36xf32, #tpu.memory_space<smem>>
    %288 = vector.extract_strided_slice %261 {offsets = [1, 0], sizes = [1, 256], strides = [1, 1]} : vector<4x256xf32> to vector<1x256xf32>
    %289 = vector.broadcast %287 : f32 to vector<1x256xf32>
    %290 = arith.mulf %289, %288 : vector<1x256xf32>
    %291 = arith.addf %286, %290 : vector<1x256xf32>
    %c1_110 = arith.constant 1 : index
    %c20_111 = arith.constant 20 : index
    %292 = memref.load %arg4[%c1_110, %c20_111] : memref<4x36xf32, #tpu.memory_space<smem>>
    %293 = vector.extract_strided_slice %261 {offsets = [2, 0], sizes = [1, 256], strides = [1, 1]} : vector<4x256xf32> to vector<1x256xf32>
    %294 = vector.broadcast %292 : f32 to vector<1x256xf32>
    %295 = arith.mulf %294, %293 : vector<1x256xf32>
    %296 = arith.addf %291, %295 : vector<1x256xf32>
    %c1_112 = arith.constant 1 : index
    %c29_113 = arith.constant 29 : index
    %297 = memref.load %arg4[%c1_112, %c29_113] : memref<4x36xf32, #tpu.memory_space<smem>>
    %298 = vector.extract_strided_slice %261 {offsets = [3, 0], sizes = [1, 256], strides = [1, 1]} : vector<4x256xf32> to vector<1x256xf32>
    %299 = vector.broadcast %297 : f32 to vector<1x256xf32>
    %300 = arith.mulf %299, %298 : vector<1x256xf32>
    %301 = arith.addf %296, %300 : vector<1x256xf32>
    %c2_114 = arith.constant 2 : index
    %c2_115 = arith.constant 2 : index
    %302 = memref.load %arg4[%c2_114, %c2_115] : memref<4x36xf32, #tpu.memory_space<smem>>
    %303 = vector.extract_strided_slice %261 {offsets = [0, 0], sizes = [1, 256], strides = [1, 1]} : vector<4x256xf32> to vector<1x256xf32>
    %304 = vector.broadcast %302 : f32 to vector<1x256xf32>
    %305 = arith.mulf %304, %303 : vector<1x256xf32>
    %306 = arith.addf %238, %305 : vector<1x256xf32>
    %c2_116 = arith.constant 2 : index
    %c11_117 = arith.constant 11 : index
    %307 = memref.load %arg4[%c2_116, %c11_117] : memref<4x36xf32, #tpu.memory_space<smem>>
    %308 = vector.extract_strided_slice %261 {offsets = [1, 0], sizes = [1, 256], strides = [1, 1]} : vector<4x256xf32> to vector<1x256xf32>
    %309 = vector.broadcast %307 : f32 to vector<1x256xf32>
    %310 = arith.mulf %309, %308 : vector<1x256xf32>
    %311 = arith.addf %306, %310 : vector<1x256xf32>
    %c2_118 = arith.constant 2 : index
    %c20_119 = arith.constant 20 : index
    %312 = memref.load %arg4[%c2_118, %c20_119] : memref<4x36xf32, #tpu.memory_space<smem>>
    %313 = vector.extract_strided_slice %261 {offsets = [2, 0], sizes = [1, 256], strides = [1, 1]} : vector<4x256xf32> to vector<1x256xf32>
    %314 = vector.broadcast %312 : f32 to vector<1x256xf32>
    %315 = arith.mulf %314, %313 : vector<1x256xf32>
    %316 = arith.addf %311, %315 : vector<1x256xf32>
    %c2_120 = arith.constant 2 : index
    %c29_121 = arith.constant 29 : index
    %317 = memref.load %arg4[%c2_120, %c29_121] : memref<4x36xf32, #tpu.memory_space<smem>>
    %318 = vector.extract_strided_slice %261 {offsets = [3, 0], sizes = [1, 256], strides = [1, 1]} : vector<4x256xf32> to vector<1x256xf32>
    %319 = vector.broadcast %317 : f32 to vector<1x256xf32>
    %320 = arith.mulf %319, %318 : vector<1x256xf32>
    %321 = arith.addf %316, %320 : vector<1x256xf32>
    %c3_122 = arith.constant 3 : index
    %c2_123 = arith.constant 2 : index
    %322 = memref.load %arg4[%c3_122, %c2_123] : memref<4x36xf32, #tpu.memory_space<smem>>
    %323 = vector.extract_strided_slice %261 {offsets = [0, 0], sizes = [1, 256], strides = [1, 1]} : vector<4x256xf32> to vector<1x256xf32>
    %324 = vector.broadcast %322 : f32 to vector<1x256xf32>
    %325 = arith.mulf %324, %323 : vector<1x256xf32>
    %326 = arith.addf %258, %325 : vector<1x256xf32>
    %c3_124 = arith.constant 3 : index
    %c11_125 = arith.constant 11 : index
    %327 = memref.load %arg4[%c3_124, %c11_125] : memref<4x36xf32, #tpu.memory_space<smem>>
    %328 = vector.extract_strided_slice %261 {offsets = [1, 0], sizes = [1, 256], strides = [1, 1]} : vector<4x256xf32> to vector<1x256xf32>
    %329 = vector.broadcast %327 : f32 to vector<1x256xf32>
    %330 = arith.mulf %329, %328 : vector<1x256xf32>
    %331 = arith.addf %326, %330 : vector<1x256xf32>
    %c3_126 = arith.constant 3 : index
    %c20_127 = arith.constant 20 : index
    %332 = memref.load %arg4[%c3_126, %c20_127] : memref<4x36xf32, #tpu.memory_space<smem>>
    %333 = vector.extract_strided_slice %261 {offsets = [2, 0], sizes = [1, 256], strides = [1, 1]} : vector<4x256xf32> to vector<1x256xf32>
    %334 = vector.broadcast %332 : f32 to vector<1x256xf32>
    %335 = arith.mulf %334, %333 : vector<1x256xf32>
    %336 = arith.addf %331, %335 : vector<1x256xf32>
    %c3_128 = arith.constant 3 : index
    %c29_129 = arith.constant 29 : index
    %337 = memref.load %arg4[%c3_128, %c29_129] : memref<4x36xf32, #tpu.memory_space<smem>>
    %338 = vector.extract_strided_slice %261 {offsets = [3, 0], sizes = [1, 256], strides = [1, 1]} : vector<4x256xf32> to vector<1x256xf32>
    %339 = vector.broadcast %337 : f32 to vector<1x256xf32>
    %340 = arith.mulf %339, %338 : vector<1x256xf32>
    %341 = arith.addf %336, %340 : vector<1x256xf32>
    %342 = vector.extract_strided_slice %88 {offsets = [0, 16], sizes = [4, 256], strides = [1, 1]} : vector<4x290xf32> to vector<4x256xf32>
    %343 = vector.broadcast %89 : vector<1x256xf32> to vector<4x256xf32>
    %344 = arith.mulf %342, %343 : vector<4x256xf32>
    %c0_130 = arith.constant 0 : index
    %c3_131 = arith.constant 3 : index
    %345 = memref.load %arg4[%c0_130, %c3_131] : memref<4x36xf32, #tpu.memory_space<smem>>
    %346 = vector.extract_strided_slice %344 {offsets = [0, 0], sizes = [1, 256], strides = [1, 1]} : vector<4x256xf32> to vector<1x256xf32>
    %347 = vector.broadcast %345 : f32 to vector<1x256xf32>
    %348 = arith.mulf %347, %346 : vector<1x256xf32>
    %349 = arith.addf %281, %348 : vector<1x256xf32>
    %c0_132 = arith.constant 0 : index
    %c12 = arith.constant 12 : index
    %350 = memref.load %arg4[%c0_132, %c12] : memref<4x36xf32, #tpu.memory_space<smem>>
    %351 = vector.extract_strided_slice %344 {offsets = [1, 0], sizes = [1, 256], strides = [1, 1]} : vector<4x256xf32> to vector<1x256xf32>
    %352 = vector.broadcast %350 : f32 to vector<1x256xf32>
    %353 = arith.mulf %352, %351 : vector<1x256xf32>
    %354 = arith.addf %349, %353 : vector<1x256xf32>
    %c0_133 = arith.constant 0 : index
    %c21 = arith.constant 21 : index
    %355 = memref.load %arg4[%c0_133, %c21] : memref<4x36xf32, #tpu.memory_space<smem>>
    %356 = vector.extract_strided_slice %344 {offsets = [2, 0], sizes = [1, 256], strides = [1, 1]} : vector<4x256xf32> to vector<1x256xf32>
    %357 = vector.broadcast %355 : f32 to vector<1x256xf32>
    %358 = arith.mulf %357, %356 : vector<1x256xf32>
    %359 = arith.addf %354, %358 : vector<1x256xf32>
    %c0_134 = arith.constant 0 : index
    %c30 = arith.constant 30 : index
    %360 = memref.load %arg4[%c0_134, %c30] : memref<4x36xf32, #tpu.memory_space<smem>>
    %361 = vector.extract_strided_slice %344 {offsets = [3, 0], sizes = [1, 256], strides = [1, 1]} : vector<4x256xf32> to vector<1x256xf32>
    %362 = vector.broadcast %360 : f32 to vector<1x256xf32>
    %363 = arith.mulf %362, %361 : vector<1x256xf32>
    %364 = arith.addf %359, %363 : vector<1x256xf32>
    %c1_135 = arith.constant 1 : index
    %c3_136 = arith.constant 3 : index
    %365 = memref.load %arg4[%c1_135, %c3_136] : memref<4x36xf32, #tpu.memory_space<smem>>
    %366 = vector.extract_strided_slice %344 {offsets = [0, 0], sizes = [1, 256], strides = [1, 1]} : vector<4x256xf32> to vector<1x256xf32>
    %367 = vector.broadcast %365 : f32 to vector<1x256xf32>
    %368 = arith.mulf %367, %366 : vector<1x256xf32>
    %369 = arith.addf %301, %368 : vector<1x256xf32>
    %c1_137 = arith.constant 1 : index
    %c12_138 = arith.constant 12 : index
    %370 = memref.load %arg4[%c1_137, %c12_138] : memref<4x36xf32, #tpu.memory_space<smem>>
    %371 = vector.extract_strided_slice %344 {offsets = [1, 0], sizes = [1, 256], strides = [1, 1]} : vector<4x256xf32> to vector<1x256xf32>
    %372 = vector.broadcast %370 : f32 to vector<1x256xf32>
    %373 = arith.mulf %372, %371 : vector<1x256xf32>
    %374 = arith.addf %369, %373 : vector<1x256xf32>
    %c1_139 = arith.constant 1 : index
    %c21_140 = arith.constant 21 : index
    %375 = memref.load %arg4[%c1_139, %c21_140] : memref<4x36xf32, #tpu.memory_space<smem>>
    %376 = vector.extract_strided_slice %344 {offsets = [2, 0], sizes = [1, 256], strides = [1, 1]} : vector<4x256xf32> to vector<1x256xf32>
    %377 = vector.broadcast %375 : f32 to vector<1x256xf32>
    %378 = arith.mulf %377, %376 : vector<1x256xf32>
    %379 = arith.addf %374, %378 : vector<1x256xf32>
    %c1_141 = arith.constant 1 : index
    %c30_142 = arith.constant 30 : index
    %380 = memref.load %arg4[%c1_141, %c30_142] : memref<4x36xf32, #tpu.memory_space<smem>>
    %381 = vector.extract_strided_slice %344 {offsets = [3, 0], sizes = [1, 256], strides = [1, 1]} : vector<4x256xf32> to vector<1x256xf32>
    %382 = vector.broadcast %380 : f32 to vector<1x256xf32>
    %383 = arith.mulf %382, %381 : vector<1x256xf32>
    %384 = arith.addf %379, %383 : vector<1x256xf32>
    %c2_143 = arith.constant 2 : index
    %c3_144 = arith.constant 3 : index
    %385 = memref.load %arg4[%c2_143, %c3_144] : memref<4x36xf32, #tpu.memory_space<smem>>
    %386 = vector.extract_strided_slice %344 {offsets = [0, 0], sizes = [1, 256], strides = [1, 1]} : vector<4x256xf32> to vector<1x256xf32>
    %387 = vector.broadcast %385 : f32 to vector<1x256xf32>
    %388 = arith.mulf %387, %386 : vector<1x256xf32>
    %389 = arith.addf %321, %388 : vector<1x256xf32>
    %c2_145 = arith.constant 2 : index
    %c12_146 = arith.constant 12 : index
    %390 = memref.load %arg4[%c2_145, %c12_146] : memref<4x36xf32, #tpu.memory_space<smem>>
    %391 = vector.extract_strided_slice %344 {offsets = [1, 0], sizes = [1, 256], strides = [1, 1]} : vector<4x256xf32> to vector<1x256xf32>
    %392 = vector.broadcast %390 : f32 to vector<1x256xf32>
    %393 = arith.mulf %392, %391 : vector<1x256xf32>
    %394 = arith.addf %389, %393 : vector<1x256xf32>
    %c2_147 = arith.constant 2 : index
    %c21_148 = arith.constant 21 : index
    %395 = memref.load %arg4[%c2_147, %c21_148] : memref<4x36xf32, #tpu.memory_space<smem>>
    %396 = vector.extract_strided_slice %344 {offsets = [2, 0], sizes = [1, 256], strides = [1, 1]} : vector<4x256xf32> to vector<1x256xf32>
    %397 = vector.broadcast %395 : f32 to vector<1x256xf32>
    %398 = arith.mulf %397, %396 : vector<1x256xf32>
    %399 = arith.addf %394, %398 : vector<1x256xf32>
    %c2_149 = arith.constant 2 : index
    %c30_150 = arith.constant 30 : index
    %400 = memref.load %arg4[%c2_149, %c30_150] : memref<4x36xf32, #tpu.memory_space<smem>>
    %401 = vector.extract_strided_slice %344 {offsets = [3, 0], sizes = [1, 256], strides = [1, 1]} : vector<4x256xf32> to vector<1x256xf32>
    %402 = vector.broadcast %400 : f32 to vector<1x256xf32>
    %403 = arith.mulf %402, %401 : vector<1x256xf32>
    %404 = arith.addf %399, %403 : vector<1x256xf32>
    %c3_151 = arith.constant 3 : index
    %c3_152 = arith.constant 3 : index
    %405 = memref.load %arg4[%c3_151, %c3_152] : memref<4x36xf32, #tpu.memory_space<smem>>
    %406 = vector.extract_strided_slice %344 {offsets = [0, 0], sizes = [1, 256], strides = [1, 1]} : vector<4x256xf32> to vector<1x256xf32>
    %407 = vector.broadcast %405 : f32 to vector<1x256xf32>
    %408 = arith.mulf %407, %406 : vector<1x256xf32>
    %409 = arith.addf %341, %408 : vector<1x256xf32>
    %c3_153 = arith.constant 3 : index
    %c12_154 = arith.constant 12 : index
    %410 = memref.load %arg4[%c3_153, %c12_154] : memref<4x36xf32, #tpu.memory_space<smem>>
    %411 = vector.extract_strided_slice %344 {offsets = [1, 0], sizes = [1, 256], strides = [1, 1]} : vector<4x256xf32> to vector<1x256xf32>
    %412 = vector.broadcast %410 : f32 to vector<1x256xf32>
    %413 = arith.mulf %412, %411 : vector<1x256xf32>
    %414 = arith.addf %409, %413 : vector<1x256xf32>
    %c3_155 = arith.constant 3 : index
    %c21_156 = arith.constant 21 : index
    %415 = memref.load %arg4[%c3_155, %c21_156] : memref<4x36xf32, #tpu.memory_space<smem>>
    %416 = vector.extract_strided_slice %344 {offsets = [2, 0], sizes = [1, 256], strides = [1, 1]} : vector<4x256xf32> to vector<1x256xf32>
    %417 = vector.broadcast %415 : f32 to vector<1x256xf32>
    %418 = arith.mulf %417, %416 : vector<1x256xf32>
    %419 = arith.addf %414, %418 : vector<1x256xf32>
    %c3_157 = arith.constant 3 : index
    %c30_158 = arith.constant 30 : index
    %420 = memref.load %arg4[%c3_157, %c30_158] : memref<4x36xf32, #tpu.memory_space<smem>>
    %421 = vector.extract_strided_slice %344 {offsets = [3, 0], sizes = [1, 256], strides = [1, 1]} : vector<4x256xf32> to vector<1x256xf32>
    %422 = vector.broadcast %420 : f32 to vector<1x256xf32>
    %423 = arith.mulf %422, %421 : vector<1x256xf32>
    %424 = arith.addf %419, %423 : vector<1x256xf32>
    %425 = vector.extract_strided_slice %88 {offsets = [0, 17], sizes = [4, 256], strides = [1, 1]} : vector<4x290xf32> to vector<4x256xf32>
    %c0_159 = arith.constant 0 : index
    %c4 = arith.constant 4 : index
    %426 = memref.load %arg4[%c0_159, %c4] : memref<4x36xf32, #tpu.memory_space<smem>>
    %427 = vector.extract_strided_slice %425 {offsets = [0, 0], sizes = [1, 256], strides = [1, 1]} : vector<4x256xf32> to vector<1x256xf32>
    %428 = vector.broadcast %426 : f32 to vector<1x256xf32>
    %429 = arith.mulf %428, %427 : vector<1x256xf32>
    %430 = arith.addf %364, %429 : vector<1x256xf32>
    %c0_160 = arith.constant 0 : index
    %c13 = arith.constant 13 : index
    %431 = memref.load %arg4[%c0_160, %c13] : memref<4x36xf32, #tpu.memory_space<smem>>
    %432 = vector.extract_strided_slice %425 {offsets = [1, 0], sizes = [1, 256], strides = [1, 1]} : vector<4x256xf32> to vector<1x256xf32>
    %433 = vector.broadcast %431 : f32 to vector<1x256xf32>
    %434 = arith.mulf %433, %432 : vector<1x256xf32>
    %435 = arith.addf %430, %434 : vector<1x256xf32>
    %c0_161 = arith.constant 0 : index
    %c22 = arith.constant 22 : index
    %436 = memref.load %arg4[%c0_161, %c22] : memref<4x36xf32, #tpu.memory_space<smem>>
    %437 = vector.extract_strided_slice %425 {offsets = [2, 0], sizes = [1, 256], strides = [1, 1]} : vector<4x256xf32> to vector<1x256xf32>
    %438 = vector.broadcast %436 : f32 to vector<1x256xf32>
    %439 = arith.mulf %438, %437 : vector<1x256xf32>
    %440 = arith.addf %435, %439 : vector<1x256xf32>
    %c0_162 = arith.constant 0 : index
    %c31 = arith.constant 31 : index
    %441 = memref.load %arg4[%c0_162, %c31] : memref<4x36xf32, #tpu.memory_space<smem>>
    %442 = vector.extract_strided_slice %425 {offsets = [3, 0], sizes = [1, 256], strides = [1, 1]} : vector<4x256xf32> to vector<1x256xf32>
    %443 = vector.broadcast %441 : f32 to vector<1x256xf32>
    %444 = arith.mulf %443, %442 : vector<1x256xf32>
    %445 = arith.addf %440, %444 : vector<1x256xf32>
    %c1_163 = arith.constant 1 : index
    %c4_164 = arith.constant 4 : index
    %446 = memref.load %arg4[%c1_163, %c4_164] : memref<4x36xf32, #tpu.memory_space<smem>>
    %447 = vector.extract_strided_slice %425 {offsets = [0, 0], sizes = [1, 256], strides = [1, 1]} : vector<4x256xf32> to vector<1x256xf32>
    %448 = vector.broadcast %446 : f32 to vector<1x256xf32>
    %449 = arith.mulf %448, %447 : vector<1x256xf32>
    %450 = arith.addf %384, %449 : vector<1x256xf32>
    %c1_165 = arith.constant 1 : index
    %c13_166 = arith.constant 13 : index
    %451 = memref.load %arg4[%c1_165, %c13_166] : memref<4x36xf32, #tpu.memory_space<smem>>
    %452 = vector.extract_strided_slice %425 {offsets = [1, 0], sizes = [1, 256], strides = [1, 1]} : vector<4x256xf32> to vector<1x256xf32>
    %453 = vector.broadcast %451 : f32 to vector<1x256xf32>
    %454 = arith.mulf %453, %452 : vector<1x256xf32>
    %455 = arith.addf %450, %454 : vector<1x256xf32>
    %c1_167 = arith.constant 1 : index
    %c22_168 = arith.constant 22 : index
    %456 = memref.load %arg4[%c1_167, %c22_168] : memref<4x36xf32, #tpu.memory_space<smem>>
    %457 = vector.extract_strided_slice %425 {offsets = [2, 0], sizes = [1, 256], strides = [1, 1]} : vector<4x256xf32> to vector<1x256xf32>
    %458 = vector.broadcast %456 : f32 to vector<1x256xf32>
    %459 = arith.mulf %458, %457 : vector<1x256xf32>
    %460 = arith.addf %455, %459 : vector<1x256xf32>
    %c1_169 = arith.constant 1 : index
    %c31_170 = arith.constant 31 : index
    %461 = memref.load %arg4[%c1_169, %c31_170] : memref<4x36xf32, #tpu.memory_space<smem>>
    %462 = vector.extract_strided_slice %425 {offsets = [3, 0], sizes = [1, 256], strides = [1, 1]} : vector<4x256xf32> to vector<1x256xf32>
    %463 = vector.broadcast %461 : f32 to vector<1x256xf32>
    %464 = arith.mulf %463, %462 : vector<1x256xf32>
    %465 = arith.addf %460, %464 : vector<1x256xf32>
    %c2_171 = arith.constant 2 : index
    %c4_172 = arith.constant 4 : index
    %466 = memref.load %arg4[%c2_171, %c4_172] : memref<4x36xf32, #tpu.memory_space<smem>>
    %467 = vector.extract_strided_slice %425 {offsets = [0, 0], sizes = [1, 256], strides = [1, 1]} : vector<4x256xf32> to vector<1x256xf32>
    %468 = vector.broadcast %466 : f32 to vector<1x256xf32>
    %469 = arith.mulf %468, %467 : vector<1x256xf32>
    %470 = arith.addf %404, %469 : vector<1x256xf32>
    %c2_173 = arith.constant 2 : index
    %c13_174 = arith.constant 13 : index
    %471 = memref.load %arg4[%c2_173, %c13_174] : memref<4x36xf32, #tpu.memory_space<smem>>
    %472 = vector.extract_strided_slice %425 {offsets = [1, 0], sizes = [1, 256], strides = [1, 1]} : vector<4x256xf32> to vector<1x256xf32>
    %473 = vector.broadcast %471 : f32 to vector<1x256xf32>
    %474 = arith.mulf %473, %472 : vector<1x256xf32>
    %475 = arith.addf %470, %474 : vector<1x256xf32>
    %c2_175 = arith.constant 2 : index
    %c22_176 = arith.constant 22 : index
    %476 = memref.load %arg4[%c2_175, %c22_176] : memref<4x36xf32, #tpu.memory_space<smem>>
    %477 = vector.extract_strided_slice %425 {offsets = [2, 0], sizes = [1, 256], strides = [1, 1]} : vector<4x256xf32> to vector<1x256xf32>
    %478 = vector.broadcast %476 : f32 to vector<1x256xf32>
    %479 = arith.mulf %478, %477 : vector<1x256xf32>
    %480 = arith.addf %475, %479 : vector<1x256xf32>
    %c2_177 = arith.constant 2 : index
    %c31_178 = arith.constant 31 : index
    %481 = memref.load %arg4[%c2_177, %c31_178] : memref<4x36xf32, #tpu.memory_space<smem>>
    %482 = vector.extract_strided_slice %425 {offsets = [3, 0], sizes = [1, 256], strides = [1, 1]} : vector<4x256xf32> to vector<1x256xf32>
    %483 = vector.broadcast %481 : f32 to vector<1x256xf32>
    %484 = arith.mulf %483, %482 : vector<1x256xf32>
    %485 = arith.addf %480, %484 : vector<1x256xf32>
    %c3_179 = arith.constant 3 : index
    %c4_180 = arith.constant 4 : index
    %486 = memref.load %arg4[%c3_179, %c4_180] : memref<4x36xf32, #tpu.memory_space<smem>>
    %487 = vector.extract_strided_slice %425 {offsets = [0, 0], sizes = [1, 256], strides = [1, 1]} : vector<4x256xf32> to vector<1x256xf32>
    %488 = vector.broadcast %486 : f32 to vector<1x256xf32>
    %489 = arith.mulf %488, %487 : vector<1x256xf32>
    %490 = arith.addf %424, %489 : vector<1x256xf32>
    %c3_181 = arith.constant 3 : index
    %c13_182 = arith.constant 13 : index
    %491 = memref.load %arg4[%c3_181, %c13_182] : memref<4x36xf32, #tpu.memory_space<smem>>
    %492 = vector.extract_strided_slice %425 {offsets = [1, 0], sizes = [1, 256], strides = [1, 1]} : vector<4x256xf32> to vector<1x256xf32>
    %493 = vector.broadcast %491 : f32 to vector<1x256xf32>
    %494 = arith.mulf %493, %492 : vector<1x256xf32>
    %495 = arith.addf %490, %494 : vector<1x256xf32>
    %c3_183 = arith.constant 3 : index
    %c22_184 = arith.constant 22 : index
    %496 = memref.load %arg4[%c3_183, %c22_184] : memref<4x36xf32, #tpu.memory_space<smem>>
    %497 = vector.extract_strided_slice %425 {offsets = [2, 0], sizes = [1, 256], strides = [1, 1]} : vector<4x256xf32> to vector<1x256xf32>
    %498 = vector.broadcast %496 : f32 to vector<1x256xf32>
    %499 = arith.mulf %498, %497 : vector<1x256xf32>
    %500 = arith.addf %495, %499 : vector<1x256xf32>
    %c3_185 = arith.constant 3 : index
    %c31_186 = arith.constant 31 : index
    %501 = memref.load %arg4[%c3_185, %c31_186] : memref<4x36xf32, #tpu.memory_space<smem>>
    %502 = vector.extract_strided_slice %425 {offsets = [3, 0], sizes = [1, 256], strides = [1, 1]} : vector<4x256xf32> to vector<1x256xf32>
    %503 = vector.broadcast %501 : f32 to vector<1x256xf32>
    %504 = arith.mulf %503, %502 : vector<1x256xf32>
    %505 = arith.addf %500, %504 : vector<1x256xf32>
    %506 = vector.extract_strided_slice %88 {offsets = [0, 18], sizes = [4, 256], strides = [1, 1]} : vector<4x290xf32> to vector<4x256xf32>
    %507 = vector.broadcast %90 : vector<1x256xf32> to vector<4x256xf32>
    %508 = arith.mulf %506, %507 : vector<4x256xf32>
    %c0_187 = arith.constant 0 : index
    %c5 = arith.constant 5 : index
    %509 = memref.load %arg4[%c0_187, %c5] : memref<4x36xf32, #tpu.memory_space<smem>>
    %510 = vector.extract_strided_slice %508 {offsets = [0, 0], sizes = [1, 256], strides = [1, 1]} : vector<4x256xf32> to vector<1x256xf32>
    %511 = vector.broadcast %509 : f32 to vector<1x256xf32>
    %512 = arith.mulf %511, %510 : vector<1x256xf32>
    %513 = arith.addf %445, %512 : vector<1x256xf32>
    %c0_188 = arith.constant 0 : index
    %c14 = arith.constant 14 : index
    %514 = memref.load %arg4[%c0_188, %c14] : memref<4x36xf32, #tpu.memory_space<smem>>
    %515 = vector.extract_strided_slice %508 {offsets = [1, 0], sizes = [1, 256], strides = [1, 1]} : vector<4x256xf32> to vector<1x256xf32>
    %516 = vector.broadcast %514 : f32 to vector<1x256xf32>
    %517 = arith.mulf %516, %515 : vector<1x256xf32>
    %518 = arith.addf %513, %517 : vector<1x256xf32>
    %c0_189 = arith.constant 0 : index
    %c23 = arith.constant 23 : index
    %519 = memref.load %arg4[%c0_189, %c23] : memref<4x36xf32, #tpu.memory_space<smem>>
    %520 = vector.extract_strided_slice %508 {offsets = [2, 0], sizes = [1, 256], strides = [1, 1]} : vector<4x256xf32> to vector<1x256xf32>
    %521 = vector.broadcast %519 : f32 to vector<1x256xf32>
    %522 = arith.mulf %521, %520 : vector<1x256xf32>
    %523 = arith.addf %518, %522 : vector<1x256xf32>
    %c0_190 = arith.constant 0 : index
    %c32 = arith.constant 32 : index
    %524 = memref.load %arg4[%c0_190, %c32] : memref<4x36xf32, #tpu.memory_space<smem>>
    %525 = vector.extract_strided_slice %508 {offsets = [3, 0], sizes = [1, 256], strides = [1, 1]} : vector<4x256xf32> to vector<1x256xf32>
    %526 = vector.broadcast %524 : f32 to vector<1x256xf32>
    %527 = arith.mulf %526, %525 : vector<1x256xf32>
    %528 = arith.addf %523, %527 : vector<1x256xf32>
    %c1_191 = arith.constant 1 : index
    %c5_192 = arith.constant 5 : index
    %529 = memref.load %arg4[%c1_191, %c5_192] : memref<4x36xf32, #tpu.memory_space<smem>>
    %530 = vector.extract_strided_slice %508 {offsets = [0, 0], sizes = [1, 256], strides = [1, 1]} : vector<4x256xf32> to vector<1x256xf32>
    %531 = vector.broadcast %529 : f32 to vector<1x256xf32>
    %532 = arith.mulf %531, %530 : vector<1x256xf32>
    %533 = arith.addf %465, %532 : vector<1x256xf32>
    %c1_193 = arith.constant 1 : index
    %c14_194 = arith.constant 14 : index
    %534 = memref.load %arg4[%c1_193, %c14_194] : memref<4x36xf32, #tpu.memory_space<smem>>
    %535 = vector.extract_strided_slice %508 {offsets = [1, 0], sizes = [1, 256], strides = [1, 1]} : vector<4x256xf32> to vector<1x256xf32>
    %536 = vector.broadcast %534 : f32 to vector<1x256xf32>
    %537 = arith.mulf %536, %535 : vector<1x256xf32>
    %538 = arith.addf %533, %537 : vector<1x256xf32>
    %c1_195 = arith.constant 1 : index
    %c23_196 = arith.constant 23 : index
    %539 = memref.load %arg4[%c1_195, %c23_196] : memref<4x36xf32, #tpu.memory_space<smem>>
    %540 = vector.extract_strided_slice %508 {offsets = [2, 0], sizes = [1, 256], strides = [1, 1]} : vector<4x256xf32> to vector<1x256xf32>
    %541 = vector.broadcast %539 : f32 to vector<1x256xf32>
    %542 = arith.mulf %541, %540 : vector<1x256xf32>
    %543 = arith.addf %538, %542 : vector<1x256xf32>
    %c1_197 = arith.constant 1 : index
    %c32_198 = arith.constant 32 : index
    %544 = memref.load %arg4[%c1_197, %c32_198] : memref<4x36xf32, #tpu.memory_space<smem>>
    %545 = vector.extract_strided_slice %508 {offsets = [3, 0], sizes = [1, 256], strides = [1, 1]} : vector<4x256xf32> to vector<1x256xf32>
    %546 = vector.broadcast %544 : f32 to vector<1x256xf32>
    %547 = arith.mulf %546, %545 : vector<1x256xf32>
    %548 = arith.addf %543, %547 : vector<1x256xf32>
    %c2_199 = arith.constant 2 : index
    %c5_200 = arith.constant 5 : index
    %549 = memref.load %arg4[%c2_199, %c5_200] : memref<4x36xf32, #tpu.memory_space<smem>>
    %550 = vector.extract_strided_slice %508 {offsets = [0, 0], sizes = [1, 256], strides = [1, 1]} : vector<4x256xf32> to vector<1x256xf32>
    %551 = vector.broadcast %549 : f32 to vector<1x256xf32>
    %552 = arith.mulf %551, %550 : vector<1x256xf32>
    %553 = arith.addf %485, %552 : vector<1x256xf32>
    %c2_201 = arith.constant 2 : index
    %c14_202 = arith.constant 14 : index
    %554 = memref.load %arg4[%c2_201, %c14_202] : memref<4x36xf32, #tpu.memory_space<smem>>
    %555 = vector.extract_strided_slice %508 {offsets = [1, 0], sizes = [1, 256], strides = [1, 1]} : vector<4x256xf32> to vector<1x256xf32>
    %556 = vector.broadcast %554 : f32 to vector<1x256xf32>
    %557 = arith.mulf %556, %555 : vector<1x256xf32>
    %558 = arith.addf %553, %557 : vector<1x256xf32>
    %c2_203 = arith.constant 2 : index
    %c23_204 = arith.constant 23 : index
    %559 = memref.load %arg4[%c2_203, %c23_204] : memref<4x36xf32, #tpu.memory_space<smem>>
    %560 = vector.extract_strided_slice %508 {offsets = [2, 0], sizes = [1, 256], strides = [1, 1]} : vector<4x256xf32> to vector<1x256xf32>
    %561 = vector.broadcast %559 : f32 to vector<1x256xf32>
    %562 = arith.mulf %561, %560 : vector<1x256xf32>
    %563 = arith.addf %558, %562 : vector<1x256xf32>
    %c2_205 = arith.constant 2 : index
    %c32_206 = arith.constant 32 : index
    %564 = memref.load %arg4[%c2_205, %c32_206] : memref<4x36xf32, #tpu.memory_space<smem>>
    %565 = vector.extract_strided_slice %508 {offsets = [3, 0], sizes = [1, 256], strides = [1, 1]} : vector<4x256xf32> to vector<1x256xf32>
    %566 = vector.broadcast %564 : f32 to vector<1x256xf32>
    %567 = arith.mulf %566, %565 : vector<1x256xf32>
    %568 = arith.addf %563, %567 : vector<1x256xf32>
    %c3_207 = arith.constant 3 : index
    %c5_208 = arith.constant 5 : index
    %569 = memref.load %arg4[%c3_207, %c5_208] : memref<4x36xf32, #tpu.memory_space<smem>>
    %570 = vector.extract_strided_slice %508 {offsets = [0, 0], sizes = [1, 256], strides = [1, 1]} : vector<4x256xf32> to vector<1x256xf32>
    %571 = vector.broadcast %569 : f32 to vector<1x256xf32>
    %572 = arith.mulf %571, %570 : vector<1x256xf32>
    %573 = arith.addf %505, %572 : vector<1x256xf32>
    %c3_209 = arith.constant 3 : index
    %c14_210 = arith.constant 14 : index
    %574 = memref.load %arg4[%c3_209, %c14_210] : memref<4x36xf32, #tpu.memory_space<smem>>
    %575 = vector.extract_strided_slice %508 {offsets = [1, 0], sizes = [1, 256], strides = [1, 1]} : vector<4x256xf32> to vector<1x256xf32>
    %576 = vector.broadcast %574 : f32 to vector<1x256xf32>
    %577 = arith.mulf %576, %575 : vector<1x256xf32>
    %578 = arith.addf %573, %577 : vector<1x256xf32>
    %c3_211 = arith.constant 3 : index
    %c23_212 = arith.constant 23 : index
    %579 = memref.load %arg4[%c3_211, %c23_212] : memref<4x36xf32, #tpu.memory_space<smem>>
    %580 = vector.extract_strided_slice %508 {offsets = [2, 0], sizes = [1, 256], strides = [1, 1]} : vector<4x256xf32> to vector<1x256xf32>
    %581 = vector.broadcast %579 : f32 to vector<1x256xf32>
    %582 = arith.mulf %581, %580 : vector<1x256xf32>
    %583 = arith.addf %578, %582 : vector<1x256xf32>
    %c3_213 = arith.constant 3 : index
    %c32_214 = arith.constant 32 : index
    %584 = memref.load %arg4[%c3_213, %c32_214] : memref<4x36xf32, #tpu.memory_space<smem>>
    %585 = vector.extract_strided_slice %508 {offsets = [3, 0], sizes = [1, 256], strides = [1, 1]} : vector<4x256xf32> to vector<1x256xf32>
    %586 = vector.broadcast %584 : f32 to vector<1x256xf32>
    %587 = arith.mulf %586, %585 : vector<1x256xf32>
    %588 = arith.addf %583, %587 : vector<1x256xf32>
    %589 = vector.extract_strided_slice %88 {offsets = [0, 32], sizes = [4, 256], strides = [1, 1]} : vector<4x290xf32> to vector<4x256xf32>
    %590 = vector.broadcast %89 : vector<1x256xf32> to vector<4x256xf32>
    %591 = arith.mulf %589, %590 : vector<4x256xf32>
    %c0_215 = arith.constant 0 : index
    %c6 = arith.constant 6 : index
    %592 = memref.load %arg4[%c0_215, %c6] : memref<4x36xf32, #tpu.memory_space<smem>>
    %593 = vector.extract_strided_slice %591 {offsets = [0, 0], sizes = [1, 256], strides = [1, 1]} : vector<4x256xf32> to vector<1x256xf32>
    %594 = vector.broadcast %592 : f32 to vector<1x256xf32>
    %595 = arith.mulf %594, %593 : vector<1x256xf32>
    %596 = arith.addf %528, %595 : vector<1x256xf32>
    %c0_216 = arith.constant 0 : index
    %c15 = arith.constant 15 : index
    %597 = memref.load %arg4[%c0_216, %c15] : memref<4x36xf32, #tpu.memory_space<smem>>
    %598 = vector.extract_strided_slice %591 {offsets = [1, 0], sizes = [1, 256], strides = [1, 1]} : vector<4x256xf32> to vector<1x256xf32>
    %599 = vector.broadcast %597 : f32 to vector<1x256xf32>
    %600 = arith.mulf %599, %598 : vector<1x256xf32>
    %601 = arith.addf %596, %600 : vector<1x256xf32>
    %c0_217 = arith.constant 0 : index
    %c24 = arith.constant 24 : index
    %602 = memref.load %arg4[%c0_217, %c24] : memref<4x36xf32, #tpu.memory_space<smem>>
    %603 = vector.extract_strided_slice %591 {offsets = [2, 0], sizes = [1, 256], strides = [1, 1]} : vector<4x256xf32> to vector<1x256xf32>
    %604 = vector.broadcast %602 : f32 to vector<1x256xf32>
    %605 = arith.mulf %604, %603 : vector<1x256xf32>
    %606 = arith.addf %601, %605 : vector<1x256xf32>
    %c0_218 = arith.constant 0 : index
    %c33 = arith.constant 33 : index
    %607 = memref.load %arg4[%c0_218, %c33] : memref<4x36xf32, #tpu.memory_space<smem>>
    %608 = vector.extract_strided_slice %591 {offsets = [3, 0], sizes = [1, 256], strides = [1, 1]} : vector<4x256xf32> to vector<1x256xf32>
    %609 = vector.broadcast %607 : f32 to vector<1x256xf32>
    %610 = arith.mulf %609, %608 : vector<1x256xf32>
    %611 = arith.addf %606, %610 : vector<1x256xf32>
    %c1_219 = arith.constant 1 : index
    %c6_220 = arith.constant 6 : index
    %612 = memref.load %arg4[%c1_219, %c6_220] : memref<4x36xf32, #tpu.memory_space<smem>>
    %613 = vector.extract_strided_slice %591 {offsets = [0, 0], sizes = [1, 256], strides = [1, 1]} : vector<4x256xf32> to vector<1x256xf32>
    %614 = vector.broadcast %612 : f32 to vector<1x256xf32>
    %615 = arith.mulf %614, %613 : vector<1x256xf32>
    %616 = arith.addf %548, %615 : vector<1x256xf32>
    %c1_221 = arith.constant 1 : index
    %c15_222 = arith.constant 15 : index
    %617 = memref.load %arg4[%c1_221, %c15_222] : memref<4x36xf32, #tpu.memory_space<smem>>
    %618 = vector.extract_strided_slice %591 {offsets = [1, 0], sizes = [1, 256], strides = [1, 1]} : vector<4x256xf32> to vector<1x256xf32>
    %619 = vector.broadcast %617 : f32 to vector<1x256xf32>
    %620 = arith.mulf %619, %618 : vector<1x256xf32>
    %621 = arith.addf %616, %620 : vector<1x256xf32>
    %c1_223 = arith.constant 1 : index
    %c24_224 = arith.constant 24 : index
    %622 = memref.load %arg4[%c1_223, %c24_224] : memref<4x36xf32, #tpu.memory_space<smem>>
    %623 = vector.extract_strided_slice %591 {offsets = [2, 0], sizes = [1, 256], strides = [1, 1]} : vector<4x256xf32> to vector<1x256xf32>
    %624 = vector.broadcast %622 : f32 to vector<1x256xf32>
    %625 = arith.mulf %624, %623 : vector<1x256xf32>
    %626 = arith.addf %621, %625 : vector<1x256xf32>
    %c1_225 = arith.constant 1 : index
    %c33_226 = arith.constant 33 : index
    %627 = memref.load %arg4[%c1_225, %c33_226] : memref<4x36xf32, #tpu.memory_space<smem>>
    %628 = vector.extract_strided_slice %591 {offsets = [3, 0], sizes = [1, 256], strides = [1, 1]} : vector<4x256xf32> to vector<1x256xf32>
    %629 = vector.broadcast %627 : f32 to vector<1x256xf32>
    %630 = arith.mulf %629, %628 : vector<1x256xf32>
    %631 = arith.addf %626, %630 : vector<1x256xf32>
    %c2_227 = arith.constant 2 : index
    %c6_228 = arith.constant 6 : index
    %632 = memref.load %arg4[%c2_227, %c6_228] : memref<4x36xf32, #tpu.memory_space<smem>>
    %633 = vector.extract_strided_slice %591 {offsets = [0, 0], sizes = [1, 256], strides = [1, 1]} : vector<4x256xf32> to vector<1x256xf32>
    %634 = vector.broadcast %632 : f32 to vector<1x256xf32>
    %635 = arith.mulf %634, %633 : vector<1x256xf32>
    %636 = arith.addf %568, %635 : vector<1x256xf32>
    %c2_229 = arith.constant 2 : index
    %c15_230 = arith.constant 15 : index
    %637 = memref.load %arg4[%c2_229, %c15_230] : memref<4x36xf32, #tpu.memory_space<smem>>
    %638 = vector.extract_strided_slice %591 {offsets = [1, 0], sizes = [1, 256], strides = [1, 1]} : vector<4x256xf32> to vector<1x256xf32>
    %639 = vector.broadcast %637 : f32 to vector<1x256xf32>
    %640 = arith.mulf %639, %638 : vector<1x256xf32>
    %641 = arith.addf %636, %640 : vector<1x256xf32>
    %c2_231 = arith.constant 2 : index
    %c24_232 = arith.constant 24 : index
    %642 = memref.load %arg4[%c2_231, %c24_232] : memref<4x36xf32, #tpu.memory_space<smem>>
    %643 = vector.extract_strided_slice %591 {offsets = [2, 0], sizes = [1, 256], strides = [1, 1]} : vector<4x256xf32> to vector<1x256xf32>
    %644 = vector.broadcast %642 : f32 to vector<1x256xf32>
    %645 = arith.mulf %644, %643 : vector<1x256xf32>
    %646 = arith.addf %641, %645 : vector<1x256xf32>
    %c2_233 = arith.constant 2 : index
    %c33_234 = arith.constant 33 : index
    %647 = memref.load %arg4[%c2_233, %c33_234] : memref<4x36xf32, #tpu.memory_space<smem>>
    %648 = vector.extract_strided_slice %591 {offsets = [3, 0], sizes = [1, 256], strides = [1, 1]} : vector<4x256xf32> to vector<1x256xf32>
    %649 = vector.broadcast %647 : f32 to vector<1x256xf32>
    %650 = arith.mulf %649, %648 : vector<1x256xf32>
    %651 = arith.addf %646, %650 : vector<1x256xf32>
    %c3_235 = arith.constant 3 : index
    %c6_236 = arith.constant 6 : index
    %652 = memref.load %arg4[%c3_235, %c6_236] : memref<4x36xf32, #tpu.memory_space<smem>>
    %653 = vector.extract_strided_slice %591 {offsets = [0, 0], sizes = [1, 256], strides = [1, 1]} : vector<4x256xf32> to vector<1x256xf32>
    %654 = vector.broadcast %652 : f32 to vector<1x256xf32>
    %655 = arith.mulf %654, %653 : vector<1x256xf32>
    %656 = arith.addf %588, %655 : vector<1x256xf32>
    %c3_237 = arith.constant 3 : index
    %c15_238 = arith.constant 15 : index
    %657 = memref.load %arg4[%c3_237, %c15_238] : memref<4x36xf32, #tpu.memory_space<smem>>
    %658 = vector.extract_strided_slice %591 {offsets = [1, 0], sizes = [1, 256], strides = [1, 1]} : vector<4x256xf32> to vector<1x256xf32>
    %659 = vector.broadcast %657 : f32 to vector<1x256xf32>
    %660 = arith.mulf %659, %658 : vector<1x256xf32>
    %661 = arith.addf %656, %660 : vector<1x256xf32>
    %c3_239 = arith.constant 3 : index
    %c24_240 = arith.constant 24 : index
    %662 = memref.load %arg4[%c3_239, %c24_240] : memref<4x36xf32, #tpu.memory_space<smem>>
    %663 = vector.extract_strided_slice %591 {offsets = [2, 0], sizes = [1, 256], strides = [1, 1]} : vector<4x256xf32> to vector<1x256xf32>
    %664 = vector.broadcast %662 : f32 to vector<1x256xf32>
    %665 = arith.mulf %664, %663 : vector<1x256xf32>
    %666 = arith.addf %661, %665 : vector<1x256xf32>
    %c3_241 = arith.constant 3 : index
    %c33_242 = arith.constant 33 : index
    %667 = memref.load %arg4[%c3_241, %c33_242] : memref<4x36xf32, #tpu.memory_space<smem>>
    %668 = vector.extract_strided_slice %591 {offsets = [3, 0], sizes = [1, 256], strides = [1, 1]} : vector<4x256xf32> to vector<1x256xf32>
    %669 = vector.broadcast %667 : f32 to vector<1x256xf32>
    %670 = arith.mulf %669, %668 : vector<1x256xf32>
    %671 = arith.addf %666, %670 : vector<1x256xf32>
    %672 = vector.extract_strided_slice %88 {offsets = [0, 33], sizes = [4, 256], strides = [1, 1]} : vector<4x290xf32> to vector<4x256xf32>
    %c0_243 = arith.constant 0 : index
    %c7 = arith.constant 7 : index
    %673 = memref.load %arg4[%c0_243, %c7] : memref<4x36xf32, #tpu.memory_space<smem>>
    %674 = vector.extract_strided_slice %672 {offsets = [0, 0], sizes = [1, 256], strides = [1, 1]} : vector<4x256xf32> to vector<1x256xf32>
    %675 = vector.broadcast %673 : f32 to vector<1x256xf32>
    %676 = arith.mulf %675, %674 : vector<1x256xf32>
    %677 = arith.addf %611, %676 : vector<1x256xf32>
    %c0_244 = arith.constant 0 : index
    %c16 = arith.constant 16 : index
    %678 = memref.load %arg4[%c0_244, %c16] : memref<4x36xf32, #tpu.memory_space<smem>>
    %679 = vector.extract_strided_slice %672 {offsets = [1, 0], sizes = [1, 256], strides = [1, 1]} : vector<4x256xf32> to vector<1x256xf32>
    %680 = vector.broadcast %678 : f32 to vector<1x256xf32>
    %681 = arith.mulf %680, %679 : vector<1x256xf32>
    %682 = arith.addf %677, %681 : vector<1x256xf32>
    %c0_245 = arith.constant 0 : index
    %c25 = arith.constant 25 : index
    %683 = memref.load %arg4[%c0_245, %c25] : memref<4x36xf32, #tpu.memory_space<smem>>
    %684 = vector.extract_strided_slice %672 {offsets = [2, 0], sizes = [1, 256], strides = [1, 1]} : vector<4x256xf32> to vector<1x256xf32>
    %685 = vector.broadcast %683 : f32 to vector<1x256xf32>
    %686 = arith.mulf %685, %684 : vector<1x256xf32>
    %687 = arith.addf %682, %686 : vector<1x256xf32>
    %c0_246 = arith.constant 0 : index
    %c34 = arith.constant 34 : index
    %688 = memref.load %arg4[%c0_246, %c34] : memref<4x36xf32, #tpu.memory_space<smem>>
    %689 = vector.extract_strided_slice %672 {offsets = [3, 0], sizes = [1, 256], strides = [1, 1]} : vector<4x256xf32> to vector<1x256xf32>
    %690 = vector.broadcast %688 : f32 to vector<1x256xf32>
    %691 = arith.mulf %690, %689 : vector<1x256xf32>
    %692 = arith.addf %687, %691 : vector<1x256xf32>
    %c1_247 = arith.constant 1 : index
    %c7_248 = arith.constant 7 : index
    %693 = memref.load %arg4[%c1_247, %c7_248] : memref<4x36xf32, #tpu.memory_space<smem>>
    %694 = vector.extract_strided_slice %672 {offsets = [0, 0], sizes = [1, 256], strides = [1, 1]} : vector<4x256xf32> to vector<1x256xf32>
    %695 = vector.broadcast %693 : f32 to vector<1x256xf32>
    %696 = arith.mulf %695, %694 : vector<1x256xf32>
    %697 = arith.addf %631, %696 : vector<1x256xf32>
    %c1_249 = arith.constant 1 : index
    %c16_250 = arith.constant 16 : index
    %698 = memref.load %arg4[%c1_249, %c16_250] : memref<4x36xf32, #tpu.memory_space<smem>>
    %699 = vector.extract_strided_slice %672 {offsets = [1, 0], sizes = [1, 256], strides = [1, 1]} : vector<4x256xf32> to vector<1x256xf32>
    %700 = vector.broadcast %698 : f32 to vector<1x256xf32>
    %701 = arith.mulf %700, %699 : vector<1x256xf32>
    %702 = arith.addf %697, %701 : vector<1x256xf32>
    %c1_251 = arith.constant 1 : index
    %c25_252 = arith.constant 25 : index
    %703 = memref.load %arg4[%c1_251, %c25_252] : memref<4x36xf32, #tpu.memory_space<smem>>
    %704 = vector.extract_strided_slice %672 {offsets = [2, 0], sizes = [1, 256], strides = [1, 1]} : vector<4x256xf32> to vector<1x256xf32>
    %705 = vector.broadcast %703 : f32 to vector<1x256xf32>
    %706 = arith.mulf %705, %704 : vector<1x256xf32>
    %707 = arith.addf %702, %706 : vector<1x256xf32>
    %c1_253 = arith.constant 1 : index
    %c34_254 = arith.constant 34 : index
    %708 = memref.load %arg4[%c1_253, %c34_254] : memref<4x36xf32, #tpu.memory_space<smem>>
    %709 = vector.extract_strided_slice %672 {offsets = [3, 0], sizes = [1, 256], strides = [1, 1]} : vector<4x256xf32> to vector<1x256xf32>
    %710 = vector.broadcast %708 : f32 to vector<1x256xf32>
    %711 = arith.mulf %710, %709 : vector<1x256xf32>
    %712 = arith.addf %707, %711 : vector<1x256xf32>
    %c2_255 = arith.constant 2 : index
    %c7_256 = arith.constant 7 : index
    %713 = memref.load %arg4[%c2_255, %c7_256] : memref<4x36xf32, #tpu.memory_space<smem>>
    %714 = vector.extract_strided_slice %672 {offsets = [0, 0], sizes = [1, 256], strides = [1, 1]} : vector<4x256xf32> to vector<1x256xf32>
    %715 = vector.broadcast %713 : f32 to vector<1x256xf32>
    %716 = arith.mulf %715, %714 : vector<1x256xf32>
    %717 = arith.addf %651, %716 : vector<1x256xf32>
    %c2_257 = arith.constant 2 : index
    %c16_258 = arith.constant 16 : index
    %718 = memref.load %arg4[%c2_257, %c16_258] : memref<4x36xf32, #tpu.memory_space<smem>>
    %719 = vector.extract_strided_slice %672 {offsets = [1, 0], sizes = [1, 256], strides = [1, 1]} : vector<4x256xf32> to vector<1x256xf32>
    %720 = vector.broadcast %718 : f32 to vector<1x256xf32>
    %721 = arith.mulf %720, %719 : vector<1x256xf32>
    %722 = arith.addf %717, %721 : vector<1x256xf32>
    %c2_259 = arith.constant 2 : index
    %c25_260 = arith.constant 25 : index
    %723 = memref.load %arg4[%c2_259, %c25_260] : memref<4x36xf32, #tpu.memory_space<smem>>
    %724 = vector.extract_strided_slice %672 {offsets = [2, 0], sizes = [1, 256], strides = [1, 1]} : vector<4x256xf32> to vector<1x256xf32>
    %725 = vector.broadcast %723 : f32 to vector<1x256xf32>
    %726 = arith.mulf %725, %724 : vector<1x256xf32>
    %727 = arith.addf %722, %726 : vector<1x256xf32>
    %c2_261 = arith.constant 2 : index
    %c34_262 = arith.constant 34 : index
    %728 = memref.load %arg4[%c2_261, %c34_262] : memref<4x36xf32, #tpu.memory_space<smem>>
    %729 = vector.extract_strided_slice %672 {offsets = [3, 0], sizes = [1, 256], strides = [1, 1]} : vector<4x256xf32> to vector<1x256xf32>
    %730 = vector.broadcast %728 : f32 to vector<1x256xf32>
    %731 = arith.mulf %730, %729 : vector<1x256xf32>
    %732 = arith.addf %727, %731 : vector<1x256xf32>
    %c3_263 = arith.constant 3 : index
    %c7_264 = arith.constant 7 : index
    %733 = memref.load %arg4[%c3_263, %c7_264] : memref<4x36xf32, #tpu.memory_space<smem>>
    %734 = vector.extract_strided_slice %672 {offsets = [0, 0], sizes = [1, 256], strides = [1, 1]} : vector<4x256xf32> to vector<1x256xf32>
    %735 = vector.broadcast %733 : f32 to vector<1x256xf32>
    %736 = arith.mulf %735, %734 : vector<1x256xf32>
    %737 = arith.addf %671, %736 : vector<1x256xf32>
    %c3_265 = arith.constant 3 : index
    %c16_266 = arith.constant 16 : index
    %738 = memref.load %arg4[%c3_265, %c16_266] : memref<4x36xf32, #tpu.memory_space<smem>>
    %739 = vector.extract_strided_slice %672 {offsets = [1, 0], sizes = [1, 256], strides = [1, 1]} : vector<4x256xf32> to vector<1x256xf32>
    %740 = vector.broadcast %738 : f32 to vector<1x256xf32>
    %741 = arith.mulf %740, %739 : vector<1x256xf32>
    %742 = arith.addf %737, %741 : vector<1x256xf32>
    %c3_267 = arith.constant 3 : index
    %c25_268 = arith.constant 25 : index
    %743 = memref.load %arg4[%c3_267, %c25_268] : memref<4x36xf32, #tpu.memory_space<smem>>
    %744 = vector.extract_strided_slice %672 {offsets = [2, 0], sizes = [1, 256], strides = [1, 1]} : vector<4x256xf32> to vector<1x256xf32>
    %745 = vector.broadcast %743 : f32 to vector<1x256xf32>
    %746 = arith.mulf %745, %744 : vector<1x256xf32>
    %747 = arith.addf %742, %746 : vector<1x256xf32>
    %c3_269 = arith.constant 3 : index
    %c34_270 = arith.constant 34 : index
    %748 = memref.load %arg4[%c3_269, %c34_270] : memref<4x36xf32, #tpu.memory_space<smem>>
    %749 = vector.extract_strided_slice %672 {offsets = [3, 0], sizes = [1, 256], strides = [1, 1]} : vector<4x256xf32> to vector<1x256xf32>
    %750 = vector.broadcast %748 : f32 to vector<1x256xf32>
    %751 = arith.mulf %750, %749 : vector<1x256xf32>
    %752 = arith.addf %747, %751 : vector<1x256xf32>
    %753 = vector.extract_strided_slice %88 {offsets = [0, 34], sizes = [4, 256], strides = [1, 1]} : vector<4x290xf32> to vector<4x256xf32>
    %754 = vector.broadcast %90 : vector<1x256xf32> to vector<4x256xf32>
    %755 = arith.mulf %753, %754 : vector<4x256xf32>
    %c0_271 = arith.constant 0 : index
    %c8 = arith.constant 8 : index
    %756 = memref.load %arg4[%c0_271, %c8] : memref<4x36xf32, #tpu.memory_space<smem>>
    %757 = vector.extract_strided_slice %755 {offsets = [0, 0], sizes = [1, 256], strides = [1, 1]} : vector<4x256xf32> to vector<1x256xf32>
    %758 = vector.broadcast %756 : f32 to vector<1x256xf32>
    %759 = arith.mulf %758, %757 : vector<1x256xf32>
    %760 = arith.addf %692, %759 : vector<1x256xf32>
    %c0_272 = arith.constant 0 : index
    %c17 = arith.constant 17 : index
    %761 = memref.load %arg4[%c0_272, %c17] : memref<4x36xf32, #tpu.memory_space<smem>>
    %762 = vector.extract_strided_slice %755 {offsets = [1, 0], sizes = [1, 256], strides = [1, 1]} : vector<4x256xf32> to vector<1x256xf32>
    %763 = vector.broadcast %761 : f32 to vector<1x256xf32>
    %764 = arith.mulf %763, %762 : vector<1x256xf32>
    %765 = arith.addf %760, %764 : vector<1x256xf32>
    %c0_273 = arith.constant 0 : index
    %c26 = arith.constant 26 : index
    %766 = memref.load %arg4[%c0_273, %c26] : memref<4x36xf32, #tpu.memory_space<smem>>
    %767 = vector.extract_strided_slice %755 {offsets = [2, 0], sizes = [1, 256], strides = [1, 1]} : vector<4x256xf32> to vector<1x256xf32>
    %768 = vector.broadcast %766 : f32 to vector<1x256xf32>
    %769 = arith.mulf %768, %767 : vector<1x256xf32>
    %770 = arith.addf %765, %769 : vector<1x256xf32>
    %c0_274 = arith.constant 0 : index
    %c35 = arith.constant 35 : index
    %771 = memref.load %arg4[%c0_274, %c35] : memref<4x36xf32, #tpu.memory_space<smem>>
    %772 = vector.extract_strided_slice %755 {offsets = [3, 0], sizes = [1, 256], strides = [1, 1]} : vector<4x256xf32> to vector<1x256xf32>
    %773 = vector.broadcast %771 : f32 to vector<1x256xf32>
    %774 = arith.mulf %773, %772 : vector<1x256xf32>
    %775 = arith.addf %770, %774 : vector<1x256xf32>
    %c1_275 = arith.constant 1 : index
    %c8_276 = arith.constant 8 : index
    %776 = memref.load %arg4[%c1_275, %c8_276] : memref<4x36xf32, #tpu.memory_space<smem>>
    %777 = vector.extract_strided_slice %755 {offsets = [0, 0], sizes = [1, 256], strides = [1, 1]} : vector<4x256xf32> to vector<1x256xf32>
    %778 = vector.broadcast %776 : f32 to vector<1x256xf32>
    %779 = arith.mulf %778, %777 : vector<1x256xf32>
    %780 = arith.addf %712, %779 : vector<1x256xf32>
    %c1_277 = arith.constant 1 : index
    %c17_278 = arith.constant 17 : index
    %781 = memref.load %arg4[%c1_277, %c17_278] : memref<4x36xf32, #tpu.memory_space<smem>>
    %782 = vector.extract_strided_slice %755 {offsets = [1, 0], sizes = [1, 256], strides = [1, 1]} : vector<4x256xf32> to vector<1x256xf32>
    %783 = vector.broadcast %781 : f32 to vector<1x256xf32>
    %784 = arith.mulf %783, %782 : vector<1x256xf32>
    %785 = arith.addf %780, %784 : vector<1x256xf32>
    %c1_279 = arith.constant 1 : index
    %c26_280 = arith.constant 26 : index
    %786 = memref.load %arg4[%c1_279, %c26_280] : memref<4x36xf32, #tpu.memory_space<smem>>
    %787 = vector.extract_strided_slice %755 {offsets = [2, 0], sizes = [1, 256], strides = [1, 1]} : vector<4x256xf32> to vector<1x256xf32>
    %788 = vector.broadcast %786 : f32 to vector<1x256xf32>
    %789 = arith.mulf %788, %787 : vector<1x256xf32>
    %790 = arith.addf %785, %789 : vector<1x256xf32>
    %c1_281 = arith.constant 1 : index
    %c35_282 = arith.constant 35 : index
    %791 = memref.load %arg4[%c1_281, %c35_282] : memref<4x36xf32, #tpu.memory_space<smem>>
    %792 = vector.extract_strided_slice %755 {offsets = [3, 0], sizes = [1, 256], strides = [1, 1]} : vector<4x256xf32> to vector<1x256xf32>
    %793 = vector.broadcast %791 : f32 to vector<1x256xf32>
    %794 = arith.mulf %793, %792 : vector<1x256xf32>
    %795 = arith.addf %790, %794 : vector<1x256xf32>
    %c2_283 = arith.constant 2 : index
    %c8_284 = arith.constant 8 : index
    %796 = memref.load %arg4[%c2_283, %c8_284] : memref<4x36xf32, #tpu.memory_space<smem>>
    %797 = vector.extract_strided_slice %755 {offsets = [0, 0], sizes = [1, 256], strides = [1, 1]} : vector<4x256xf32> to vector<1x256xf32>
    %798 = vector.broadcast %796 : f32 to vector<1x256xf32>
    %799 = arith.mulf %798, %797 : vector<1x256xf32>
    %800 = arith.addf %732, %799 : vector<1x256xf32>
    %c2_285 = arith.constant 2 : index
    %c17_286 = arith.constant 17 : index
    %801 = memref.load %arg4[%c2_285, %c17_286] : memref<4x36xf32, #tpu.memory_space<smem>>
    %802 = vector.extract_strided_slice %755 {offsets = [1, 0], sizes = [1, 256], strides = [1, 1]} : vector<4x256xf32> to vector<1x256xf32>
    %803 = vector.broadcast %801 : f32 to vector<1x256xf32>
    %804 = arith.mulf %803, %802 : vector<1x256xf32>
    %805 = arith.addf %800, %804 : vector<1x256xf32>
    %c2_287 = arith.constant 2 : index
    %c26_288 = arith.constant 26 : index
    %806 = memref.load %arg4[%c2_287, %c26_288] : memref<4x36xf32, #tpu.memory_space<smem>>
    %807 = vector.extract_strided_slice %755 {offsets = [2, 0], sizes = [1, 256], strides = [1, 1]} : vector<4x256xf32> to vector<1x256xf32>
    %808 = vector.broadcast %806 : f32 to vector<1x256xf32>
    %809 = arith.mulf %808, %807 : vector<1x256xf32>
    %810 = arith.addf %805, %809 : vector<1x256xf32>
    %c2_289 = arith.constant 2 : index
    %c35_290 = arith.constant 35 : index
    %811 = memref.load %arg4[%c2_289, %c35_290] : memref<4x36xf32, #tpu.memory_space<smem>>
    %812 = vector.extract_strided_slice %755 {offsets = [3, 0], sizes = [1, 256], strides = [1, 1]} : vector<4x256xf32> to vector<1x256xf32>
    %813 = vector.broadcast %811 : f32 to vector<1x256xf32>
    %814 = arith.mulf %813, %812 : vector<1x256xf32>
    %815 = arith.addf %810, %814 : vector<1x256xf32>
    %c3_291 = arith.constant 3 : index
    %c8_292 = arith.constant 8 : index
    %816 = memref.load %arg4[%c3_291, %c8_292] : memref<4x36xf32, #tpu.memory_space<smem>>
    %817 = vector.extract_strided_slice %755 {offsets = [0, 0], sizes = [1, 256], strides = [1, 1]} : vector<4x256xf32> to vector<1x256xf32>
    %818 = vector.broadcast %816 : f32 to vector<1x256xf32>
    %819 = arith.mulf %818, %817 : vector<1x256xf32>
    %820 = arith.addf %752, %819 : vector<1x256xf32>
    %c3_293 = arith.constant 3 : index
    %c17_294 = arith.constant 17 : index
    %821 = memref.load %arg4[%c3_293, %c17_294] : memref<4x36xf32, #tpu.memory_space<smem>>
    %822 = vector.extract_strided_slice %755 {offsets = [1, 0], sizes = [1, 256], strides = [1, 1]} : vector<4x256xf32> to vector<1x256xf32>
    %823 = vector.broadcast %821 : f32 to vector<1x256xf32>
    %824 = arith.mulf %823, %822 : vector<1x256xf32>
    %825 = arith.addf %820, %824 : vector<1x256xf32>
    %c3_295 = arith.constant 3 : index
    %c26_296 = arith.constant 26 : index
    %826 = memref.load %arg4[%c3_295, %c26_296] : memref<4x36xf32, #tpu.memory_space<smem>>
    %827 = vector.extract_strided_slice %755 {offsets = [2, 0], sizes = [1, 256], strides = [1, 1]} : vector<4x256xf32> to vector<1x256xf32>
    %828 = vector.broadcast %826 : f32 to vector<1x256xf32>
    %829 = arith.mulf %828, %827 : vector<1x256xf32>
    %830 = arith.addf %825, %829 : vector<1x256xf32>
    %c3_297 = arith.constant 3 : index
    %c35_298 = arith.constant 35 : index
    %831 = memref.load %arg4[%c3_297, %c35_298] : memref<4x36xf32, #tpu.memory_space<smem>>
    %832 = vector.extract_strided_slice %755 {offsets = [3, 0], sizes = [1, 256], strides = [1, 1]} : vector<4x256xf32> to vector<1x256xf32>
    %833 = vector.broadcast %831 : f32 to vector<1x256xf32>
    %834 = arith.mulf %833, %832 : vector<1x256xf32>
    %835 = arith.addf %830, %834 : vector<1x256xf32>
    %cst_299 = arith.constant 0.000000e+00 : f32
    %836 = vector.broadcast %cst_299 : f32 to vector<1x256xf32>
    %837 = arith.maximumf %775, %836 : vector<1x256xf32>
    %cst_300 = arith.constant 0.000000e+00 : f32
    %838 = vector.broadcast %cst_300 : f32 to vector<1x256xf32>
    %839 = arith.maximumf %795, %838 : vector<1x256xf32>
    %cst_301 = arith.constant 0.000000e+00 : f32
    %840 = vector.broadcast %cst_301 : f32 to vector<1x256xf32>
    %841 = arith.maximumf %815, %840 : vector<1x256xf32>
    %cst_302 = arith.constant 0.000000e+00 : f32
    %842 = vector.broadcast %cst_302 : f32 to vector<1x256xf32>
    %843 = arith.maximumf %835, %842 : vector<1x256xf32>
    %844 = tpu.concatenate %22, %43, %64, %85, %837, %839, %841, %843 in 0 : vector<1x256xf32>, vector<1x256xf32>, vector<1x256xf32>, vector<1x256xf32>, vector<1x256xf32>, vector<1x256xf32>, vector<1x256xf32>, vector<1x256xf32> -> vector<8x256xf32>
    %845 = vector.shape_cast %844 : vector<8x256xf32> to vector<1x8x256xf32>
    %c0_303 = arith.constant 0 : index
    %c0_304 = arith.constant 0 : index
    %c0_305 = arith.constant 0 : index
    %846 = vector.load %arg5[%c0_303, %c0_304, %c0_305] : memref<1x8x256xf32, #tpu.memory_space<vmem>>, vector<1x8x256xf32>
    tpu.vector_store %arg5[%c0_303, %c0_304, %c0_305], %845 {strides = array<i32>} : memref<1x8x256xf32, #tpu.memory_space<vmem>>, vector<1x8x256xf32>,
    return
  }
  func.func @transform_0(%arg0: i32) -> (i32, i32, i32) {
    %c0_i32 = arith.constant 0 : i32
    %c0_i32_0 = arith.constant 0 : i32
    %c0_i32_1 = arith.constant 0 : i32
    return %arg0, %c0_i32, %c0_i32_0 : i32, i32, i32
  }
  func.func @transform_1(%arg0: i32) -> (i32, i32) {
    %c0_i32 = arith.constant 0 : i32
    %c0_i32_0 = arith.constant 0 : i32
    %c0_i32_1 = arith.constant 0 : i32
    return %c0_i32, %c0_i32_0 : i32, i32
  }
  func.func @transform_2(%arg0: i32) -> (i32, i32) {
    %c0_i32 = arith.constant 0 : i32
    %c0_i32_0 = arith.constant 0 : i32
    %c0_i32_1 = arith.constant 0 : i32
    return %c0_i32, %c0_i32_0 : i32, i32
  }
  func.func @transform_3(%arg0: i32) -> (i32, i32) {
    %c0_i32 = arith.constant 0 : i32
    %c0_i32_0 = arith.constant 0 : i32
    %c0_i32_1 = arith.constant 0 : i32
    return %c0_i32, %c0_i32_0 : i32, i32
  }
  func.func @transform_4(%arg0: i32) -> (i32, i32, i32) {
    %c0_i32 = arith.constant 0 : i32
    %c0_i32_0 = arith.constant 0 : i32
    %c0_i32_1 = arith.constant 0 : i32
    return %arg0, %c0_i32, %c0_i32_0 : i32, i32, i32
  }
}

</mosaic_0001>

<bundles_post_ra>
// kernel: tpu_custom_call.1
= control target key start
LH: loop header
LB: loop body
LE: loop exit
PB: predicated region body
PF: predicated region fallthrough
CT: control target
= control target key end

     0   :  { %s6830_s0 = inlined_call_operand.hbm [shape: f32[2,4,256], index: 0, kind: input, shape index: {}]   ;;  %s6831_s1 = inlined_call_operand.hbm [shape: f32[2,256], index: 1, kind: input, shape index: {}]   ;;  %s6832_s2 = inlined_call_operand.hbm [shape: f32[4,4], index: 2, kind: input, shape index: {}]   ;;  %s6833_s3 = inlined_call_operand.vmem [shape: f32[4,36], index: 3, kind: input, shape index: {}]   ;;  %s6834_s4 = inlined_call_operand.hbm [shape: f32[2,8,256], index: 4, kind: output, shape index: {}]  }
   0x1   :  { %6925 = sst [smem:[#allocation268_spill]] %s6830_s0 }
   0x2   :  { %6926 = sst [smem:[#allocation269_spill]] %s6831_s1 }
   0x3   :  { %6927 = sst [smem:[#allocation270_spill]] %s6832_s2 }
   0x4   :  { %6928 = sst [smem:[#allocation271_spill]] %s6833_s3 }
   0x5   :  { %9 = vsyncpa [#allocation3], 0 }
   0x6   :  { %11 = vsyncpa [#allocation3 + $0x1], 0 }
   0x7   :  { %12 = vsyncpa [#allocation8], 0 }
   0x8   :  { %13 = vsyncpa [#allocation5], 0 }
   0x9   :  { %14 = vsyncpa [#allocation6], 0 }
   0xa   :  { %15 = vsyncpa [#allocation4], 0 }
   0xb   :  { %17 = vsyncpa [#allocation4 + $0x1], 0  ;;  %s4190_s15 = smov 0   ;;  %s4192_s16 = smov 0  }
   0xc   :  { %s4194_s17 = smov 0   ;;  %s4196_s18 = smov 0  }
   0xd LB: > { %6929 = sst [smem:[#allocation17_spill]] %s4136_s16  ;;  %s4211_s19 = sadd.s32 4294967295, %s4144_s18   ;;  %s4144_s18 = sphi %s4196_s18, %s7477_s18   ;;  %s4140_s17 = sphi %s4194_s17, %s7476_s17   ;;  %s4136_s16 = sphi %s4192_s16, %s7475_s16   ;;  %s4132_s15 = sphi %s4190_s15, %s7474_s15  }
   0xe   : > { %6930 = sst [smem:[#allocation18_spill]] %s4140_s17  ;;  %s3705_s20 = sadd.s32 4294967294, %s4144_s18  }
   0xf   : > { %p43_p0 = scmp.ne.s32.totalorder %s4136_s16, %s4132_s15  ;;  %p6835_p1 = scmp.eq.s32.totalorder %s4211_s19, 0 }
  0x10   : > { %p130_p2 = scmp.eq.s32.totalorder %s4211_s19, 1  ;;  %p136_p3 = scmp.eq.s32.totalorder %s3705_s20, 1 }
  0x11   : > { %p4220_p4 = por %p6835_p1, %p43_p0  ;;  %p3706_p5 = scmp.ge.s32.totalorder %s4144_s18, 1 }
  0x12   : > { %p4225_p6 = por %p136_p3, %p43_p0  ;;  %p143_p7 = scmp.lt.s32.totalorder %s4144_s18, 3 }
  0x13   : > { %s6931_s21 = scalar_select %p4220_p4, 1, 0 }
  0x14   : > { %s6932_s22 = scalar_select %p4225_p6, 1, 0 }
  0x15   : > { %p4230_p8 = pnand %p3706_p5, %p143_p7  ;;  %s4146_s24 = smov [#allocation7]  }
  0x16   : > { %s156_s25 = sshll.u32 %s4146_s24, 4  ;;  %s6934_s3 = sld [smem:[#allocation271_spill]]  ;;  %s157_s25 = int_to_ptr.vmem [resolvable:$true] %s156_s25 }
  0x17   : > { %s6933_s23 = scalar_select %p4230_p8, 1, 0 }
  0x18   : > { %p3913_p10 = pneg %p4230_p8  ;;  %s4247_s30 = sadd.s32 1, %s4144_s18  }
  0x19   : > { %s3999_s5 = scalar_lea.vmem %s157_s25, 64  ;;  %p4007_p5 = scmp.lt.s32.totalorder %s157_s25, %s157_s25 }
  0x1a   : > { %p4242_p11 = pnand %p3913_p10, %p6835_p1  ;;  %p4000_p13 = scmp.ne.s32.totalorder %s157_s25, %s3999_s5 }
  0x1b   : > { %p4008_p7 = scmp.lt.s32.totalorder %s3999_s5, %s3999_s5 }
  0x1c   : > { %s176_s28 = sshll.u32 %s6934_s3, 4  ;;  %p3990_p12 = pneg %p4242_p11  ;;  %s177_s28 = int_to_ptr.vmem [resolvable:$true] %s176_s28 }
  0x1d   : > { %p4009_p9 = por %p4008_p7, %p4007_p5 }
  0x1e   : > { %p4002_p0 = pnand %p4000_p13, %p3990_p12 }
  0x20   : > { %p4003_p3 = pneg %p4002_p0 }
  0x22   : > { %p4010_p10 = pnand %p4009_p9, %p4003_p3 }
  0x24   : > { %4013 = shalt.err (!%p4010_p10)
}
  0x25   : > { %s6936_s1 = sld [smem:[#allocation269_spill]]  ;;  %s4147_s8 = smov [#allocation9]  }
  0x26   : > { %s6937_s2 = sld [smem:[#allocation270_spill]]  ;;  %s4025_s11 = scalar_lea.vmem %s177_s28, 64 }
  0x27   : > { %p4026_p13 = scmp.ne.s32.totalorder %s177_s28, %s4025_s11  ;;  %p4033_p3 = scmp.lt.s32.totalorder %s177_s28, %s177_s28 }
  0x28   : > { %p4034_p5 = scmp.lt.s32.totalorder %s4025_s11, %s4025_s11 }
  0x29   : > { %p4028_p9 = pnand %p4026_p13, %p3990_p12 }
  0x2a   : > { %p4035_p7 = por %p4034_p5, %p4033_p3 }
  0x2b   : > { %3916 = dma.hbm_to_vmem [thread:$0]  (!%p4242_p11), %s6936_s1, 64, %s157_s25, [#allocation8]  }
  0x2c   : > { %3919 = dma.hbm_to_smem (!%p4242_p11), %s6937_s2, 64, %s4147_s8, [#allocation5]  }
  0x2d   : > { %p4029_p0 = pneg %p4028_p9 }
  0x2f   : > { %p4036_p10 = pnand %p4035_p7, %p4029_p0 }
  0x31   : > { %4039 = shalt.err (!%p4036_p10)
}
  0x32   : > { %s4148_s12 = smov [#allocation10]   ;;  %s27_s13 = ssub.s32 %s4144_s18, %s4247_s30 }
  0x33   : > { %3922 = dma.vmem_to_smem (!%p4242_p11), %s177_s28, 64, %s4148_s12, [#allocation6]  }
  0x34   : > { %s30_s14 = sadd.s32 1, %s4140_s17  ;;  %p28_p12 = scmp.eq.s32.totalorder %s27_s13, 0 }
  0x35   : > { %p37_p13 = scmp.ne.s32.totalorder %s4140_s17, %s4136_s16  ;;  %p38_p9 = scmp.eq.s32.totalorder %s4144_s18, 0 }
  0x36   : > { %p3934_p0 = scmp.lt.s32.totalorder %s4144_s18, 2  ;;  %s187_s25 = sand.u32 1, %s4140_s17  }
  0x37   : > { %s4277_s20 = scalar_select %p28_p12, %s4140_s17, %s30_s14  }
  0x38   : > { %p39_p3 = por %p38_p9, %p37_p13  ;;  %p4281_p5 = por %p130_p2, %p37_p13 }
  0x39   : > { %6938 = sst [smem:[#allocation19_spill]] %s4277_s20  ;;  %s3895_s26 = sshll.u32 %s4144_s18, 7 }
  0x3a   : > { %s6939_s24 = scalar_select %p4281_p5, 1, 0 }
  0x3b   : > { %s3711_s27 = sshll.u32 %s187_s25, 3  ;;  %s6940_s0 = sld [smem:[#allocation268_spill]] }
  0x3c   : > { %s191_s6 = scalar_lea.vmem [#allocation2], %s3711_s27  ;;  %p4292_p11 = pnand %p3934_p0, %p39_p3 }
  0x3d   : > { %s199_s7 = sshll.u32 %s191_s6, 4  ;;  %s188_s9 = scalar_lea.sflag [#allocation3], %s187_s25  ;;  %s200_s7 = int_to_ptr.vmem [resolvable:$true] %s199_s7 }
  0x3e   : > { %p4042_p7 = pneg %p4292_p11 }
  0x41   : > { %s4290_s28 = scalar_lea.hbm %s6940_s0, %s3895_s26  ;;  %s4045_s13 = scalar_lea.hbm %s6940_s0, 256 }
  0x42   : > { %s4040_s10 = scalar_lea.hbm %s4290_s28, 128  ;;  %p4046_p13 = scmp.lt.s32.totalorder %s4290_s28, %s6940_s0 }
  0x43   : > { %p4041_p2 = scmp.ne.s32.totalorder %s4290_s28, %s4040_s10  ;;  %p4047_p9 = scmp.lt.s32.totalorder %s4045_s13, %s4040_s10 }
  0x45   : > { %p4043_p10 = pnand %p4042_p7, %p4041_p2  ;;  %p4048_p0 = por %p4047_p9, %p4046_p13 }
  0x47   : > { %p4044_p12 = pneg %p4043_p10 }
  0x49   : > { %p4049_p3 = pnand %p4048_p0, %p4044_p12 }
  0x4b   : > { %4052 = shalt.err (!%p4049_p3)
}
  0x4c   : > { %s4053_s27 = scalar_lea.vmem %s200_s7, 128  ;;  %s4149_s25 = smov [#allocation2]  }
  0x4d   : > { %p4054_p1 = scmp.ne.s32.totalorder %s200_s7, %s4053_s27  ;;  %s4058_s29 = sshll.u32 %s4149_s25, 4  ;;  %s4059_s29 = int_to_ptr.vmem [resolvable:$false] %s4058_s29 }
  0x4e   : > { %s4060_s5 = scalar_lea.vmem %s4059_s29, 256  ;;  %p4061_p2 = scmp.lt.s32.totalorder %s200_s7, %s4059_s29 }
  0x4f   : > { %p4056_p6 = pnand %p4054_p1, %p4042_p7  ;;  %p4062_p10 = scmp.lt.s32.totalorder %s4060_s5, %s4053_s27 }
  0x51   : > { %p4057_p5 = pneg %p4056_p6  ;;  %p4063_p4 = por %p4062_p10, %p4061_p2 }
  0x53   : > { %p4064_p8 = pnand %p4063_p4, %p4057_p5 }
  0x55   : > { %4067 = shalt.err (!%p4064_p8)
}
  0x56   : > { %3926 = dma.hbm_to_vmem [thread:$0]  (!%p4292_p11), %s4290_s28, 128, %s200_s7, %s188_s9  }
  0x57   : > { %p6942_p12 = scmp.ne.s32.totalorder %s6933_s23, 0 }
  0x59   : > { %208 = sbr.rel (%p6942_p12) target bundleno = 1608 (0x648), region = 36 }
  0x5e   : > { %s4313_s6 = sand.u32 1, %s4136_s16   ;;  %p6943_p1 = scmp.ne.s32.totalorder %s6931_s21, 0 }
  0x5f   : > { %s3715_s10 = sshll.u32 %s4313_s6, 3  ;;  %s211_s11 = scalar_lea.sflag [#allocation3], %s4313_s6 }
  0x60   : > { %s214_s12 = scalar_lea.vmem [#allocation2], %s3715_s10 }
  0x61   : > { %4111 = dma.done.wait (%p6943_p1), %s211_s11, 128  }
  0x62   : > { %4113 = vsyncadd (%p6943_p1), %s211_s11, 4294967168  ;;  %p6944_p4 = scmp.eq.s32.totalorder %s4211_s19, 0 }
  0x64   : > { %4115 = dma.done.wait (%p6944_p4), [#allocation8], 64   ;;  %p6945_p6 = pmov %p6944_p4 }
  0x65   : > { %p6946_p8 = pmov %p6944_p4 }
  0x66   : > { %4117 = vsyncadd (%p6945_p6), [#allocation8], 4294967232 }
  0x67   : > { %4119 = dma.done.wait (%p6946_p8), [#allocation5], 64   ;;  %p6947_p5 = pmov %p6944_p4 }
  0x68   : > { %p6948_p11 = pmov %p6944_p4 }
  0x69   : > { %4121 = vsyncadd (%p6947_p5), [#allocation5], 4294967232 }
  0x6a   : > { %4123 = dma.done.wait (%p6948_p11), [#allocation6], 64   ;;  %p6949_p7 = pmov %p6944_p4 }
  0x6c   : > { %4125 = vsyncadd (%p6949_p7), [#allocation6], 4294967232 }
  0x6d   : > { %231 = sfence }
  0x6e   : > { %v366_v0 = vlaneseq  ;;  %s253_s21 = sld [smem:[#allocation9]]  ;;  %v433_v2 = vld [vmem:[#allocation7 + $0x1] ss:$2 sm:$0x3]  ;;  %v4346_v7 = vld [vmem:[%s214_s12] sm:$0xff]  ;;  %s4150_s14 = smov 2  }
  0x6f   : > { %s3720_s23 = sld [smem:[#allocation9 + $0x1]]  ;;  %vm409_vm0 = vcmask 1040384   ;;  %vm412_vm1 = vcmask 1041408   ;;  %vm415_vm2 = vcmask 1042432   ;;  %vm424_vm3 = vcmask 138240   ;;  %p7471_p9 = scmp.ne.s32.totalorder %s6939_s24, 0 }
  0x70   : > { %v4333_v1 = vshrl.u32 %v366_v0, 7  ;;  %s3722_s28 = sld [smem:[#allocation9 + $0x2]]  ;;  %vm985_vm4 = vcmask 15360   ;;  %vm1354_vm5 = vcmask 130048   ;;  %vm2080_vm6 = vcmask 146432  }
  0x71   : > { %s3724_s7 = sld [smem:[#allocation9 + $0x3]]  ;;  %vm2449_vm7 = vcmask 261120   ;;  %vm629_vm8 = vcmask 1039360   ;;  %vm1007_vm9 = vcmask 1031168   ;;  %vm1376_vm10 = vcmask 916480  }
  0x72   : > { %v441_v3 = vsub.s32 1, %v4333_v1  ;;  %v4337_v4 = vsub.s32 0, %v4333_v1  ;;  %s3726_s8 = sld [smem:[#allocation9 + $0x80]]  ;;  %v372_v60 = vsub.s32 4, %v4333_v1  ;;  %vm1733_vm11 = vcmask 908288  }
  0x73   : > { %s3727_s9 = sld [smem:[#allocation9 + $0x81]]  ;;  %vm2102_vm12 = vcmask 900096   ;;  %vm2471_vm13 = vcmask 785408   ;;  %vm2828_vm14 = vcmask 777216   ;;  %vm3175_vm15 = vcmask 277504  }
  0x74   : > { %v4341_v5 = vrot.slane %v433_v2, %v441_v3  ;;  %v4344_v6 = vrot.slane %v433_v2, %v4337_v4  ;;  %v254_v8 = vstv %s253_s21  ;;  %s3729_s13 = sld [smem:[#allocation9 + $0x82]] }
  0x75   : > { %v257_v9 = vstv %s3720_s23  ;;  %s3731_s26 = sld [smem:[#allocation9 + $0x83]]  ;;  %v255_v10 = vmul.f32 %v254_v8, %v4346_v7  ;;  %s4151_s23 = smov 17  }
  0x76   : > { %983 = vrot.lane.b32.xlu1 %v4341_v5, %s4150_s14  ;;  %981 = vrot.lane.b32.xlu0 %v4344_v6, %s4150_s14  ;;  %v258_v11 = vmul.f32 %v257_v9, %v4346_v7  ;;  %v265_v12 = vstv %s3722_s28  ;;  %s3733_s27 = sld [smem:[#allocation9 + $0x100]] }
  0x77   : > { %v266_v13 = vmul.f32 %v265_v12, %v4346_v7  ;;  %v273_v14 = vstv %s3724_s7  ;;  %s3734_s25 = sld [smem:[#allocation9 + $0x101]] }
  0x78   : > { %v3721_v15 = vrot.slane %v258_v11, 9  ;;  %v274_v16 = vmul.f32 %v273_v14, %v4346_v7  ;;  %v282_v17 = vstv %s3726_s8  ;;  %s3736_s29 = sld [smem:[#allocation9 + $0x102]]  ;;  %s4152_s8 = smov 127  }
  0x79   : > { %v3723_v18 = vrot.slane %v266_v13, 10  ;;  %v283_v19 = vmul.f32 %v282_v17, %v4346_v7  ;;  %v285_v20 = vstv %s3727_s9  ;;  %s3738_s5 = sld [smem:[#allocation9 + $0x103]] }
  0x7a   : > { %v263_v21 = vadd.f32 %v3721_v15, %v255_v10  ;;  %v3725_v22 = vrot.slane %v274_v16, 11  ;;  %v286_v23 = vmul.f32 %v285_v20, %v4346_v7  ;;  %v293_v24 = vstv %s3729_s13  ;;  %s3740_s10 = sld [smem:[#allocation9 + $0x180]] }
  0x7b   : > { %v294_v25 = vmul.f32 %v293_v24, %v4346_v7  ;;  %v301_v26 = vstv %s3731_s26  ;;  %s3741_s11 = sld [smem:[#allocation9 + $0x181]] }
  0x7c   : > { %v271_v27 = vadd.f32 %v3723_v18, %v263_v21  ;;  %v3728_v28 = vrot.slane %v286_v23, 9  ;;  %v302_v29 = vmul.f32 %v301_v26, %v4346_v7  ;;  %v310_v30 = vstv %s3733_s27  ;;  %s3743_s12 = sld [smem:[#allocation9 + $0x182]] }
  0x7d   : > { %v3730_v31 = vrot.slane %v294_v25, 10  ;;  %v311_v32 = vmul.f32 %v310_v30, %v4346_v7  ;;  %v313_v33 = vstv %s3734_s25  ;;  %s3745_s21 = sld [smem:[#allocation9 + $0x183]] }
  0x7e   : > { %v279_v34 = vadd.f32 %v3725_v22, %v271_v27  ;;  %v291_v35 = vadd.f32 %v3728_v28, %v283_v19  ;;  %v3732_v36 = vrot.slane %v302_v29, 11  ;;  %v314_v37 = vmul.f32 %v313_v33, %v4346_v7  ;;  %s3762_s28 = sld [smem:[#allocation10 + $0x1]] }
  0x7f   : > { %v321_v38 = vstv %s3736_s29  ;;  %v329_v39 = vstv %s3738_s5  ;;  %s3766_s7 = sld [smem:[#allocation10 + $0x81]] }
  0x80   : > { %v299_v40 = vadd.f32 %v3730_v31, %v291_v35  ;;  %v3735_v41 = vrot.slane %v314_v37, 9  ;;  %v322_v42 = vmul.f32 %v321_v38, %v4346_v7  ;;  %v280_v43 = vmax.f32 %v279_v34, 0.0  ;;  %s3770_s9 = sld [smem:[#allocation10 + $0x101]] }
  0x81   : > { %v330_v44 = vmul.f32 %v329_v39, %v4346_v7  ;;  %v338_v45 = vstv %s3740_s10  ;;  %v341_v46 = vstv %s3741_s11  ;;  %s3763_s13 = sld [smem:[#allocation10 + $0xa]] }
  0x82   : > { %v307_v47 = vadd.f32 %v3732_v36, %v299_v40  ;;  %v319_v48 = vadd.f32 %v3735_v41, %v311_v32  ;;  %v3737_v49 = vrot.slane %v322_v42, 10  ;;  %v339_v50 = vmul.f32 %v338_v45, %v4346_v7  ;;  %s3774_s14 = sld [smem:[#allocation10 + $0x181]] }
  0x83   : > { %v3739_v51 = vrot.slane %v330_v44, 11  ;;  %v342_v52 = vmul.f32 %v341_v46, %v4346_v7  ;;  %v349_v53 = vstv %s3743_s12  ;;  %v357_v54 = vstv %s3745_s21  ;;  %s3764_s26 = sld [smem:[#allocation10 + $0x13]] }
  0x84   : > { %v308_v55 = vmax.f32 %v307_v47, 0.0  ;;  %v327_v56 = vadd.f32 %v3737_v49, %v319_v48  ;;  %v350_v57 = vmul.f32 %v349_v53, %v4346_v7  ;;  %v358_v58 = vmul.f32 %v357_v54, %v4346_v7  ;;  %s3765_s27 = sld [smem:[#allocation10 + $0x1c]] }
  0x85   : > { %v3742_v59 = vrot.slane %v342_v52, 9  ;;  %v369_v2 = vrot.slane %v280_v43, %v4337_v4  ;;  %v373_v11 = vrot.slane %v280_v43, %v372_v60  ;;  %v616_v25 = vstv %s3762_s28  ;;  %s3767_s25 = sld [smem:[#allocation10 + $0x8a]] }
  0x86   : > { %v335_v61 = vadd.f32 %v3739_v51, %v327_v56  ;;  %v3744_v62 = vrot.slane %v350_v57, 10  ;;  %v3746_v0 = vrot.slane %v358_v58, 11  ;;  %v380_v8 = vrot.slane %v308_v55, %v4337_v4  ;;  %s3768_s29 = sld [smem:[#allocation10 + $0x93]] }
  0x87   : > { %v347_v63 = vadd.f32 %v3742_v59, %v339_v50  ;;  %v384_v12 = vrot.slane %v308_v55, %v372_v60  ;;  %v706_v34 = vstv %s3766_s7  ;;  %v795_v37 = vstv %s3770_s9  ;;  %s3769_s5 = sld [smem:[#allocation10 + $0x9c]] }
  0x88   : > { %v336_v9 = vmax.f32 %v335_v61, 0.0  ;;  %v410_v7 = vsel %vm409_vm0, %v369_v2, %v380_v8  ;;  %v637_v40 = vstv %s3763_s13  ;;  %v884_v41 = vstv %s3774_s14  ;;  %s3771_s10 = sld [smem:[#allocation10 + $0x10a]]  ;;  %s4153_s14 = smov 126  }
  0x89   : > { %v355_v10 = vadd.f32 %v3744_v62, %v347_v63  ;;  %v411_v17 = vsel %vm409_vm0, %v373_v11, %v384_v12  ;;  %v660_v48 = vstv %s3764_s26  ;;  %s3772_s11 = sld [smem:[#allocation10 + $0x113]]  ;;  %vm3197_vm0 = vcmask 769024  }
  0x8a   : > { %v391_v13 = vrot.slane %v336_v9, %v4337_v4  ;;  %v395_v15 = vrot.slane %v336_v9, %v372_v60  ;;  %v683_v52 = vstv %s3765_s27  ;;  %s3773_s12 = sld [smem:[#allocation10 + $0x11c]] }
  0x8b   : > { %v363_v14 = vadd.f32 %v3746_v0, %v355_v10  ;;  %v726_v61 = vstv %s3767_s25  ;;  %s3775_s21 = sld [smem:[#allocation10 + $0x18a]] }
  0x8c   : > { %v413_v18 = vsel %vm412_vm1, %v410_v7, %v391_v13  ;;  %v414_v21 = vsel %vm412_vm1, %v411_v17, %v395_v15  ;;  %v749_v12 = vstv %s3768_s29  ;;  %s3777_s28 = sld [smem:[#allocation10 + $0x19c]]  ;;  %vm3572_vm1 = vcmask 1043456  }
  0x8d   : > { %v364_v16 = vmax.f32 %v363_v14, 0.0  ;;  %s3778_s7 = sld [smem:[#allocation10 + $0x2]] }
  0x8e   : > { %s3782_s9 = sld [smem:[#allocation10 + $0x82]] }
  0x8f   : > { %v402_v19 = vrot.slane %v364_v16, %v4337_v4  ;;  %v406_v20 = vrot.slane %v364_v16, %v372_v60  ;;  %v772_v16 = vstv %s3769_s5  ;;  %s3779_s13 = sld [smem:[#allocation10 + $0xb]] }
  0x90   : > { %s3780_s26 = sld [smem:[#allocation10 + $0x14]] }
  0x91   : > { %v4371_v22 = vsel %vm415_vm2, %v413_v18, %v402_v19  ;;  %v4374_v23 = vsel %vm415_vm2, %v414_v21, %v406_v20  ;;  %s3781_s27 = sld [smem:[#allocation10 + $0x1d]]  ;;  %vm3575_vm2 = vcmask 1044480  }
  0x92   : > { %6950 = vst [vmem:[#allocation20_spill] sm:$0xff] %v4371_v22  ;;  %420 = vrot.lane.b32.xlu0 %v4371_v22, %s4151_s23  ;;  %6951 = vst [vmem:[#allocation21_spill] sm:$0xff] %v4374_v23  ;;  %s3784_s25 = sld [smem:[#allocation10 + $0x94]] }
  0x93   : > { %s3785_s29 = sld [smem:[#allocation10 + $0x9d]] }
  0x94   : > { %s3786_s5 = sld [smem:[#allocation10 + $0x102]] }
  0x95   : > { %s5569_s0 = sld [smem:[#allocation10 + $0x192]] }
  0x96   : > { %422 = vrot.lane.b32.xlu0 %v4374_v23, %s4151_s23  ;;  %s3776_s23 = sld [smem:[#allocation10 + $0x193]] }
  0x97   : > { %s5572_s1 = sld [smem:[#allocation10 + $0x19b]] }
  0x98   : > { %s5580_s2 = sld [smem:[#allocation10 + $0x107]] }
  0x99   : > { %s5583_s3 = sld [smem:[#allocation10 + $0x110]] }
  0x9a   : > { %s5586_s20 = sld [smem:[#allocation10 + $0x119]] }
  0x9b   : > { %s5591_s17 = sld [smem:[#allocation10 + $0x122]] }
  0x9c   : > { %s5606_s16 = sld [smem:[#allocation10 + $0x190]] }
  0xe8   : > { %v4377_v24 = vpop.permute.xlu0 %981 }
 0x104   : > { %v421_v26 = vpop.permute.xlu0 %420 }
 0x105   : > { %v4379_v27 = vsel %vm424_vm3, 0.0, %v421_v26 }
 0x106   : > { %v617_v28 = vmul.f32 %v616_v25, %v4379_v27  ;;  %v707_v35 = vmul.f32 %v706_v34, %v4379_v27  ;;  %v796_v42 = vmul.f32 %v795_v37, %v4379_v27  ;;  %v638_v44 = vmul.f32 %v637_v40, %v4379_v27 }
 0x107   : > { %v885_v49 = vmul.f32 %v884_v41, %v4379_v27  ;;  %v684_v56 = vmul.f32 %v683_v52, %v4379_v27  ;;  %v661_v59 = vmul.f32 %v660_v48, %v4379_v27  ;;  %v727_v2 = vmul.f32 %v726_v61, %v4379_v27 }
 0x108   : > { %623 = vrot.lane.b32.xlu1 %v617_v28, %s4152_s8  ;;  %v423_v29 = vpop.permute.xlu0 %422  ;;  %v644_v46 = vrot.slane %v638_v44, 1  ;;  %v750_v19 = vmul.f32 %v749_v12, %v4379_v27  ;;  %v773_v20 = vmul.f32 %v772_v16, %v4379_v27 }
 0x109   : > { %v4383_v30 = vsel %vm424_vm3, %v421_v26, %v423_v29  ;;  %v4385_v31 = vsel %vm424_vm3, %v423_v29, 0.0  ;;  %v690_v58 = vrot.slane %v684_v56, 3  ;;  %v667_v62 = vrot.slane %v661_v59, 2 }
 0x10a   : > { %v619_v32 = vmul.f32 %v616_v25, %v4385_v31  ;;  %v618_v33 = vmul.f32 %v616_v25, %v4383_v30  ;;  %v708_v36 = vmul.f32 %v706_v34, %v4383_v30  ;;  %v709_v38 = vmul.f32 %v706_v34, %v4385_v31 }
 0x10b   : > { %v797_v39 = vmul.f32 %v795_v37, %v4383_v30  ;;  %v886_v43 = vmul.f32 %v884_v41, %v4383_v30  ;;  %v798_v45 = vmul.f32 %v795_v37, %v4385_v31  ;;  %v640_v47 = vmul.f32 %v637_v40, %v4385_v31 }
 0x10c   : > { %627 = vrot.lane.b32.xlu0 %v619_v32, %s4152_s8  ;;  %625 = vrot.lane.b32.xlu1 %v618_v33, %s4152_s8  ;;  %v662_v51 = vmul.f32 %v660_v48, %v4383_v30  ;;  %v887_v53 = vmul.f32 %v884_v41, %v4385_v31  ;;  %v639_v55 = vmul.f32 %v637_v40, %v4383_v30  ;;  %v733_v9 = vrot.slane %v727_v2, 1 }
 0x10d   : > { %v646_v50 = vrot.slane %v640_v47, 1  ;;  %v686_v60 = vmul.f32 %v683_v52, %v4385_v31  ;;  %v663_v0 = vmul.f32 %v660_v48, %v4385_v31  ;;  %v685_v10 = vmul.f32 %v683_v52, %v4383_v30 }
 0x10e   : > { %v668_v54 = vrot.slane %v662_v51, 2  ;;  %v645_v57 = vrot.slane %v639_v55, 1  ;;  %v729_v11 = vmul.f32 %v726_v61, %v4385_v31  ;;  %v728_v7 = vmul.f32 %v726_v61, %v4383_v30 }
 0x10f   : > { %v692_v63 = vrot.slane %v686_v60, 3  ;;  %v669_v8 = vrot.slane %v663_v0, 2  ;;  %v691_v13 = vrot.slane %v685_v10, 3  ;;  %v751_v15 = vmul.f32 %v749_v12, %v4383_v30 }
 0x110   : > { %713 = vrot.lane.b32.xlu0 %v707_v35, %s4152_s8  ;;  %715 = vrot.lane.b32.xlu1 %v708_v36, %s4152_s8  ;;  %v735_v14 = vrot.slane %v729_v11, 1  ;;  %v734_v17 = vrot.slane %v728_v7, 1  ;;  %v756_v21 = vrot.slane %v750_v19, 2  ;;  %v779_v25 = vrot.slane %v773_v20, 3  ;;  %v984_v7 = vpop.permute.xlu1 %983 }
 0x111   : > { %v757_v18 = vrot.slane %v751_v15, 2  ;;  %v752_v26 = vmul.f32 %v749_v12, %v4385_v31  ;;  %v775_v28 = vmul.f32 %v772_v16, %v4385_v31  ;;  %v815_v29 = vstv %s3771_s10  ;;  %s3787_s10 = sld [smem:[#allocation10 + $0x10b]] }
 0x112   : > { %v774_v34 = vmul.f32 %v772_v16, %v4383_v30  ;;  %v816_v35 = vmul.f32 %v815_v29, %v4379_v27  ;;  %v838_v40 = vstv %s3772_s11  ;;  %v927_v59 = vstv %s3776_s23  ;;  %s3788_s11 = sld [smem:[#allocation10 + $0x114]] }
 0x113   : > { %v758_v32 = vrot.slane %v752_v26, 2  ;;  %v781_v33 = vrot.slane %v775_v28, 3  ;;  %v840_v44 = vmul.f32 %v838_v40, %v4383_v30  ;;  %v841_v48 = vmul.f32 %v838_v40, %v4385_v31  ;;  %s3791_s23 = sld [smem:[#allocation10 + $0x18b]] }
 0x114   : > { %717 = vrot.lane.b32.xlu0 %v709_v38, %s4152_s8  ;;  %804 = vrot.lane.b32.xlu1 %v797_v39, %s4152_s8  ;;  %v780_v36 = vrot.slane %v774_v34, 3  ;;  %v822_v37 = vrot.slane %v816_v35, 1  ;;  %v817_v38 = vmul.f32 %v815_v29, %v4383_v30  ;;  %v818_v39 = vmul.f32 %v815_v29, %v4385_v31 }
 0x115   : > { %v846_v47 = vrot.slane %v840_v44, 2  ;;  %v950_v10 = vstv %s3777_s28  ;;  %v4479_v15 = vmul.f32 %v4377_v24, %v4379_v27  ;;  %v994_v19 = vstv %s3778_s7  ;;  %s3792_s28 = sld [smem:[#allocation10 + $0x194]] }
 0x116   : > { %v823_v41 = vrot.slane %v817_v38, 1  ;;  %v986_v20 = vsel %vm985_vm4, %v4377_v24, %v984_v7  ;;  %v1015_v24 = vstv %s3779_s13  ;;  %s3793_s7 = sld [smem:[#allocation10 + $0x19d]]  ;;  %vm3578_vm3 = vcmask 1045504  }
 0x117   : > { %v995_v26 = vmul.f32 %v994_v19, %v4479_v15  ;;  %s3794_s13 = sld [smem:[#allocation10 + $0x3]]  ;;  %vm3581_vm4 = vcmask 1046528  }
 0x118   : > { %802 = vrot.lane.b32.xlu0 %v796_v42, %s4152_s8  ;;  %893 = vrot.lane.b32.xlu1 %v886_v43, %s4152_s8  ;;  %v824_v42 = vrot.slane %v818_v39, 1  ;;  %v839_v43 = vmul.f32 %v838_v40, %v4379_v27 }
 0x11c   : > { %806 = vrot.lane.b32.xlu0 %v798_v45, %s4152_s8  ;;  %647 = vrot.lane.b32.xlu1 %v644_v46, %s4152_s8  ;;  %v861_v45 = vstv %s3773_s12  ;;  %v845_v46 = vrot.slane %v839_v43, 2  ;;  %s3789_s12 = sld [smem:[#allocation10 + $0x11d]] }
 0x11d   : > { %v863_v52 = vmul.f32 %v861_v45, %v4383_v30 }
 0x11f   : > { %v869_v55 = vrot.slane %v863_v52, 3 }
 0x120   : > { %891 = vrot.lane.b32.xlu0 %v885_v49, %s4152_s8  ;;  %651 = vrot.lane.b32.xlu1 %v646_v50, %s4152_s8  ;;  %v862_v49 = vmul.f32 %v861_v45, %v4379_v27  ;;  %v847_v50 = vrot.slane %v841_v48, 2 }
 0x122   : > { %v868_v51 = vrot.slane %v862_v49, 3 }
 0x124   : > { %895 = vrot.lane.b32.xlu0 %v887_v53, %s4152_s8  ;;  %672 = vrot.lane.b32.xlu1 %v668_v54, %s4152_s8  ;;  %v864_v53 = vmul.f32 %v861_v45, %v4385_v31  ;;  %v904_v54 = vstv %s3775_s21  ;;  %s3790_s21 = sld [smem:[#allocation10 + $0x182]] }
 0x126   : > { %v870_v56 = vrot.slane %v864_v53, 3 }
 0x128   : > { %649 = vrot.lane.b32.xlu0 %v645_v57, %s4152_s8  ;;  %693 = vrot.lane.b32.xlu1 %v690_v58, %s4152_s8  ;;  %v906_v57 = vmul.f32 %v904_v54, %v4383_v30  ;;  %v905_v58 = vmul.f32 %v904_v54, %v4379_v27 }
 0x12a   : > { %v912_v60 = vrot.slane %v906_v57, 1  ;;  %v911_v61 = vrot.slane %v905_v58, 1 }
 0x12c   : > { %670 = vrot.lane.b32.xlu0 %v667_v62, %s4152_s8  ;;  %697 = vrot.lane.b32.xlu1 %v692_v63, %s4152_s8  ;;  %v928_v62 = vmul.f32 %v927_v59, %v4379_v27  ;;  %v907_v63 = vmul.f32 %v904_v54, %v4385_v31 }
 0x12e   : > { %v934_v0 = vrot.slane %v928_v62, 2  ;;  %v913_v2 = vrot.slane %v907_v63, 1 }
 0x130   : > { %674 = vrot.lane.b32.xlu0 %v669_v8, %s4152_s8  ;;  %736 = vrot.lane.b32.xlu1 %v733_v9, %s4152_s8  ;;  %v930_v8 = vmul.f32 %v927_v59, %v4385_v31  ;;  %v929_v9 = vmul.f32 %v927_v59, %v4383_v30 }
 0x132   : > { %v936_v11 = vrot.slane %v930_v8, 2  ;;  %v935_v12 = vrot.slane %v929_v9, 2 }
 0x134   : > { %695 = vrot.lane.b32.xlu0 %v691_v13, %s4152_s8  ;;  %740 = vrot.lane.b32.xlu1 %v735_v14, %s4152_s8  ;;  %v952_v13 = vmul.f32 %v950_v10, %v4383_v30  ;;  %v951_v14 = vmul.f32 %v950_v10, %v4379_v27 }
 0x136   : > { %v958_v16 = vrot.slane %v952_v13, 3 }
 0x138   : > { %738 = vrot.lane.b32.xlu0 %v734_v17, %s4152_s8  ;;  %761 = vrot.lane.b32.xlu1 %v757_v18, %s4152_s8  ;;  %v957_v17 = vrot.slane %v951_v14, 3  ;;  %v953_v18 = vmul.f32 %v950_v10, %v4385_v31 }
 0x13a   : > { %v959_v28 = vrot.slane %v953_v18, 3 }
 0x13c   : > { %759 = vrot.lane.b32.xlu0 %v756_v21, %s4152_s8  ;;  %782 = vrot.lane.b32.xlu1 %v779_v25, %s4152_s8  ;;  %v4486_v21 = vmul.f32 %v986_v20, %v4383_v30  ;;  %v4489_v25 = vmul.f32 %v984_v7, %v4385_v31  ;;  %v1150_v20 = vstv %s3785_s29  ;;  %s3799_s29 = sld [smem:[#allocation10 + $0x8c]] }
 0x13e   : > { %v997_v29 = vmul.f32 %v994_v19, %v4489_v25  ;;  %v1017_v39 = vmul.f32 %v1015_v24, %v4486_v21  ;;  %v1018_v40 = vmul.f32 %v1015_v24, %v4489_v25 }
 0x140   : > { %763 = vrot.lane.b32.xlu0 %v758_v32, %s4152_s8  ;;  %786 = vrot.lane.b32.xlu1 %v781_v33, %s4152_s8  ;;  %v996_v32 = vmul.f32 %v994_v19, %v4486_v21  ;;  %v1084_v33 = vstv %s3782_s9  ;;  %v1024_v43 = vrot.slane %v1018_v40, 1  ;;  %s4154_s9 = smov 16  }
 0x141   : > { %v1085_v34 = vmul.f32 %v1084_v33, %v4479_v15  ;;  %v1086_v35 = vmul.f32 %v1084_v33, %v4486_v21 }
 0x144   : > { %784 = vrot.lane.b32.xlu0 %v780_v36, %s4152_s8  ;;  %825 = vrot.lane.b32.xlu1 %v822_v37, %s4152_s8  ;;  %v1016_v36 = vmul.f32 %v1015_v24, %v4479_v15  ;;  %v1087_v37 = vmul.f32 %v1084_v33, %v4489_v25  ;;  %v1152_v33 = vmul.f32 %v1150_v20, %v4486_v21 }
 0x145   : > { %v1151_v24 = vmul.f32 %v1150_v20, %v4479_v15 }
 0x146   : > { %v1022_v38 = vrot.slane %v1016_v36, 1  ;;  %v1158_v36 = vrot.slane %v1152_v33, 3 }
 0x148   : > { %827 = vrot.lane.b32.xlu0 %v823_v41, %s4152_s8  ;;  %829 = vrot.lane.b32.xlu1 %v824_v42, %s4152_s8  ;;  %v1038_v41 = vstv %s3780_s26  ;;  %v1023_v42 = vrot.slane %v1017_v39, 1  ;;  %v1173_v39 = vstv %s3786_s5  ;;  %s3796_s26 = sld [smem:[#allocation10 + $0x15]] }
 0x149   : > { %v1039_v44 = vmul.f32 %v1038_v41, %v4479_v15  ;;  %v1040_v45 = vmul.f32 %v1038_v41, %v4486_v21  ;;  %s3800_s5 = sld [smem:[#allocation10 + $0x95]] }
 0x14b   : > { %v1045_v48 = vrot.slane %v1039_v44, 2  ;;  %v1046_v49 = vrot.slane %v1040_v45, 2  ;;  %v1193_v44 = vstv %s3787_s10  ;;  %s3801_s10 = sld [smem:[#allocation10 + $0x9e]] }
 0x14c   : > { %848 = vrot.lane.b32.xlu0 %v845_v46, %s4152_s8  ;;  %850 = vrot.lane.b32.xlu1 %v846_v47, %s4152_s8  ;;  %v1061_v46 = vstv %s3781_s27  ;;  %s4155_s27 = smov 112  }
 0x14d   : > { %v1064_v57 = vmul.f32 %v1061_v46, %v4489_v25 }
 0x14f   : > { %v1070_v62 = vrot.slane %v1064_v57, 3 }
 0x150   : > { %852 = vrot.lane.b32.xlu0 %v847_v50, %s4152_s8  ;;  %871 = vrot.lane.b32.xlu1 %v868_v51, %s4152_s8  ;;  %v1041_v50 = vmul.f32 %v1038_v41, %v4489_v25  ;;  %v1062_v51 = vmul.f32 %v1061_v46, %v4479_v15 }
 0x152   : > { %v1047_v54 = vrot.slane %v1041_v50, 2  ;;  %v1195_v50 = vmul.f32 %v1193_v44, %v4486_v21 }
 0x154   : > { %873 = vrot.lane.b32.xlu0 %v869_v55, %s4152_s8  ;;  %875 = vrot.lane.b32.xlu1 %v870_v56, %s4152_s8  ;;  %v1068_v55 = vrot.slane %v1062_v51, 3  ;;  %v1063_v56 = vmul.f32 %v1061_v46, %v4486_v21  ;;  %v1194_v51 = vmul.f32 %v1193_v44, %v4479_v15  ;;  %v1201_v57 = vrot.slane %v1195_v50, 1 }
 0x158   : > { %916 = vrot.lane.b32.xlu0 %v912_v60, %s4152_s8  ;;  %914 = vrot.lane.b32.xlu1 %v911_v61, %s4152_s8  ;;  %v1069_v61 = vrot.slane %v1063_v56, 3 }
 0x15c   : > { %937 = vrot.lane.b32.xlu0 %v934_v0, %s4152_s8  ;;  %918 = vrot.lane.b32.xlu1 %v913_v2, %s4152_s8  ;;  %v1127_v2 = vstv %s3784_s25  ;;  %s3798_s25 = sld [smem:[#allocation10 + $0x83]] }
 0x15d   : > { %v1130_v18 = vmul.f32 %v1127_v2, %v4489_v25  ;;  %v1129_v19 = vmul.f32 %v1127_v2, %v4486_v21 }
 0x160   : > { %941 = vrot.lane.b32.xlu0 %v936_v11, %s4152_s8  ;;  %939 = vrot.lane.b32.xlu1 %v935_v12, %s4152_s8  ;;  %v1128_v12 = vmul.f32 %v1127_v2, %v4479_v15 }
 0x164   : > { %962 = vrot.lane.b32.xlu0 %v958_v16, %s4152_s8  ;;  %960 = vrot.lane.b32.xlu1 %v957_v17, %s4152_s8  ;;  %v1134_v16 = vrot.slane %v1128_v12, 2 }
 0x168   : > { %1001 = vrot.lane.b32.xlu0 %v995_v26, %s4153_s14  ;;  %964 = vrot.lane.b32.xlu1 %v959_v28, %s4152_s8  ;;  %s3783_s8 = sld [smem:[#allocation10 + $0x8b]] }
 0x16c   : > { %1005 = vrot.lane.b32.xlu0 %v997_v29, %s4153_s14  ;;  %1003 = vrot.lane.b32.xlu1 %v996_v32, %s4153_s14  ;;  %v1136_v29 = vrot.slane %v1130_v18, 2  ;;  %v1135_v32 = vrot.slane %v1129_v19, 2 }
 0x16e   : > { %v1104_v58 = vstv %s3783_s8  ;;  %s3797_s8 = sld [smem:[#allocation10 + $0x1e]] }
 0x16f   : > { %v1106_v63 = vmul.f32 %v1104_v58, %v4486_v21  ;;  %v1105_v0 = vmul.f32 %v1104_v58, %v4479_v15  ;;  %v1107_v13 = vmul.f32 %v1104_v58, %v4489_v25  ;;  %v1200_v58 = vrot.slane %v1194_v51, 1 }
 0x170   : > { %1091 = vrot.lane.b32.xlu0 %v1085_v34, %s4153_s14  ;;  %1093 = vrot.lane.b32.xlu1 %v1086_v35, %s4153_s14 }
 0x171   : > { %v1112_v10 = vrot.slane %v1106_v63, 1  ;;  %v1111_v11 = vrot.slane %v1105_v0, 1  ;;  %v1113_v17 = vrot.slane %v1107_v13, 1  ;;  %v1239_v13 = vstv %s3789_s12  ;;  %s3803_s12 = sld [smem:[#allocation10 + $0x10c]] }
 0x174   : > { %1095 = vrot.lane.b32.xlu0 %v1087_v37, %s4153_s14  ;;  %1025 = vrot.lane.b32.xlu1 %v1022_v38, %s4153_s14  ;;  %v1157_v37 = vrot.slane %v1151_v24, 3  ;;  %v1153_v38 = vmul.f32 %v1150_v20, %v4489_v25  ;;  %v1241_v20 = vmul.f32 %v1239_v13, %v4486_v21 }
 0x176   : > { %v1247_v24 = vrot.slane %v1241_v20, 3 }
 0x178   : > { %1027 = vrot.lane.b32.xlu0 %v1023_v42, %s4153_s14  ;;  %1029 = vrot.lane.b32.xlu1 %v1024_v43, %s4153_s14  ;;  %v1174_v42 = vmul.f32 %v1173_v39, %v4479_v15  ;;  %v1159_v43 = vrot.slane %v1153_v38, 3  ;;  %v1262_v38 = vstv %s3790_s21  ;;  %s3804_s21 = sld [smem:[#allocation10 + $0x115]] }
 0x179   : > { %v1265_v51 = vmul.f32 %v1262_v38, %v4489_v25 }
 0x17a   : > { %v4512_v47 = vpop.permute.xlu1 %623 }
 0x17c   : > { %1048 = vrot.lane.b32.xlu0 %v1045_v48, %s4153_s14  ;;  %1050 = vrot.lane.b32.xlu1 %v1046_v49, %s4153_s14  ;;  %v1176_v48 = vmul.f32 %v1173_v39, %v4489_v25  ;;  %v1175_v49 = vmul.f32 %v1173_v39, %v4486_v21 }
 0x17e   : > { %v4518_v52 = vpop.permute.xlu0 %627  ;;  %v4520_v53 = vpop.permute.xlu1 %625 }
 0x180   : > { %1052 = vrot.lane.b32.xlu0 %v1047_v54, %s4153_s14  ;;  %1071 = vrot.lane.b32.xlu1 %v1068_v55, %s4153_s14  ;;  %v1216_v54 = vstv %s3788_s11  ;;  %s3802_s11 = sld [smem:[#allocation10 + $0x103]] }
 0x181   : > { %v1218_v12 = vmul.f32 %v1216_v54, %v4486_v21 }
 0x182   : > { %v4526_v59 = vpop.permute.xlu0 %713  ;;  %v4528_v60 = vpop.permute.xlu1 %715 }
 0x183   : > { %v1224_v19 = vrot.slane %v1218_v12, 2 }
 0x184   : > { %1073 = vrot.lane.b32.xlu0 %v1069_v61, %s4153_s14  ;;  %1075 = vrot.lane.b32.xlu1 %v1070_v62, %s4153_s14  ;;  %v1217_v61 = vmul.f32 %v1216_v54, %v4479_v15  ;;  %v1196_v62 = vmul.f32 %v1193_v44, %v4489_v25 }
 0x186   : > { %v4534_v8 = vpop.permute.xlu0 %717  ;;  %v4536_v9 = vpop.permute.xlu1 %804  ;;  %v1223_v2 = vrot.slane %v1217_v61, 2  ;;  %v1305_v61 = vstv %s3792_s28  ;;  %s3806_s28 = sld [smem:[#allocation10 + $0x183]] }
 0x187   : > { %6952 = vst [vmem:[#allocation22_spill] sm:$0xff] %v4536_v9  ;;  %v1306_v12 = vmul.f32 %v1305_v61, %v4479_v15 }
 0x188   : > { %1116 = vrot.lane.b32.xlu0 %v1112_v10, %s4153_s14  ;;  %1114 = vrot.lane.b32.xlu1 %v1111_v11, %s4153_s14  ;;  %v1202_v10 = vrot.slane %v1196_v62, 1  ;;  %v1219_v11 = vmul.f32 %v1216_v54, %v4489_v25  ;;  %v1264_v54 = vmul.f32 %v1262_v38, %v4486_v21 }
 0x189   : > { %v1312_v20 = vrot.slane %v1306_v12, 2  ;;  %v431_v12 = vld [vmem:[#allocation7] ss:$2 sm:$0x3] }
 0x18a   : > { %v4542_v14 = vpop.permute.xlu0 %802  ;;  %v4544_v7 = vpop.permute.xlu1 %893  ;;  %v1225_v18 = vrot.slane %v1219_v11, 2 }
 0x18b   : > { %6953 = vst [vmem:[#allocation23_spill] sm:$0xff] %v4542_v14  ;;  %6954 = vst [vmem:[#allocation24_spill] sm:$0xff] %v4544_v7 }
 0x18c   : > { %1137 = vrot.lane.b32.xlu0 %v1134_v16, %s4153_s14  ;;  %1118 = vrot.lane.b32.xlu1 %v1113_v17, %s4153_s14 }
 0x18e   : > { %v4550_v26 = vpop.permute.xlu0 %806  ;;  %v4552_v28 = vpop.permute.xlu1 %647 }
 0x18f   : > { %6955 = vst [vmem:[#allocation25_spill] sm:$0xff] %v4550_v26 }
 0x190   : > { %1141 = vrot.lane.b32.xlu0 %v1136_v29, %s4153_s14  ;;  %1139 = vrot.lane.b32.xlu1 %v1135_v32, %s4153_s14  ;;  %v1240_v29 = vmul.f32 %v1239_v13, %v4479_v15 }
 0x192   : > { %v4558_v34 = vpop.permute.xlu0 %891  ;;  %v4560_v35 = vpop.permute.xlu1 %651 }
 0x193   : > { %6956 = vst [vmem:[#allocation26_spill] sm:$0xff] %v4558_v34 }
 0x194   : > { %1162 = vrot.lane.b32.xlu0 %v1158_v36, %s4153_s14  ;;  %1160 = vrot.lane.b32.xlu1 %v1157_v37, %s4153_s14  ;;  %v1246_v36 = vrot.slane %v1240_v29, 3  ;;  %v1242_v37 = vmul.f32 %v1239_v13, %v4489_v25 }
 0x196   : > { %v4565_v40 = vpop.permute.xlu0 %895  ;;  %v4567_v41 = vpop.permute.xlu1 %672  ;;  %v1248_v44 = vrot.slane %v1242_v37, 3  ;;  %v1328_v37 = vstv %s3793_s7  ;;  %s3807_s7 = sld [smem:[#allocation10 + $0x18c]] }
 0x197   : > { %6957 = vst [vmem:[#allocation27_spill] sm:$0xff] %v4565_v40 }
 0x198   : > { %1180 = vrot.lane.b32.xlu0 %v1174_v42, %s4153_s14  ;;  %1164 = vrot.lane.b32.xlu1 %v1159_v43, %s4153_s14  ;;  %v1263_v43 = vmul.f32 %v1262_v38, %v4479_v15 }
 0x19a   : > { %v4572_v45 = vpop.permute.xlu0 %649  ;;  %v4574_v46 = vpop.permute.xlu1 %693 }
 0x19c   : > { %1184 = vrot.lane.b32.xlu0 %v1176_v48, %s4153_s14  ;;  %1182 = vrot.lane.b32.xlu1 %v1175_v49, %s4153_s14  ;;  %v1282_v48 = vstv %s3791_s23  ;;  %s3805_s23 = sld [smem:[#allocation10 + $0x11e]] }
 0x19d   : > { %v1285_v13 = vmul.f32 %v1282_v48, %v4489_v25 }
 0x19e   : > { %v4582_v55 = vpop.permute.xlu0 %670  ;;  %v4584_v56 = vpop.permute.xlu1 %697 }
 0x19f   : > { %v1291_v29 = vrot.slane %v1285_v13, 1 }
 0x1a0   : > { %1205 = vrot.lane.b32.xlu0 %v1201_v57, %s4153_s14  ;;  %1203 = vrot.lane.b32.xlu1 %v1200_v58, %s4153_s14  ;;  %v1284_v57 = vmul.f32 %v1282_v48, %v4486_v21  ;;  %v1283_v58 = vmul.f32 %v1282_v48, %v4479_v15 }
 0x1a2   : > { %v4590_v63 = vpop.permute.xlu0 %674  ;;  %v4592_v0 = vpop.permute.xlu1 %736  ;;  %v1289_v11 = vrot.slane %v1283_v58, 1 }
 0x1a3   : > { %6958 = vst [vmem:[#allocation28_spill] sm:$0xff] %v4592_v0 }
 0x1a4   : > { %1226 = vrot.lane.b32.xlu0 %v1223_v2, %s4153_s14  ;;  %1207 = vrot.lane.b32.xlu1 %v1202_v10, %s4153_s14  ;;  %v1290_v10 = vrot.slane %v1284_v57, 1 }
 0x1a6   : > { %v4598_v16 = vpop.permute.xlu0 %695  ;;  %v4600_v17 = vpop.permute.xlu1 %740 }
 0x1a7   : > { %6959 = vst [vmem:[#allocation29_spill] sm:$0xff] %v4600_v17 }
 0x1a8   : > { %1230 = vrot.lane.b32.xlu0 %v1225_v18, %s4153_s14  ;;  %1228 = vrot.lane.b32.xlu1 %v1224_v19, %s4153_s14 }
 0x1aa   : > { %v4606_v32 = vpop.permute.xlu0 %738  ;;  %v4608_v33 = vpop.permute.xlu1 %761 }
 0x1ab   : > { %6960 = vst [vmem:[#allocation30_spill] sm:$0xff] %v4606_v32  ;;  %6961 = vst [vmem:[#allocation31_spill] sm:$0xff] %v4608_v33 }
 0x1ac   : > { %1251 = vrot.lane.b32.xlu0 %v1247_v24, %s4153_s14  ;;  %1249 = vrot.lane.b32.xlu1 %v1246_v36, %s4153_s14  ;;  %v1308_v24 = vmul.f32 %v1305_v61, %v4489_v25  ;;  %v1307_v36 = vmul.f32 %v1305_v61, %v4486_v21 }
 0x1ae   : > { %v4613_v39 = vpop.permute.xlu0 %759  ;;  %v4615_v42 = vpop.permute.xlu1 %782  ;;  %v1313_v48 = vrot.slane %v1307_v36, 2 }
 0x1af   : > { %6962 = vst [vmem:[#allocation32_spill] sm:$0xff] %v4613_v39  ;;  %6963 = vst [vmem:[#allocation33_spill] sm:$0xff] %v4615_v42 }
 0x1b0   : > { %1269 = vrot.lane.b32.xlu0 %v1263_v43, %s4153_s14  ;;  %1253 = vrot.lane.b32.xlu1 %v1248_v44, %s4153_s14  ;;  %v1314_v44 = vrot.slane %v1308_v24, 2 }
 0x1b2   : > { %v4620_v49 = vpop.permute.xlu0 %763  ;;  %v4622_v50 = vpop.permute.xlu1 %786 }
 0x1b3   : > { %6964 = vst [vmem:[#allocation34_spill] sm:$0xff] %v4620_v49  ;;  %6965 = vst [vmem:[#allocation35_spill] sm:$0xff] %v4622_v50 }
 0x1b4   : > { %1273 = vrot.lane.b32.xlu0 %v1265_v51, %s4153_s14  ;;  %1271 = vrot.lane.b32.xlu1 %v1264_v54, %s4153_s14  ;;  %v1330_v51 = vmul.f32 %v1328_v37, %v4486_v21  ;;  %v1329_v54 = vmul.f32 %v1328_v37, %v4479_v15  ;;  %v4662_v21 = vrot.slane %v431_v12, %v4337_v4 }
 0x1b6   : > { %v4630_v62 = vpop.permute.xlu0 %784  ;;  %v4632_v2 = vpop.permute.xlu1 %825  ;;  %v1336_v61 = vrot.slane %v1330_v51, 3 }
 0x1b7   : > { %6966 = vst [vmem:[#allocation36_spill] sm:$0xff] %v4630_v62  ;;  %6967 = vst [vmem:[#allocation37_spill] sm:$0xff] %v4632_v2  ;;  %v1407_v2 = vstv %s3796_s26  ;;  %s3811_s26 = sld [smem:[#allocation10 + $0xd]] }
 0x1b8   : > { %1294 = vrot.lane.b32.xlu0 %v1290_v10, %s4153_s14  ;;  %1292 = vrot.lane.b32.xlu1 %v1289_v11, %s4153_s14  ;;  %v1335_v10 = vrot.slane %v1329_v54, 3  ;;  %v1331_v11 = vmul.f32 %v1328_v37, %v4489_v25  ;;  %v4672_v25 = vrot.slane %v431_v12, %v441_v3 }
 0x1ba   : > { %v4638_v18 = vpop.permute.xlu0 %827  ;;  %v4640_v19 = vpop.permute.xlu1 %829 }
 0x1bb   : > { %6968 = vst [vmem:[#allocation38_spill] sm:$0xff] %v4638_v18  ;;  %6969 = vst [vmem:[#allocation39_spill] sm:$0xff] %v4640_v19 }
 0x1bc   : > { %1315 = vrot.lane.b32.xlu0 %v1312_v20, %s4153_s14  ;;  %1296 = vrot.lane.b32.xlu1 %v1291_v29, %s4153_s14  ;;  %v1337_v20 = vrot.slane %v1331_v11, 3 }
 0x1be   : > { %v4646_v38 = vpop.permute.xlu0 %848  ;;  %v4648_v43 = vpop.permute.xlu1 %850 }
 0x1bf   : > { %6970 = vst [vmem:[#allocation40_spill] sm:$0xff] %v4646_v38  ;;  %6971 = vst [vmem:[#allocation41_spill] sm:$0xff] %v4648_v43 }
 0x1c0   : > { %1319 = vrot.lane.b32.xlu0 %v1314_v44, %s4153_s14  ;;  %1317 = vrot.lane.b32.xlu1 %v1313_v48, %s4153_s14 }
 0x1c2   : > { %v4654_v57 = vpop.permute.xlu0 %852  ;;  %v4656_v58 = vpop.permute.xlu1 %871 }
 0x1c3   : > { %6972 = vst [vmem:[#allocation42_spill] sm:$0xff] %v4654_v57  ;;  %6973 = vst [vmem:[#allocation43_spill] sm:$0xff] %v4656_v58 }
 0x1c4   : > { %1340 = vrot.lane.b32.xlu0 %v1336_v61, %s4153_s14  ;;  %1338 = vrot.lane.b32.xlu1 %v1335_v10, %s4153_s14 }
 0x1c6   : > { %v4664_v15 = vpop.permute.xlu0 %873  ;;  %v4666_v13 = vpop.permute.xlu1 %875 }
 0x1c7   : > { %6974 = vst [vmem:[#allocation44_spill] sm:$0xff] %v4664_v15  ;;  %6975 = vst [vmem:[#allocation45_spill] sm:$0xff] %v4666_v13 }
 0x1c8   : > { %1350 = vrot.lane.b32.xlu0 %v4662_v21, %s4154_s9  ;;  %1342 = vrot.lane.b32.xlu1 %v1337_v20, %s4153_s14  ;;  %s3795_s14 = sld [smem:[#allocation10 + $0xc]] }
 0x1ca   : > { %v4674_v29 = vpop.permute.xlu0 %916  ;;  %v4676_v24 = vpop.permute.xlu1 %914 }
 0x1cb   : > { %6976 = vst [vmem:[#allocation46_spill] sm:$0xff] %v4674_v29  ;;  %6977 = vst [vmem:[#allocation47_spill] sm:$0xff] %v4676_v24 }
 0x1cc   : > { %1352 = vrot.lane.b32.xlu1 %v4672_v25, %s4154_s9  ;;  %s3808_s9 = sld [smem:[#allocation10 + $0x195]] }
 0x1ce   : > { %v4679_v4 = vpop.permute.xlu0 %937  ;;  %v4681_v36 = vpop.permute.xlu1 %918 }
 0x1cf   : > { %6978 = vst [vmem:[#allocation48_spill] sm:$0xff] %v4679_v4  ;;  %6979 = vst [vmem:[#allocation49_spill] sm:$0xff] %v4681_v36 }
 0x1d2   : > { %v4683_v37 = vpop.permute.xlu0 %941  ;;  %v4685_v44 = vpop.permute.xlu1 %939 }
 0x1d3   : > { %6980 = vst [vmem:[#allocation50_spill] sm:$0xff] %v4683_v37  ;;  %6981 = vst [vmem:[#allocation51_spill] sm:$0xff] %v4685_v44 }
 0x1d6   : > { %v4687_v48 = vpop.permute.xlu0 %962  ;;  %v4689_v51 = vpop.permute.xlu1 %960 }
 0x1d7   : > { %6982 = vst [vmem:[#allocation52_spill] sm:$0xff] %v4687_v48  ;;  %6983 = vst [vmem:[#allocation53_spill] sm:$0xff] %v4689_v51 }
 0x1da   : > { %v4691_v1 = vpop.permute.xlu0 %1001  ;;  %v4693_v3 = vpop.permute.xlu1 %964 }
 0x1db   : > { %6984 = vst [vmem:[#allocation54_spill] sm:$0xff] %v4693_v3 }
 0x1de   : > { %v4695_v54 = vpop.permute.xlu0 %1005  ;;  %v4697_v61 = vpop.permute.xlu1 %1003 }
 0x1df   : > { %6985 = vst [vmem:[#allocation55_spill] sm:$0xff] %v4695_v54 }
 0x1e2   : > { %v4699_v10 = vpop.permute.xlu0 %1091  ;;  %v4701_v11 = vpop.permute.xlu1 %1093 }
 0x1e3   : > { %6986 = vst [vmem:[#allocation56_spill] sm:$0xff] %v4699_v10  ;;  %6987 = vst [vmem:[#allocation57_spill] sm:$0xff] %v4701_v11 }
 0x1e6   : > { %v4703_v12 = vpop.permute.xlu0 %1095  ;;  %v4705_v20 = vpop.permute.xlu1 %1025 }
 0x1e7   : > { %6988 = vst [vmem:[#allocation58_spill] sm:$0xff] %v4703_v12  ;;  %6989 = vst [vmem:[#allocation59_spill] sm:$0xff] %v4705_v20 }
 0x1ea   : > { %v4707_v23 = vpop.permute.xlu0 %1027  ;;  %v4709_v22 = vpop.permute.xlu1 %1029 }
 0x1eb   : > { %6990 = vst [vmem:[#allocation60_spill] sm:$0xff] %v4707_v23  ;;  %6991 = vst [vmem:[#allocation61_spill] sm:$0xff] %v4709_v22 }
 0x1ee   : > { %v4711_v51 = vpop.permute.xlu0 %1048  ;;  %v4713_v48 = vpop.permute.xlu1 %1050 }
 0x1ef   : > { %6992 = vst [vmem:[#allocation62_spill] sm:$0xff] %v4711_v51  ;;  %6993 = vst [vmem:[#allocation63_spill] sm:$0xff] %v4713_v48 }
 0x1f2   : > { %v4715_v3 = vpop.permute.xlu0 %1052  ;;  %v4717_v37 = vpop.permute.xlu1 %1071 }
 0x1f3   : > { %6994 = vst [vmem:[#allocation64_spill] sm:$0xff] %v4715_v3  ;;  %6995 = vst [vmem:[#allocation65_spill] sm:$0xff] %v4717_v37 }
 0x1f6   : > { %v4719_v4 = vpop.permute.xlu0 %1073  ;;  %v4721_v10 = vpop.permute.xlu1 %1075 }
 0x1f7   : > { %6996 = vst [vmem:[#allocation66_spill] sm:$0xff] %v4719_v4  ;;  %6997 = vst [vmem:[#allocation67_spill] sm:$0xff] %v4721_v10  ;;  %v2994_v10 = vstv %s5580_s2  ;;  %s4162_s2 = smov 34  }
 0x1f8   : > { %v2997_v32 = vmul.f32 %v2994_v10, %v4385_v31  ;;  %v2996_v4 = vmul.f32 %v2994_v10, %v4383_v30 }
 0x1fa   : > { %v4723_v11 = vpop.permute.xlu0 %1116  ;;  %v4725_v12 = vpop.permute.xlu1 %1114 }
 0x1fb   : > { %6998 = vst [vmem:[#allocation68_spill] sm:$0xff] %v4723_v11  ;;  %6999 = vst [vmem:[#allocation69_spill] sm:$0xff] %v4725_v12 }
 0x1fe   : > { %v4727_v44 = vpop.permute.xlu0 %1137  ;;  %v4729_v36 = vpop.permute.xlu1 %1118 }
 0x1ff   : > { %7000 = vst [vmem:[#allocation70_spill] sm:$0xff] %v4727_v44  ;;  %7001 = vst [vmem:[#allocation71_spill] sm:$0xff] %v4729_v36 }
 0x202   : > { %v4731_v24 = vpop.permute.xlu0 %1141  ;;  %v4733_v29 = vpop.permute.xlu1 %1139 }
 0x203   : > { %7002 = vst [vmem:[#allocation72_spill] sm:$0xff] %v4731_v24  ;;  %7003 = vst [vmem:[#allocation73_spill] sm:$0xff] %v4733_v29 }
 0x206   : > { %v4735_v13 = vpop.permute.xlu0 %1162  ;;  %v4737_v58 = vpop.permute.xlu1 %1160 }
 0x207   : > { %7004 = vst [vmem:[#allocation74_spill] sm:$0xff] %v4735_v13  ;;  %7005 = vst [vmem:[#allocation75_spill] sm:$0xff] %v4737_v58 }
 0x20a   : > { %v4739_v15 = vpop.permute.xlu0 %1180  ;;  %v4741_v57 = vpop.permute.xlu1 %1164 }
 0x20b   : > { %7006 = vst [vmem:[#allocation76_spill] sm:$0xff] %v4739_v15  ;;  %7007 = vst [vmem:[#allocation77_spill] sm:$0xff] %v4741_v57 }
 0x20e   : > { %v4743_v38 = vpop.permute.xlu0 %1184  ;;  %v4745_v11 = vpop.permute.xlu1 %1182 }
 0x20f   : > { %7008 = vst [vmem:[#allocation78_spill] sm:$0xff] %v4743_v38  ;;  %7009 = vst [vmem:[#allocation79_spill] sm:$0xff] %v4745_v11 }
 0x212   : > { %v4747_v12 = vpop.permute.xlu0 %1205  ;;  %v4749_v44 = vpop.permute.xlu1 %1203 }
 0x213   : > { %7010 = vst [vmem:[#allocation80_spill] sm:$0xff] %v4747_v12  ;;  %7011 = vst [vmem:[#allocation81_spill] sm:$0xff] %v4749_v44 }
 0x216   : > { %v4751_v36 = vpop.permute.xlu0 %1226  ;;  %v4753_v24 = vpop.permute.xlu1 %1207 }
 0x217   : > { %7012 = vst [vmem:[#allocation82_spill] sm:$0xff] %v4751_v36  ;;  %7013 = vst [vmem:[#allocation83_spill] sm:$0xff] %v4753_v24 }
 0x21a   : > { %v4755_v29 = vpop.permute.xlu0 %1230  ;;  %v4757_v13 = vpop.permute.xlu1 %1228 }
 0x21b   : > { %7014 = vst [vmem:[#allocation84_spill] sm:$0xff] %v4755_v29  ;;  %7015 = vst [vmem:[#allocation85_spill] sm:$0xff] %v4757_v13 }
 0x21e   : > { %v4759_v58 = vpop.permute.xlu0 %1251  ;;  %v4761_v15 = vpop.permute.xlu1 %1249 }
 0x21f   : > { %7016 = vst [vmem:[#allocation86_spill] sm:$0xff] %v4759_v58  ;;  %7017 = vst [vmem:[#allocation87_spill] sm:$0xff] %v4761_v15 }
 0x222   : > { %v4763_v57 = vpop.permute.xlu0 %1269  ;;  %v4765_v38 = vpop.permute.xlu1 %1253 }
 0x223   : > { %7018 = vst [vmem:[#allocation88_spill] sm:$0xff] %v4763_v57  ;;  %7019 = vst [vmem:[#allocation89_spill] sm:$0xff] %v4765_v38 }
 0x226   : > { %v4767_v11 = vpop.permute.xlu0 %1273  ;;  %v4769_v12 = vpop.permute.xlu1 %1271 }
 0x227   : > { %7020 = vst [vmem:[#allocation90_spill] sm:$0xff] %v4767_v11  ;;  %7021 = vst [vmem:[#allocation91_spill] sm:$0xff] %v4769_v12 }
 0x22a   : > { %v4771_v44 = vpop.permute.xlu0 %1294  ;;  %v4773_v36 = vpop.permute.xlu1 %1292 }
 0x22b   : > { %7022 = vst [vmem:[#allocation92_spill] sm:$0xff] %v4771_v44  ;;  %7023 = vst [vmem:[#allocation93_spill] sm:$0xff] %v4773_v36  ;;  %v1363_v44 = vstv %s3794_s13  ;;  %s3809_s13 = sld [smem:[#allocation10 + $0x19e]] }
 0x22e   : > { %v4775_v24 = vpop.permute.xlu0 %1315  ;;  %v4777_v29 = vpop.permute.xlu1 %1296 }
 0x22f   : > { %7024 = vst [vmem:[#allocation94_spill] sm:$0xff] %v4775_v24  ;;  %7025 = vst [vmem:[#allocation95_spill] sm:$0xff] %v4777_v29 }
 0x232   : > { %v4779_v13 = vpop.permute.xlu0 %1319  ;;  %v4781_v58 = vpop.permute.xlu1 %1317 }
 0x233   : > { %7026 = vst [vmem:[#allocation96_spill] sm:$0xff] %v4779_v13  ;;  %7027 = vst [vmem:[#allocation97_spill] sm:$0xff] %v4781_v58 }
 0x236   : > { %v4783_v57 = vpop.permute.xlu0 %1340  ;;  %v4785_v38 = vpop.permute.xlu1 %1338 }
 0x237   : > { %7028 = vst [vmem:[#allocation98_spill] sm:$0xff] %v4783_v57  ;;  %7029 = vst [vmem:[#allocation99_spill] sm:$0xff] %v4785_v38  ;;  %v1384_v38 = vstv %s3795_s14  ;;  %s3810_s14 = sld [smem:[#allocation10 + $0x4]] }
 0x23a   : > { %v1351_v11 = vpop.permute.xlu0 %1350  ;;  %v4787_v12 = vpop.permute.xlu1 %1342 }
 0x23b   : > { %7030 = vst [vmem:[#allocation100_spill] sm:$0xff] %v4787_v12  ;;  %v4790_v36 = vmul.f32 %v1351_v11, %v4379_v27 }
 0x23d   : > { %v1364_v24 = vmul.f32 %v1363_v44, %v4790_v36  ;;  %v1385_v19 = vmul.f32 %v1384_v38, %v4790_v36 }
 0x23e   : > { %v1353_v13 = vpop.permute.xlu1 %1352 }
 0x23f   : > { %v1355_v29 = vsel %vm1354_vm5, %v1351_v11, %v1353_v13  ;;  %v4794_v58 = vmul.f32 %v1353_v13, %v4385_v31  ;;  %1370 = vrot.lane.b32.xlu0 %v1364_v24, %s4155_s27  ;;  %v1408_v24 = vmul.f32 %v1407_v2, %v4790_v36  ;;  %v1391_v11 = vrot.slane %v1385_v19, 1 }
 0x240   : > { %v4798_v57 = vmul.f32 %v1355_v29, %v4383_v30 }
 0x241   : > { %v1366_v12 = vmul.f32 %v1363_v44, %v4794_v58  ;;  %v1387_v29 = vmul.f32 %v1384_v38, %v4794_v58  ;;  %v1410_v18 = vmul.f32 %v1407_v2, %v4794_v58 }
 0x242   : > { %v1365_v15 = vmul.f32 %v1363_v44, %v4798_v57  ;;  %v1386_v43 = vmul.f32 %v1384_v38, %v4798_v57  ;;  %v1414_v44 = vrot.slane %v1408_v24, 2  ;;  %v1409_v42 = vmul.f32 %v1407_v2, %v4798_v57 }
 0x243   : > { %1374 = vrot.lane.b32.xlu0 %v1366_v12, %s4155_s27  ;;  %v1393_v50 = vrot.slane %v1387_v29, 1  ;;  %v1453_v2 = vstv %s3798_s25  ;;  %s4156_s25 = smov 111  }
 0x244   : > { %1372 = vrot.lane.b32.xlu1 %v1365_v15, %s4155_s27  ;;  %v1392_v13 = vrot.slane %v1386_v43, 1  ;;  %v1430_v15 = vstv %s3797_s8  ;;  %v1416_v43 = vrot.slane %v1410_v18, 2  ;;  %v1415_v38 = vrot.slane %v1409_v42, 2  ;;  %s3812_s8 = sld [smem:[#allocation10 + $0x16]] }
 0x245   : > { %v1432_v19 = vmul.f32 %v1430_v15, %v4798_v57  ;;  %v1431_v12 = vmul.f32 %v1430_v15, %v4790_v36  ;;  %v1473_v18 = vstv %s3799_s29  ;;  %v1456_v29 = vmul.f32 %v1453_v2, %v4794_v58  ;;  %s3813_s29 = sld [smem:[#allocation10 + $0x1f]] }
 0x247   : > { %1396 = vrot.lane.b32.xlu0 %v1392_v13, %s4155_s27  ;;  %v1438_v13 = vrot.slane %v1432_v19, 3  ;;  %v1437_v24 = vrot.slane %v1431_v12, 3  ;;  %v1496_v19 = vstv %s3800_s5  ;;  %s3815_s5 = sld [smem:[#allocation10 + $0x8d]] }
 0x248   : > { %1394 = vrot.lane.b32.xlu1 %v1391_v11, %s4155_s27  ;;  %v1433_v11 = vmul.f32 %v1430_v15, %v4794_v58  ;;  %v1474_v15 = vmul.f32 %v1473_v18, %v4790_v36  ;;  %v1497_v12 = vmul.f32 %v1496_v19, %v4790_v36 }
 0x24a   : > { %v1439_v42 = vrot.slane %v1433_v11, 3  ;;  %v1503_v11 = vrot.slane %v1497_v12, 2 }
 0x24b   : > { %1417 = vrot.lane.b32.xlu0 %v1414_v44, %s4155_s27  ;;  %v1475_v44 = vmul.f32 %v1473_v18, %v4798_v57 }
 0x24c   : > { %1398 = vrot.lane.b32.xlu1 %v1393_v50, %s4155_s27  ;;  %v1454_v50 = vmul.f32 %v1453_v2, %v4790_v36 }
 0x24f   : > { %1421 = vrot.lane.b32.xlu0 %v1416_v43, %s4155_s27  ;;  %v1455_v43 = vmul.f32 %v1453_v2, %v4798_v57  ;;  %v1499_v2 = vmul.f32 %v1496_v19, %v4794_v58 }
 0x250   : > { %1419 = vrot.lane.b32.xlu1 %v1415_v38, %s4155_s27  ;;  %v1481_v38 = vrot.slane %v1475_v44, 1 }
 0x251   : > { %v1505_v44 = vrot.slane %v1499_v2, 2  ;;  %v1562_v2 = vstv %s3803_s12  ;;  %s3818_s12 = sld [smem:[#allocation10 + $0x104]] }
 0x253   : > { %1442 = vrot.lane.b32.xlu0 %v1438_v13, %s4155_s27  ;;  %v1480_v13 = vrot.slane %v1474_v15, 1 }
 0x254   : > { %1440 = vrot.lane.b32.xlu1 %v1437_v24, %s4155_s27  ;;  %v1476_v24 = vmul.f32 %v1473_v18, %v4794_v58 }
 0x257   : > { %1460 = vrot.lane.b32.xlu0 %v1454_v50, %s4155_s27  ;;  %v1482_v50 = vrot.slane %v1476_v24, 1 }
 0x258   : > { %1444 = vrot.lane.b32.xlu1 %v1439_v42, %s4155_s27  ;;  %v1498_v42 = vmul.f32 %v1496_v19, %v4798_v57  ;;  %v1542_v19 = vstv %s3802_s11  ;;  %s3817_s11 = sld [smem:[#allocation10 + $0x9f]] }
 0x259   : > { %v1543_v24 = vmul.f32 %v1542_v19, %v4790_v36 }
 0x25a   : > { %v1504_v18 = vrot.slane %v1498_v42, 2  ;;  %v1564_v42 = vmul.f32 %v1562_v2, %v4798_v57 }
 0x25b   : > { %1464 = vrot.lane.b32.xlu0 %v1456_v29, %s4155_s27  ;;  %v1519_v29 = vstv %s3801_s10  ;;  %s3816_s10 = sld [smem:[#allocation10 + $0x96]] }
 0x25c   : > { %1462 = vrot.lane.b32.xlu1 %v1455_v43, %s4155_s27  ;;  %v1521_v43 = vmul.f32 %v1519_v29, %v4798_v57  ;;  %v1520_v15 = vmul.f32 %v1519_v29, %v4790_v36 }
 0x25e   : > { %v1526_v12 = vrot.slane %v1520_v15, 3 }
 0x25f   : > { %1485 = vrot.lane.b32.xlu0 %v1481_v38, %s4155_s27  ;;  %v1527_v38 = vrot.slane %v1521_v43, 3  ;;  %v1585_v43 = vstv %s3804_s21  ;;  %s3819_s21 = sld [smem:[#allocation10 + $0x10d]] }
 0x260   : > { %1483 = vrot.lane.b32.xlu1 %v1480_v13, %s4155_s27  ;;  %v1522_v13 = vmul.f32 %v1519_v29, %v4794_v58  ;;  %v1563_v29 = vmul.f32 %v1562_v2, %v4790_v36  ;;  %v1586_v15 = vmul.f32 %v1585_v43, %v4790_v36 }
 0x263   : > { %1506 = vrot.lane.b32.xlu0 %v1503_v11, %s4155_s27  ;;  %v1528_v11 = vrot.slane %v1522_v13, 3  ;;  %v1592_v13 = vrot.slane %v1586_v15, 2 }
 0x264   : > { %1487 = vrot.lane.b32.xlu1 %v1482_v50, %s4155_s27  ;;  %v1545_v50 = vmul.f32 %v1542_v19, %v4794_v58 }
 0x267   : > { %1510 = vrot.lane.b32.xlu0 %v1505_v44, %s4155_s27  ;;  %v1544_v44 = vmul.f32 %v1542_v19, %v4798_v57  ;;  %v1588_v19 = vmul.f32 %v1585_v43, %v4794_v58 }
 0x268   : > { %1508 = vrot.lane.b32.xlu1 %v1504_v18, %s4155_s27  ;;  %v1570_v18 = vrot.slane %v1564_v42, 1 }
 0x269   : > { %v1594_v42 = vrot.slane %v1588_v19, 2  ;;  %v1651_v19 = vstv %s3807_s7  ;;  %s3822_s7 = sld [smem:[#allocation10 + $0x184]] }
 0x26b   : > { %1531 = vrot.lane.b32.xlu0 %v1527_v38, %s4155_s27  ;;  %v1569_v38 = vrot.slane %v1563_v29, 1 }
 0x26c   : > { %1529 = vrot.lane.b32.xlu1 %v1526_v12, %s4155_s27  ;;  %v1565_v12 = vmul.f32 %v1562_v2, %v4794_v58 }
 0x26f   : > { %1549 = vrot.lane.b32.xlu0 %v1543_v24, %s4155_s27  ;;  %v1571_v24 = vrot.slane %v1565_v12, 1 }
 0x270   : > { %1533 = vrot.lane.b32.xlu1 %v1528_v11, %s4155_s27  ;;  %v1587_v11 = vmul.f32 %v1585_v43, %v4798_v57  ;;  %v1631_v43 = vstv %s3806_s28  ;;  %s3821_s28 = sld [smem:[#allocation10 + $0x11f]] }
 0x271   : > { %v1632_v12 = vmul.f32 %v1631_v43, %v4790_v36 }
 0x272   : > { %v1593_v2 = vrot.slane %v1587_v11, 2  ;;  %v1653_v11 = vmul.f32 %v1651_v19, %v4798_v57 }
 0x273   : > { %1553 = vrot.lane.b32.xlu0 %v1545_v50, %s4155_s27  ;;  %v1608_v50 = vstv %s3805_s23  ;;  %s3820_s23 = sld [smem:[#allocation10 + $0x116]] }
 0x274   : > { %1551 = vrot.lane.b32.xlu1 %v1544_v44, %s4155_s27  ;;  %v1610_v44 = vmul.f32 %v1608_v50, %v4798_v57  ;;  %v1609_v29 = vmul.f32 %v1608_v50, %v4790_v36 }
 0x276   : > { %v1615_v15 = vrot.slane %v1609_v29, 3 }
 0x277   : > { %1574 = vrot.lane.b32.xlu0 %v1570_v18, %s4155_s27  ;;  %v1616_v18 = vrot.slane %v1610_v44, 3  ;;  %v1674_v44 = vstv %s3808_s9  ;;  %s3823_s9 = sld [smem:[#allocation10 + $0x18d]] }
 0x278   : > { %1572 = vrot.lane.b32.xlu1 %v1569_v38, %s4155_s27  ;;  %v1611_v38 = vmul.f32 %v1608_v50, %v4794_v58  ;;  %v1652_v50 = vmul.f32 %v1651_v19, %v4790_v36  ;;  %v1675_v29 = vmul.f32 %v1674_v44, %v4790_v36 }
 0x27b   : > { %1595 = vrot.lane.b32.xlu0 %v1592_v13, %s4155_s27  ;;  %v1617_v13 = vrot.slane %v1611_v38, 3  ;;  %v1681_v38 = vrot.slane %v1675_v29, 2 }
 0x27c   : > { %1576 = vrot.lane.b32.xlu1 %v1571_v24, %s4155_s27  ;;  %v1634_v24 = vmul.f32 %v1631_v43, %v4794_v58 }
 0x27f   : > { %1599 = vrot.lane.b32.xlu0 %v1594_v42, %s4155_s27  ;;  %v1633_v42 = vmul.f32 %v1631_v43, %v4798_v57  ;;  %v1677_v43 = vmul.f32 %v1674_v44, %v4794_v58 }
 0x280   : > { %1597 = vrot.lane.b32.xlu1 %v1593_v2, %s4155_s27  ;;  %v1659_v2 = vrot.slane %v1653_v11, 1 }
 0x281   : > { %v1683_v11 = vrot.slane %v1677_v43, 2 }
 0x283   : > { %1620 = vrot.lane.b32.xlu0 %v1616_v18, %s4155_s27  ;;  %v1658_v18 = vrot.slane %v1652_v50, 1 }
 0x284   : > { %1618 = vrot.lane.b32.xlu1 %v1615_v15, %s4155_s27  ;;  %v1654_v15 = vmul.f32 %v1651_v19, %v4794_v58 }
 0x287   : > { %1638 = vrot.lane.b32.xlu0 %v1632_v12, %s4155_s27  ;;  %v1660_v12 = vrot.slane %v1654_v15, 1 }
 0x288   : > { %1622 = vrot.lane.b32.xlu1 %v1617_v13, %s4155_s27  ;;  %v1676_v13 = vmul.f32 %v1674_v44, %v4798_v57  ;;  %v1720_v44 = vstv %s3810_s14  ;;  %s3825_s14 = sld [smem:[#allocation10 + $0x19f]] }
 0x28a   : > { %v1682_v19 = vrot.slane %v1676_v13, 2  ;;  %v1764_v13 = vstv %s3812_s8  ;;  %s3826_s8 = sld [smem:[#allocation10 + $0x5]] }
 0x28b   : > { %1642 = vrot.lane.b32.xlu0 %v1634_v24, %s4155_s27  ;;  %v1697_v24 = vstv %s3809_s13  ;;  %s3824_s13 = sld [smem:[#allocation10 + $0x196]] }
 0x28c   : > { %1640 = vrot.lane.b32.xlu1 %v1633_v42, %s4155_s27  ;;  %v1699_v42 = vmul.f32 %v1697_v24, %v4798_v57  ;;  %v1698_v50 = vmul.f32 %v1697_v24, %v4790_v36  ;;  %v1721_v57 = vmul.f32 %v1720_v44, %v4379_v27  ;;  %v1741_v36 = vstv %s3811_s26  ;;  %s4157_s26 = smov 18  }
 0x28d   : > { %v1743_v43 = vmul.f32 %v1741_v36, %v4383_v30 }
 0x28e   : > { %v1704_v29 = vrot.slane %v1698_v50, 3 }
 0x28f   : > { %1663 = vrot.lane.b32.xlu0 %v1659_v2, %s4155_s27  ;;  %v1705_v2 = vrot.slane %v1699_v42, 3 }
 0x290   : > { %1661 = vrot.lane.b32.xlu1 %v1658_v18, %s4155_s27  ;;  %v1700_v18 = vmul.f32 %v1697_v24, %v4794_v58  ;;  %v1722_v58 = vmul.f32 %v1720_v44, %v4383_v30  ;;  %v1749_v24 = vrot.slane %v1743_v43, 1 }
 0x292   : > { %v1706_v15 = vrot.slane %v1700_v18, 3  ;;  %v1787_v18 = vstv %s3813_s29  ;;  %s3828_s29 = sld [smem:[#allocation10 + $0x17]] }
 0x293   : > { %1684 = vrot.lane.b32.xlu0 %v1681_v38, %s4155_s27  ;;  %v1723_v38 = vmul.f32 %v1720_v44, %v4385_v31  ;;  %v1766_v44 = vmul.f32 %v1764_v13, %v4383_v30 }
 0x294   : > { %1665 = vrot.lane.b32.xlu1 %v1660_v12, %s4155_s27  ;;  %v1742_v12 = vmul.f32 %v1741_v36, %v4379_v27 }
 0x296   : > { %v1748_v42 = vrot.slane %v1742_v12, 1 }
 0x297   : > { %1688 = vrot.lane.b32.xlu0 %v1683_v11, %s4155_s27  ;;  %v1765_v11 = vmul.f32 %v1764_v13, %v4379_v27 }
 0x298   : > { %1686 = vrot.lane.b32.xlu1 %v1682_v19, %s4155_s27  ;;  %v1744_v19 = vmul.f32 %v1741_v36, %v4385_v31  ;;  %v1772_v36 = vrot.slane %v1766_v44, 2 }
 0x299   : > { %v1771_v50 = vrot.slane %v1765_v11, 2 }
 0x29b   : > { %1709 = vrot.lane.b32.xlu0 %v1705_v2, %s4155_s27  ;;  %v1767_v2 = vmul.f32 %v1764_v13, %v4385_v31 }
 0x29c   : > { %1707 = vrot.lane.b32.xlu1 %v1704_v29, %s4155_s27  ;;  %v1750_v29 = vrot.slane %v1744_v19, 1 }
 0x29f   : > { %1727 = vrot.lane.b32.xlu0 %v1721_v57, %s4156_s25  ;;  %v1773_v57 = vrot.slane %v1767_v2, 2  ;;  %v1830_v2 = vstv %s3815_s5  ;;  %s3829_s5 = sld [smem:[#allocation10 + $0x20]] }
 0x2a0   : > { %1711 = vrot.lane.b32.xlu1 %v1706_v15, %s4155_s27  ;;  %s3814_s27 = sld [smem:[#allocation10 + $0x84]]  ;;  %v1789_v15 = vmul.f32 %v1787_v18, %v4383_v30 }
 0x2a3   : > { %1731 = vrot.lane.b32.xlu0 %v1723_v38, %s4156_s25  ;;  %v1788_v38 = vmul.f32 %v1787_v18, %v4379_v27 }
 0x2a4   : > { %1729 = vrot.lane.b32.xlu1 %v1722_v58, %s4156_s25  ;;  %v1795_v58 = vrot.slane %v1789_v15, 3 }
 0x2a5   : > { %v1794_v12 = vrot.slane %v1788_v38, 3  ;;  %v1853_v38 = vstv %s3816_s10  ;;  %s3830_s10 = sld [smem:[#allocation10 + $0x85]] }
 0x2a6   : > { %v1810_v13 = vstv %s3814_s27  ;;  %v1856_v62 = vmul.f32 %v1853_v38, %v4385_v31  ;;  %s4158_s27 = smov 110  }
 0x2a7   : > { %1753 = vrot.lane.b32.xlu0 %v1749_v24, %s4156_s25  ;;  %v1790_v24 = vmul.f32 %v1787_v18, %v4385_v31  ;;  %v1813_v44 = vmul.f32 %v1810_v13, %v4385_v31  ;;  %v1832_v18 = vmul.f32 %v1830_v2, %v4383_v30  ;;  %v1812_v15 = vmul.f32 %v1810_v13, %v4383_v30 }
 0x2a8   : > { %1751 = vrot.lane.b32.xlu1 %v1748_v42, %s4156_s25  ;;  %v1811_v42 = vmul.f32 %v1810_v13, %v4379_v27 }
 0x2ab   : > { %1774 = vrot.lane.b32.xlu0 %v1771_v50, %s4156_s25  ;;  %v1796_v50 = vrot.slane %v1790_v24, 3  ;;  %v1854_v24 = vmul.f32 %v1853_v38, %v4379_v27 }
 0x2ac   : > { %1755 = vrot.lane.b32.xlu1 %v1750_v29, %s4156_s25 }
 0x2af   : > { %1778 = vrot.lane.b32.xlu0 %v1773_v57, %s4156_s25 }
 0x2b0   : > { %1776 = vrot.lane.b32.xlu1 %v1772_v36, %s4156_s25  ;;  %v1831_v36 = vmul.f32 %v1830_v2, %v4379_v27 }
 0x2b1   : > { %v4914_v43 = vpop.permute.xlu0 %1370 }
 0x2b2   : > { %7031 = vst [vmem:[#allocation101_spill] sm:$0xff] %v4914_v43 }
 0x2b3   : > { %1799 = vrot.lane.b32.xlu0 %v1795_v58, %s4156_s25 }
 0x2b4   : > { %1797 = vrot.lane.b32.xlu1 %v1794_v12, %s4156_s25  ;;  %v1838_v12 = vrot.slane %v1832_v18, 1  ;;  %v1855_v18 = vmul.f32 %v1853_v38, %v4383_v30 }
 0x2b5   : > { %v4919_v11 = vpop.permute.xlu0 %1374 }
 0x2b6   : > { %7032 = vst [vmem:[#allocation102_spill] sm:$0xff] %v4919_v11  ;;  %v4922_v19 = vpop.permute.xlu1 %1372  ;;  %v1833_v11 = vmul.f32 %v1830_v2, %v4385_v31 }
 0x2b7   : > { %7033 = vst [vmem:[#allocation103_spill] sm:$0xff] %v4922_v19  ;;  %1817 = vrot.lane.b32.xlu0 %v1811_v42, %s4156_s25  ;;  %v5664_v19 = vstv %s5606_s16  ;;  %s4163_s16 = smov 94  }
 0x2b8   : > { %1801 = vrot.lane.b32.xlu1 %v1796_v50, %s4156_s25  ;;  %v1837_v50 = vrot.slane %v1831_v36, 1  ;;  %v1876_v36 = vstv %s3817_s11  ;;  %s3831_s11 = sld [smem:[#allocation10 + $0x8e]] }
 0x2b9   : > { %v4926_v29 = vpop.permute.xlu0 %1396 }
 0x2ba   : > { %7034 = vst [vmem:[#allocation104_spill] sm:$0xff] %v4926_v29  ;;  %v4930_v57 = vpop.permute.xlu1 %1394 }
 0x2bb   : > { %7035 = vst [vmem:[#allocation105_spill] sm:$0xff] %v4930_v57  ;;  %1821 = vrot.lane.b32.xlu0 %v1813_v44, %s4156_s25  ;;  %v1860_v44 = vrot.slane %v1854_v24, 2  ;;  %v1861_v24 = vrot.slane %v1855_v18, 2 }
 0x2bc   : > { %1819 = vrot.lane.b32.xlu1 %v1812_v15, %s4156_s25 }
 0x2bd   : > { %v4936_v58 = vpop.permute.xlu0 %1417 }
 0x2be   : > { %7036 = vst [vmem:[#allocation106_spill] sm:$0xff] %v4936_v58  ;;  %v4939_v42 = vpop.permute.xlu1 %1398  ;;  %v1839_v58 = vrot.slane %v1833_v11, 1 }
 0x2bf   : > { %7037 = vst [vmem:[#allocation107_spill] sm:$0xff] %v4939_v42  ;;  %1842 = vrot.lane.b32.xlu0 %v1838_v12, %s4156_s25  ;;  %v1862_v12 = vrot.slane %v1856_v62, 2  ;;  %v1877_v42 = vmul.f32 %v1876_v36, %v4379_v27  ;;  %v1879_v62 = vmul.f32 %v1876_v36, %v4385_v31 }
 0x2c0   : > { %1840 = vrot.lane.b32.xlu1 %v1837_v50, %s4156_s25  ;;  %v1878_v50 = vmul.f32 %v1876_v36, %v4383_v30 }
 0x2c1   : > { %v4944_v13 = vpop.permute.xlu0 %1421 }
 0x2c2   : > { %7038 = vst [vmem:[#allocation108_spill] sm:$0xff] %v4944_v13  ;;  %v4947_v15 = vpop.permute.xlu1 %1419  ;;  %v1884_v38 = vrot.slane %v1878_v50, 3  ;;  %v1919_v50 = vstv %s3819_s21  ;;  %s3833_s21 = sld [smem:[#allocation10 + $0xa0]] }
 0x2c3   : > { %7039 = vst [vmem:[#allocation109_spill] sm:$0xff] %v4947_v15  ;;  %1863 = vrot.lane.b32.xlu0 %v1860_v44, %s4156_s25 }
 0x2c4   : > { %1844 = vrot.lane.b32.xlu1 %v1839_v58, %s4156_s25  ;;  %v1883_v58 = vrot.slane %v1877_v42, 3 }
 0x2c5   : > { %v4952_v2 = vpop.permute.xlu0 %1442 }
 0x2c6   : > { %7040 = vst [vmem:[#allocation110_spill] sm:$0xff] %v4952_v2  ;;  %v4955_v13 = vpop.permute.xlu1 %1440  ;;  %v1899_v2 = vstv %s3818_s12  ;;  %s3832_s12 = sld [smem:[#allocation10 + $0x97]] }
 0x2c7   : > { %7041 = vst [vmem:[#allocation111_spill] sm:$0xff] %v4955_v13  ;;  %1867 = vrot.lane.b32.xlu0 %v1862_v12, %s4156_s25  ;;  %v1900_v12 = vmul.f32 %v1899_v2, %v4379_v27  ;;  %v1902_v36 = vmul.f32 %v1899_v2, %v4385_v31 }
 0x2c8   : > { %1865 = vrot.lane.b32.xlu1 %v1861_v24, %s4156_s25  ;;  %v1885_v24 = vrot.slane %v1879_v62, 3 }
 0x2c9   : > { %v4960_v11 = vpop.permute.xlu0 %1460 }
 0x2ca   : > { %7042 = vst [vmem:[#allocation112_spill] sm:$0xff] %v4960_v11  ;;  %v4962_v44 = vpop.permute.xlu1 %1444 }
 0x2cb   : > { %7043 = vst [vmem:[#allocation113_spill] sm:$0xff] %v4962_v44  ;;  %1888 = vrot.lane.b32.xlu0 %v1884_v38, %s4156_s25  ;;  %v1921_v38 = vmul.f32 %v1919_v50, %v4383_v30  ;;  %v1942_v44 = vstv %s3820_s23  ;;  %s3834_s23 = sld [smem:[#allocation10 + $0x105]] }
 0x2cc   : > { %1886 = vrot.lane.b32.xlu1 %v1883_v58, %s4156_s25  ;;  %v1901_v58 = vmul.f32 %v1899_v2, %v4383_v30  ;;  %v1945_v15 = vmul.f32 %v1942_v44, %v4385_v31 }
 0x2cd   : > { %v4967_v18 = vpop.permute.xlu0 %1464 }
 0x2ce   : > { %7044 = vst [vmem:[#allocation114_spill] sm:$0xff] %v4967_v18  ;;  %v4970_v13 = vpop.permute.xlu1 %1462  ;;  %v1920_v18 = vmul.f32 %v1919_v50, %v4379_v27 }
 0x2cf   : > { %7045 = vst [vmem:[#allocation115_spill] sm:$0xff] %v4970_v13  ;;  %1906 = vrot.lane.b32.xlu0 %v1900_v12, %s4156_s25  ;;  %v1927_v12 = vrot.slane %v1921_v38, 1  ;;  %v1944_v38 = vmul.f32 %v1942_v44, %v4383_v30 }
 0x2d0   : > { %1890 = vrot.lane.b32.xlu1 %v1885_v24, %s4156_s25  ;;  %v1943_v24 = vmul.f32 %v1942_v44, %v4379_v27  ;;  %v1926_v13 = vrot.slane %v1920_v18, 1  ;;  %v1965_v18 = vstv %s3821_s28  ;;  %s3835_s28 = sld [smem:[#allocation10 + $0x10e]] }
 0x2d1   : > { %v4974_v42 = vpop.permute.xlu0 %1485 }
 0x2d2   : > { %7046 = vst [vmem:[#allocation116_spill] sm:$0xff] %v4974_v42  ;;  %v4978_v11 = vpop.permute.xlu1 %1483 }
 0x2d3   : > { %7047 = vst [vmem:[#allocation117_spill] sm:$0xff] %v4978_v11  ;;  %1910 = vrot.lane.b32.xlu0 %v1902_v36, %s4156_s25  ;;  %v1922_v11 = vmul.f32 %v1919_v50, %v4385_v31  ;;  %v1949_v36 = vrot.slane %v1943_v24, 2  ;;  %v1950_v24 = vrot.slane %v1944_v38, 2 }
 0x2d4   : > { %1908 = vrot.lane.b32.xlu1 %v1901_v58, %s4156_s25 }
 0x2d5   : > { %v4984_v62 = vpop.permute.xlu0 %1506 }
 0x2d6   : > { %7048 = vst [vmem:[#allocation118_spill] sm:$0xff] %v4984_v62  ;;  %v4987_v42 = vpop.permute.xlu1 %1487  ;;  %v1928_v62 = vrot.slane %v1922_v11, 1 }
 0x2d7   : > { %7049 = vst [vmem:[#allocation119_spill] sm:$0xff] %v4987_v42  ;;  %1931 = vrot.lane.b32.xlu0 %v1927_v12, %s4156_s25  ;;  %v1951_v12 = vrot.slane %v1945_v15, 2  ;;  %v1966_v42 = vmul.f32 %v1965_v18, %v4379_v27  ;;  %v1968_v15 = vmul.f32 %v1965_v18, %v4385_v31 }
 0x2d8   : > { %1929 = vrot.lane.b32.xlu1 %v1926_v13, %s4156_s25  ;;  %v1967_v13 = vmul.f32 %v1965_v18, %v4383_v30 }
 0x2d9   : > { %v4992_v2 = vpop.permute.xlu0 %1510 }
 0x2da   : > { %7050 = vst [vmem:[#allocation120_spill] sm:$0xff] %v4992_v2  ;;  %v4995_v58 = vpop.permute.xlu1 %1508  ;;  %v1973_v44 = vrot.slane %v1967_v13, 3  ;;  %v2008_v13 = vstv %s3823_s9  ;;  %s3837_s9 = sld [smem:[#allocation10 + $0x120]] }
 0x2db   : > { %7051 = vst [vmem:[#allocation121_spill] sm:$0xff] %v4995_v58  ;;  %1952 = vrot.lane.b32.xlu0 %v1949_v36, %s4156_s25 }
 0x2dc   : > { %1933 = vrot.lane.b32.xlu1 %v1928_v62, %s4156_s25  ;;  %v1972_v62 = vrot.slane %v1966_v42, 3 }
 0x2dd   : > { %v5000_v50 = vpop.permute.xlu0 %1531 }
 0x2de   : > { %7052 = vst [vmem:[#allocation122_spill] sm:$0xff] %v5000_v50  ;;  %v5003_v2 = vpop.permute.xlu1 %1529  ;;  %v1988_v50 = vstv %s3822_s7  ;;  %s3836_s7 = sld [smem:[#allocation10 + $0x117]] }
 0x2df   : > { %7053 = vst [vmem:[#allocation123_spill] sm:$0xff] %v5003_v2  ;;  %1956 = vrot.lane.b32.xlu0 %v1951_v12, %s4156_s25  ;;  %v1989_v12 = vmul.f32 %v1988_v50, %v4379_v27  ;;  %v1991_v18 = vmul.f32 %v1988_v50, %v4385_v31 }
 0x2e0   : > { %1954 = vrot.lane.b32.xlu1 %v1950_v24, %s4156_s25  ;;  %v1974_v24 = vrot.slane %v1968_v15, 3 }
 0x2e1   : > { %v5008_v11 = vpop.permute.xlu0 %1549 }
 0x2e2   : > { %7054 = vst [vmem:[#allocation124_spill] sm:$0xff] %v5008_v11  ;;  %v5010_v36 = vpop.permute.xlu1 %1533 }
 0x2e3   : > { %7055 = vst [vmem:[#allocation125_spill] sm:$0xff] %v5010_v36  ;;  %1977 = vrot.lane.b32.xlu0 %v1973_v44, %s4156_s25  ;;  %v2010_v44 = vmul.f32 %v2008_v13, %v4383_v30  ;;  %v2031_v36 = vstv %s3824_s13  ;;  %s3838_s13 = sld [smem:[#allocation10 + $0x185]] }
 0x2e4   : > { %1975 = vrot.lane.b32.xlu1 %v1972_v62, %s4156_s25  ;;  %v1990_v62 = vmul.f32 %v1988_v50, %v4383_v30  ;;  %v2034_v58 = vmul.f32 %v2031_v36, %v4385_v31 }
 0x2e5   : > { %v5015_v38 = vpop.permute.xlu0 %1553 }
 0x2e6   : > { %7056 = vst [vmem:[#allocation126_spill] sm:$0xff] %v5015_v38  ;;  %v5018_v2 = vpop.permute.xlu1 %1551  ;;  %v2009_v38 = vmul.f32 %v2008_v13, %v4379_v27 }
 0x2e7   : > { %7057 = vst [vmem:[#allocation127_spill] sm:$0xff] %v5018_v2  ;;  %1995 = vrot.lane.b32.xlu0 %v1989_v12, %s4156_s25  ;;  %v2016_v12 = vrot.slane %v2010_v44, 1  ;;  %v2033_v44 = vmul.f32 %v2031_v36, %v4383_v30 }
 0x2e8   : > { %1979 = vrot.lane.b32.xlu1 %v1974_v24, %s4156_s25  ;;  %v2032_v24 = vmul.f32 %v2031_v36, %v4379_v27  ;;  %v2015_v2 = vrot.slane %v2009_v38, 1 }
 0x2e9   : > { %v5022_v42 = vpop.permute.xlu0 %1574 }
 0x2ea   : > { %7058 = vst [vmem:[#allocation128_spill] sm:$0xff] %v5022_v42  ;;  %v5026_v11 = vpop.permute.xlu1 %1572 }
 0x2eb   : > { %7059 = vst [vmem:[#allocation129_spill] sm:$0xff] %v5026_v11  ;;  %1999 = vrot.lane.b32.xlu0 %v1991_v18, %s4156_s25  ;;  %v2011_v11 = vmul.f32 %v2008_v13, %v4385_v31  ;;  %v2038_v18 = vrot.slane %v2032_v24, 2  ;;  %v2040_v13 = vrot.slane %v2034_v58, 2  ;;  %v2039_v24 = vrot.slane %v2033_v44, 2 }
 0x2ec   : > { %1997 = vrot.lane.b32.xlu1 %v1990_v62, %s4156_s25 }
 0x2ed   : > { %v5032_v15 = vpop.permute.xlu0 %1595 }
 0x2ee   : > { %7060 = vst [vmem:[#allocation130_spill] sm:$0xff] %v5032_v15  ;;  %v5035_v42 = vpop.permute.xlu1 %1576  ;;  %v2017_v15 = vrot.slane %v2011_v11, 1 }
 0x2ef   : > { %7061 = vst [vmem:[#allocation131_spill] sm:$0xff] %v5035_v42  ;;  %2020 = vrot.lane.b32.xlu0 %v2016_v12, %s4156_s25  ;;  %v2054_v42 = vstv %s3825_s14  ;;  %s3839_s14 = sld [smem:[#allocation10 + $0x18e]] }
 0x2f0   : > { %2018 = vrot.lane.b32.xlu1 %v2015_v2, %s4156_s25  ;;  %v2056_v2 = vmul.f32 %v2054_v42, %v4383_v30 }
 0x2f1   : > { %v5040_v50 = vpop.permute.xlu0 %1599 }
 0x2f2   : > { %7062 = vst [vmem:[#allocation132_spill] sm:$0xff] %v5040_v50  ;;  %v5043_v62 = vpop.permute.xlu1 %1597  ;;  %v2055_v50 = vmul.f32 %v2054_v42, %v4379_v27  ;;  %v2062_v36 = vrot.slane %v2056_v2, 3 }
 0x2f3   : > { %7063 = vst [vmem:[#allocation133_spill] sm:$0xff] %v5043_v62  ;;  %2041 = vrot.lane.b32.xlu0 %v2038_v18, %s4156_s25 }
 0x2f4   : > { %2022 = vrot.lane.b32.xlu1 %v2017_v15, %s4156_s25  ;;  %v2061_v15 = vrot.slane %v2055_v50, 3 }
 0x2f5   : > { %v5048_v38 = vpop.permute.xlu0 %1620 }
 0x2f6   : > { %7064 = vst [vmem:[#allocation134_spill] sm:$0xff] %v5048_v38  ;;  %v5051_v12 = vpop.permute.xlu1 %1618  ;;  %v2057_v38 = vmul.f32 %v2054_v42, %v4385_v31 }
 0x2f7   : > { %7065 = vst [vmem:[#allocation135_spill] sm:$0xff] %v5051_v12  ;;  %2045 = vrot.lane.b32.xlu0 %v2040_v13, %s4156_s25 }
 0x2f8   : > { %2043 = vrot.lane.b32.xlu1 %v2039_v24, %s4156_s25  ;;  %v2063_v12 = vrot.slane %v2057_v38, 3 }
 0x2f9   : > { %v5056_v11 = vpop.permute.xlu0 %1638 }
 0x2fa   : > { %7066 = vst [vmem:[#allocation136_spill] sm:$0xff] %v5056_v11  ;;  %v5058_v18 = vpop.permute.xlu1 %1622 }
 0x2fb   : > { %7067 = vst [vmem:[#allocation137_spill] sm:$0xff] %v5058_v18  ;;  %2066 = vrot.lane.b32.xlu0 %v2062_v36, %s4156_s25 }
 0x2fc   : > { %2064 = vrot.lane.b32.xlu1 %v2061_v15, %s4156_s25 }
 0x2fd   : > { %v5063_v58 = vpop.permute.xlu0 %1642 }
 0x2fe   : > { %7068 = vst [vmem:[#allocation138_spill] sm:$0xff] %v5063_v58  ;;  %v5065_v44 = vpop.permute.xlu1 %1640 }
 0x2ff   : > { %7069 = vst [vmem:[#allocation139_spill] sm:$0xff] %v5065_v44  ;;  %2076 = vrot.lane.b32.xlu0 %v4344_v6, %s4157_s26 }
 0x300   : > { %2068 = vrot.lane.b32.xlu1 %v2063_v12, %s4156_s25  ;;  %s3827_s25 = sld [smem:[#allocation10 + $0xe]] }
 0x301   : > { %v5069_v13 = vpop.permute.xlu0 %1663 }
 0x302   : > { %7070 = vst [vmem:[#allocation140_spill] sm:$0xff] %v5069_v13  ;;  %v5071_v2 = vpop.permute.xlu1 %1661 }
 0x303   : > { %7071 = vst [vmem:[#allocation141_spill] sm:$0xff] %v5071_v2 }
 0x304   : > { %2078 = vrot.lane.b32.xlu1 %v4341_v5, %s4157_s26  ;;  %s3840_s26 = sld [smem:[#allocation10 + $0x197]] }
 0x305   : > { %v5074_v42 = vpop.permute.xlu0 %1684 }
 0x306   : > { %7072 = vst [vmem:[#allocation142_spill] sm:$0xff] %v5074_v42  ;;  %v5076_v50 = vpop.permute.xlu1 %1665 }
 0x307   : > { %7073 = vst [vmem:[#allocation143_spill] sm:$0xff] %v5076_v50 }
 0x309   : > { %v5078_v24 = vpop.permute.xlu0 %1688 }
 0x30a   : > { %7074 = vst [vmem:[#allocation144_spill] sm:$0xff] %v5078_v24  ;;  %v5080_v36 = vpop.permute.xlu1 %1686 }
 0x30b   : > { %7075 = vst [vmem:[#allocation145_spill] sm:$0xff] %v5080_v36 }
 0x30d   : > { %v5082_v38 = vpop.permute.xlu0 %1709 }
 0x30e   : > { %7076 = vst [vmem:[#allocation146_spill] sm:$0xff] %v5082_v38  ;;  %v5084_v15 = vpop.permute.xlu1 %1707 }
 0x30f   : > { %7077 = vst [vmem:[#allocation147_spill] sm:$0xff] %v5084_v15 }
 0x311   : > { %v5086_v58 = vpop.permute.xlu0 %1727 }
 0x312   : > { %7078 = vst [vmem:[#allocation148_spill] sm:$0xff] %v5086_v58  ;;  %v5088_v12 = vpop.permute.xlu1 %1711 }
 0x313   : > { %7079 = vst [vmem:[#allocation149_spill] sm:$0xff] %v5088_v12 }
 0x315   : > { %v5090_v13 = vpop.permute.xlu0 %1731 }
 0x316   : > { %7080 = vst [vmem:[#allocation150_spill] sm:$0xff] %v5090_v13  ;;  %v5092_v2 = vpop.permute.xlu1 %1729 }
 0x317   : > { %7081 = vst [vmem:[#allocation151_spill] sm:$0xff] %v5092_v2  ;;  %v2133_v2 = vstv %s3828_s29  ;;  %s3842_s29 = sld [smem:[#allocation10 + $0x6]] }
 0x319   : > { %v5094_v11 = vpop.permute.xlu0 %1753 }
 0x31a   : > { %7082 = vst [vmem:[#allocation152_spill] sm:$0xff] %v5094_v11  ;;  %v5096_v42 = vpop.permute.xlu1 %1751 }
 0x31b   : > { %7083 = vst [vmem:[#allocation153_spill] sm:$0xff] %v5096_v42 }
 0x31d   : > { %v5098_v50 = vpop.permute.xlu0 %1774 }
 0x31e   : > { %7084 = vst [vmem:[#allocation154_spill] sm:$0xff] %v5098_v50  ;;  %v5100_v24 = vpop.permute.xlu1 %1755 }
 0x31f   : > { %7085 = vst [vmem:[#allocation155_spill] sm:$0xff] %v5100_v24 }
 0x321   : > { %v5102_v36 = vpop.permute.xlu0 %1778 }
 0x322   : > { %7086 = vst [vmem:[#allocation156_spill] sm:$0xff] %v5102_v36  ;;  %v5104_v38 = vpop.permute.xlu1 %1776 }
 0x323   : > { %7087 = vst [vmem:[#allocation157_spill] sm:$0xff] %v5104_v38 }
 0x325   : > { %v5106_v15 = vpop.permute.xlu0 %1799 }
 0x326   : > { %7088 = vst [vmem:[#allocation158_spill] sm:$0xff] %v5106_v15  ;;  %v5108_v44 = vpop.permute.xlu1 %1797 }
 0x327   : > { %7089 = vst [vmem:[#allocation159_spill] sm:$0xff] %v5108_v44 }
 0x329   : > { %v5110_v12 = vpop.permute.xlu0 %1817 }
 0x32a   : > { %7090 = vst [vmem:[#allocation160_spill] sm:$0xff] %v5110_v12  ;;  %v5112_v18 = vpop.permute.xlu1 %1801 }
 0x32b   : > { %7091 = vst [vmem:[#allocation161_spill] sm:$0xff] %v5112_v18 }
 0x32d   : > { %v5114_v62 = vpop.permute.xlu0 %1821 }
 0x32e   : > { %7092 = vst [vmem:[#allocation162_spill] sm:$0xff] %v5114_v62  ;;  %v5116_v13 = vpop.permute.xlu1 %1819 }
 0x32f   : > { %7093 = vst [vmem:[#allocation163_spill] sm:$0xff] %v5116_v13 }
 0x331   : > { %v5118_v42 = vpop.permute.xlu0 %1842 }
 0x332   : > { %7094 = vst [vmem:[#allocation164_spill] sm:$0xff] %v5118_v42  ;;  %v5120_v50 = vpop.permute.xlu1 %1840 }
 0x333   : > { %7095 = vst [vmem:[#allocation165_spill] sm:$0xff] %v5120_v50 }
 0x335   : > { %v5122_v24 = vpop.permute.xlu0 %1863 }
 0x336   : > { %7096 = vst [vmem:[#allocation166_spill] sm:$0xff] %v5122_v24  ;;  %v5124_v36 = vpop.permute.xlu1 %1844 }
 0x337   : > { %7097 = vst [vmem:[#allocation167_spill] sm:$0xff] %v5124_v36 }
 0x339   : > { %v5126_v38 = vpop.permute.xlu0 %1867 }
 0x33a   : > { %7098 = vst [vmem:[#allocation168_spill] sm:$0xff] %v5126_v38  ;;  %v5128_v15 = vpop.permute.xlu1 %1865 }
 0x33b   : > { %7099 = vst [vmem:[#allocation169_spill] sm:$0xff] %v5128_v15 }
 0x33d   : > { %v5130_v44 = vpop.permute.xlu0 %1888 }
 0x33e   : > { %7100 = vst [vmem:[#allocation170_spill] sm:$0xff] %v5130_v44  ;;  %v5132_v12 = vpop.permute.xlu1 %1886 }
 0x33f   : > { %7101 = vst [vmem:[#allocation171_spill] sm:$0xff] %v5132_v12 }
 0x341   : > { %v5134_v18 = vpop.permute.xlu0 %1906 }
 0x342   : > { %7102 = vst [vmem:[#allocation172_spill] sm:$0xff] %v5134_v18  ;;  %v5136_v62 = vpop.permute.xlu1 %1890 }
 0x343   : > { %7103 = vst [vmem:[#allocation173_spill] sm:$0xff] %v5136_v62 }
 0x345   : > { %v5138_v13 = vpop.permute.xlu0 %1910 }
 0x346   : > { %7104 = vst [vmem:[#allocation174_spill] sm:$0xff] %v5138_v13  ;;  %v5140_v42 = vpop.permute.xlu1 %1908 }
 0x347   : > { %7105 = vst [vmem:[#allocation175_spill] sm:$0xff] %v5140_v42 }
 0x349   : > { %v5142_v50 = vpop.permute.xlu0 %1931 }
 0x34a   : > { %7106 = vst [vmem:[#allocation176_spill] sm:$0xff] %v5142_v50  ;;  %v5144_v24 = vpop.permute.xlu1 %1929 }
 0x34b   : > { %7107 = vst [vmem:[#allocation177_spill] sm:$0xff] %v5144_v24 }
 0x34d   : > { %v5146_v36 = vpop.permute.xlu0 %1952 }
 0x34e   : > { %7108 = vst [vmem:[#allocation178_spill] sm:$0xff] %v5146_v36  ;;  %v5148_v38 = vpop.permute.xlu1 %1933 }
 0x34f   : > { %7109 = vst [vmem:[#allocation179_spill] sm:$0xff] %v5148_v38 }
 0x351   : > { %v5150_v15 = vpop.permute.xlu0 %1956 }
 0x352   : > { %7110 = vst [vmem:[#allocation180_spill] sm:$0xff] %v5150_v15  ;;  %v5152_v44 = vpop.permute.xlu1 %1954 }
 0x353   : > { %7111 = vst [vmem:[#allocation181_spill] sm:$0xff] %v5152_v44 }
 0x355   : > { %v5154_v12 = vpop.permute.xlu0 %1977 }
 0x356   : > { %7112 = vst [vmem:[#allocation182_spill] sm:$0xff] %v5154_v12  ;;  %v5156_v18 = vpop.permute.xlu1 %1975 }
 0x357   : > { %7113 = vst [vmem:[#allocation183_spill] sm:$0xff] %v5156_v18 }
 0x359   : > { %v5158_v62 = vpop.permute.xlu0 %1995 }
 0x35a   : > { %7114 = vst [vmem:[#allocation184_spill] sm:$0xff] %v5158_v62  ;;  %v5160_v13 = vpop.permute.xlu1 %1979 }
 0x35b   : > { %7115 = vst [vmem:[#allocation185_spill] sm:$0xff] %v5160_v13 }
 0x35d   : > { %v5162_v42 = vpop.permute.xlu0 %1999 }
 0x35e   : > { %7116 = vst [vmem:[#allocation186_spill] sm:$0xff] %v5162_v42  ;;  %v5164_v50 = vpop.permute.xlu1 %1997 }
 0x35f   : > { %7117 = vst [vmem:[#allocation187_spill] sm:$0xff] %v5164_v50  ;;  %v2089_v50 = vstv %s3826_s8  ;;  %s3841_s8 = sld [smem:[#allocation10 + $0x1a0]] }
 0x361   : > { %v5166_v24 = vpop.permute.xlu0 %2020 }
 0x362   : > { %7118 = vst [vmem:[#allocation188_spill] sm:$0xff] %v5166_v24  ;;  %v5168_v36 = vpop.permute.xlu1 %2018 }
 0x363   : > { %7119 = vst [vmem:[#allocation189_spill] sm:$0xff] %v5168_v36 }
 0x365   : > { %v5170_v38 = vpop.permute.xlu0 %2041 }
 0x366   : > { %7120 = vst [vmem:[#allocation190_spill] sm:$0xff] %v5170_v38  ;;  %v5172_v15 = vpop.permute.xlu1 %2022 }
 0x367   : > { %7121 = vst [vmem:[#allocation191_spill] sm:$0xff] %v5172_v15 }
 0x369   : > { %v5174_v44 = vpop.permute.xlu0 %2045 }
 0x36a   : > { %7122 = vst [vmem:[#allocation192_spill] sm:$0xff] %v5174_v44  ;;  %v5176_v18 = vpop.permute.xlu1 %2043 }
 0x36b   : > { %7123 = vst [vmem:[#allocation193_spill] sm:$0xff] %v5176_v18 }
 0x36d   : > { %v5178_v62 = vpop.permute.xlu0 %2066 }
 0x36e   : > { %7124 = vst [vmem:[#allocation194_spill] sm:$0xff] %v5178_v62  ;;  %v5180_v13 = vpop.permute.xlu1 %2064 }
 0x36f   : > { %7125 = vst [vmem:[#allocation195_spill] sm:$0xff] %v5180_v13  ;;  %v2110_v13 = vstv %s3827_s25  ;;  %s4159_s25 = smov 32  }
 0x371   : > { %v2077_v42 = vpop.permute.xlu0 %2076 }
 0x372   : > { %v5183_v24 = vmul.f32 %v2077_v42, %v4379_v27  ;;  %v5185_v36 = vpop.permute.xlu1 %2068 }
 0x373   : > { %7126 = vst [vmem:[#allocation196_spill] sm:$0xff] %v5185_v36 }
 0x374   : > { %v2090_v38 = vmul.f32 %v2089_v50, %v5183_v24  ;;  %v2111_v58 = vmul.f32 %v2110_v13, %v5183_v24 }
 0x376   : > { %2096 = vrot.lane.b32.xlu0 %v2090_v38, %s4158_s27  ;;  %v2079_v44 = vpop.permute.xlu1 %2078  ;;  %v2117_v38 = vrot.slane %v2111_v58, 1 }
 0x377   : > { %v2081_v18 = vsel %vm2080_vm6, %v2077_v42, %v2079_v44  ;;  %v5190_v62 = vmul.f32 %v2079_v44, %v4385_v31  ;;  %v2134_v42 = vmul.f32 %v2133_v2, %v5183_v24 }
 0x378   : > { %v5193_v15 = vmul.f32 %v2081_v18, %v4383_v30 }
 0x379   : > { %v2092_v12 = vmul.f32 %v2089_v50, %v5190_v62  ;;  %v2113_v18 = vmul.f32 %v2110_v13, %v5190_v62  ;;  %v2136_v49 = vmul.f32 %v2133_v2, %v5190_v62 }
 0x37a   : > { %v2091_v36 = vmul.f32 %v2089_v50, %v5193_v15  ;;  %v2112_v11 = vmul.f32 %v2110_v13, %v5193_v15  ;;  %v2140_v50 = vrot.slane %v2134_v42, 2  ;;  %v2135_v29 = vmul.f32 %v2133_v2, %v5193_v15 }
 0x37b   : > { %2100 = vrot.lane.b32.xlu0 %v2092_v12, %s4158_s27  ;;  %v2119_v57 = vrot.slane %v2113_v18, 1  ;;  %v2179_v2 = vstv %s3830_s10  ;;  %s4160_s10 = smov 96  }
 0x37c   : > { %2098 = vrot.lane.b32.xlu1 %v2091_v36, %s4158_s27  ;;  %v2118_v44 = vrot.slane %v2112_v11, 1  ;;  %v2156_v36 = vstv %s3829_s5  ;;  %v2142_v11 = vrot.slane %v2136_v49, 2  ;;  %v2141_v13 = vrot.slane %v2135_v29, 2  ;;  %s3844_s5 = sld [smem:[#allocation10 + $0x18]] }
 0x37d   : > { %v2158_v58 = vmul.f32 %v2156_v36, %v5193_v15  ;;  %v2157_v12 = vmul.f32 %v2156_v36, %v5183_v24  ;;  %v2180_v49 = vmul.f32 %v2179_v2, %v5183_v24  ;;  %v2182_v18 = vmul.f32 %v2179_v2, %v5190_v62 }
 0x37f   : > { %2122 = vrot.lane.b32.xlu0 %v2118_v44, %s4158_s27  ;;  %v2164_v44 = vrot.slane %v2158_v58, 3  ;;  %v2163_v42 = vrot.slane %v2157_v12, 3  ;;  %v2222_v58 = vstv %s3832_s12  ;;  %s3846_s12 = sld [smem:[#allocation10 + $0x86]] }
 0x380   : > { %2120 = vrot.lane.b32.xlu1 %v2117_v38, %s4158_s27  ;;  %v2159_v38 = vmul.f32 %v2156_v36, %v5190_v62  ;;  %v2223_v12 = vmul.f32 %v2222_v58, %v5183_v24 }
 0x382   : > { %v2165_v29 = vrot.slane %v2159_v38, 3  ;;  %v2229_v38 = vrot.slane %v2223_v12, 2 }
 0x383   : > { %2143 = vrot.lane.b32.xlu0 %v2140_v50, %s4158_s27 }
 0x384   : > { %2124 = vrot.lane.b32.xlu1 %v2119_v57, %s4158_s27  ;;  %v2199_v57 = vstv %s3831_s11  ;;  %s3845_s11 = sld [smem:[#allocation10 + $0x21]] }
 0x385   : > { %v2201_v50 = vmul.f32 %v2199_v57, %v5193_v15  ;;  %v2200_v36 = vmul.f32 %v2199_v57, %v5183_v24 }
 0x387   : > { %2147 = vrot.lane.b32.xlu0 %v2142_v11, %s4158_s27  ;;  %v2181_v11 = vmul.f32 %v2179_v2, %v5193_v15  ;;  %v2225_v2 = vmul.f32 %v2222_v58, %v5190_v62 }
 0x388   : > { %2145 = vrot.lane.b32.xlu1 %v2141_v13, %s4158_s27  ;;  %v2207_v13 = vrot.slane %v2201_v50, 1 }
 0x389   : > { %v2231_v50 = vrot.slane %v2225_v2, 2  ;;  %v2288_v2 = vstv %s3835_s28  ;;  %s3849_s28 = sld [smem:[#allocation10 + $0xa1]] }
 0x38b   : > { %2168 = vrot.lane.b32.xlu0 %v2164_v44, %s4158_s27  ;;  %v2206_v44 = vrot.slane %v2200_v36, 1 }
 0x38c   : > { %2166 = vrot.lane.b32.xlu1 %v2163_v42, %s4158_s27  ;;  %v2202_v42 = vmul.f32 %v2199_v57, %v5190_v62 }
 0x38f   : > { %2186 = vrot.lane.b32.xlu0 %v2180_v49, %s4158_s27  ;;  %v2208_v49 = vrot.slane %v2202_v42, 1 }
 0x390   : > { %2170 = vrot.lane.b32.xlu1 %v2165_v29, %s4158_s27  ;;  %v2224_v29 = vmul.f32 %v2222_v58, %v5193_v15  ;;  %v2268_v58 = vstv %s3834_s23  ;;  %s3848_s23 = sld [smem:[#allocation10 + $0x98]] }
 0x391   : > { %v2269_v42 = vmul.f32 %v2268_v58, %v5183_v24 }
 0x392   : > { %v2230_v57 = vrot.slane %v2224_v29, 2  ;;  %v2290_v29 = vmul.f32 %v2288_v2, %v5193_v15 }
 0x393   : > { %2190 = vrot.lane.b32.xlu0 %v2182_v18, %s4158_s27  ;;  %v2245_v18 = vstv %s3833_s21  ;;  %s3847_s21 = sld [smem:[#allocation10 + $0x8f]] }
 0x394   : > { %2188 = vrot.lane.b32.xlu1 %v2181_v11, %s4158_s27  ;;  %v2247_v11 = vmul.f32 %v2245_v18, %v5193_v15  ;;  %v2246_v36 = vmul.f32 %v2245_v18, %v5183_v24 }
 0x396   : > { %v2252_v12 = vrot.slane %v2246_v36, 3 }
 0x397   : > { %2211 = vrot.lane.b32.xlu0 %v2207_v13, %s4158_s27  ;;  %v2253_v13 = vrot.slane %v2247_v11, 3  ;;  %v2311_v11 = vstv %s3836_s7  ;;  %s3850_s7 = sld [smem:[#allocation10 + $0x106]] }
 0x398   : > { %2209 = vrot.lane.b32.xlu1 %v2206_v44, %s4158_s27  ;;  %v2248_v44 = vmul.f32 %v2245_v18, %v5190_v62  ;;  %v2289_v18 = vmul.f32 %v2288_v2, %v5183_v24  ;;  %v2312_v36 = vmul.f32 %v2311_v11, %v5183_v24 }
 0x39b   : > { %2232 = vrot.lane.b32.xlu0 %v2229_v38, %s4158_s27  ;;  %v2254_v38 = vrot.slane %v2248_v44, 3  ;;  %v2318_v44 = vrot.slane %v2312_v36, 2 }
 0x39c   : > { %2213 = vrot.lane.b32.xlu1 %v2208_v49, %s4158_s27  ;;  %v2271_v49 = vmul.f32 %v2268_v58, %v5190_v62 }
 0x39f   : > { %2236 = vrot.lane.b32.xlu0 %v2231_v50, %s4158_s27  ;;  %v2270_v50 = vmul.f32 %v2268_v58, %v5193_v15  ;;  %v2314_v58 = vmul.f32 %v2311_v11, %v5190_v62 }
 0x3a0   : > { %2234 = vrot.lane.b32.xlu1 %v2230_v57, %s4158_s27  ;;  %v2296_v57 = vrot.slane %v2290_v29, 1 }
 0x3a1   : > { %v2320_v29 = vrot.slane %v2314_v58, 2  ;;  %v2377_v58 = vstv %s3839_s14  ;;  %s3853_s14 = sld [smem:[#allocation10 + $0x121]] }
 0x3a3   : > { %2257 = vrot.lane.b32.xlu0 %v2253_v13, %s4158_s27  ;;  %v2295_v13 = vrot.slane %v2289_v18, 1 }
 0x3a4   : > { %2255 = vrot.lane.b32.xlu1 %v2252_v12, %s4158_s27  ;;  %v2291_v12 = vmul.f32 %v2288_v2, %v5190_v62 }
 0x3a7   : > { %2275 = vrot.lane.b32.xlu0 %v2269_v42, %s4158_s27  ;;  %v2297_v42 = vrot.slane %v2291_v12, 1 }
 0x3a8   : > { %2259 = vrot.lane.b32.xlu1 %v2254_v38, %s4158_s27  ;;  %v2313_v38 = vmul.f32 %v2311_v11, %v5193_v15  ;;  %v2357_v11 = vstv %s3838_s13  ;;  %s3852_s13 = sld [smem:[#allocation10 + $0x118]] }
 0x3a9   : > { %v2358_v12 = vmul.f32 %v2357_v11, %v5183_v24 }
 0x3aa   : > { %v2319_v2 = vrot.slane %v2313_v38, 2  ;;  %v2379_v38 = vmul.f32 %v2377_v58, %v5193_v15 }
 0x3ab   : > { %2279 = vrot.lane.b32.xlu0 %v2271_v49, %s4158_s27  ;;  %v2334_v49 = vstv %s3837_s9  ;;  %s3851_s9 = sld [smem:[#allocation10 + $0x10f]] }
 0x3ac   : > { %2277 = vrot.lane.b32.xlu1 %v2270_v50, %s4158_s27  ;;  %v2336_v50 = vmul.f32 %v2334_v49, %v5193_v15  ;;  %v2335_v18 = vmul.f32 %v2334_v49, %v5183_v24 }
 0x3ae   : > { %v2341_v36 = vrot.slane %v2335_v18, 3 }
 0x3af   : > { %2300 = vrot.lane.b32.xlu0 %v2296_v57, %s4158_s27  ;;  %v2342_v57 = vrot.slane %v2336_v50, 3  ;;  %v2400_v50 = vstv %s3840_s26  ;;  %s3854_s26 = sld [smem:[#allocation10 + $0x186]] }
 0x3b0   : > { %2298 = vrot.lane.b32.xlu1 %v2295_v13, %s4158_s27  ;;  %v2337_v13 = vmul.f32 %v2334_v49, %v5190_v62  ;;  %v2378_v49 = vmul.f32 %v2377_v58, %v5183_v24  ;;  %v2401_v18 = vmul.f32 %v2400_v50, %v5183_v24 }
 0x3b3   : > { %2321 = vrot.lane.b32.xlu0 %v2318_v44, %s4158_s27  ;;  %v2343_v44 = vrot.slane %v2337_v13, 3  ;;  %v2407_v13 = vrot.slane %v2401_v18, 2 }
 0x3b4   : > { %2302 = vrot.lane.b32.xlu1 %v2297_v42, %s4158_s27  ;;  %v2360_v42 = vmul.f32 %v2357_v11, %v5190_v62 }
 0x3b7   : > { %2325 = vrot.lane.b32.xlu0 %v2320_v29, %s4158_s27  ;;  %v2359_v29 = vmul.f32 %v2357_v11, %v5193_v15  ;;  %v2403_v11 = vmul.f32 %v2400_v50, %v5190_v62 }
 0x3b8   : > { %2323 = vrot.lane.b32.xlu1 %v2319_v2, %s4158_s27  ;;  %v2385_v2 = vrot.slane %v2379_v38, 1 }
 0x3b9   : > { %v2409_v38 = vrot.slane %v2403_v11, 2 }
 0x3bb   : > { %2346 = vrot.lane.b32.xlu0 %v2342_v57, %s4158_s27  ;;  %v2384_v57 = vrot.slane %v2378_v49, 1 }
 0x3bc   : > { %2344 = vrot.lane.b32.xlu1 %v2341_v36, %s4158_s27  ;;  %v2380_v36 = vmul.f32 %v2377_v58, %v5190_v62 }
 0x3bf   : > { %2364 = vrot.lane.b32.xlu0 %v2358_v12, %s4158_s27  ;;  %v2386_v12 = vrot.slane %v2380_v36, 1 }
 0x3c0   : > { %2348 = vrot.lane.b32.xlu1 %v2343_v44, %s4158_s27  ;;  %v2402_v44 = vmul.f32 %v2400_v50, %v5193_v15 }
 0x3c2   : > { %v2408_v49 = vrot.slane %v2402_v44, 2 }
 0x3c3   : > { %2368 = vrot.lane.b32.xlu0 %v2360_v42, %s4158_s27  ;;  %v2423_v42 = vstv %s3841_s8  ;;  %s3855_s8 = sld [smem:[#allocation10 + $0x18f]] }
 0x3c4   : > { %2366 = vrot.lane.b32.xlu1 %v2359_v29, %s4158_s27  ;;  %v2425_v29 = vmul.f32 %v2423_v42, %v5193_v15  ;;  %v2424_v58 = vmul.f32 %v2423_v42, %v5183_v24 }
 0x3c6   : > { %v2430_v18 = vrot.slane %v2424_v58, 3 }
 0x3c7   : > { %2389 = vrot.lane.b32.xlu0 %v2385_v2, %s4158_s27  ;;  %v2431_v2 = vrot.slane %v2425_v29, 3 }
 0x3c8   : > { %2387 = vrot.lane.b32.xlu1 %v2384_v57, %s4158_s27  ;;  %v2426_v57 = vmul.f32 %v2423_v42, %v5190_v62 }
 0x3ca   : > { %v2432_v50 = vrot.slane %v2426_v57, 3 }
 0x3cb   : > { %2410 = vrot.lane.b32.xlu0 %v2407_v13, %s4158_s27 }
 0x3cc   : > { %2391 = vrot.lane.b32.xlu1 %v2386_v12, %s4158_s27 }
 0x3cf   : > { %2414 = vrot.lane.b32.xlu0 %v2409_v38, %s4158_s27 }
 0x3d0   : > { %2412 = vrot.lane.b32.xlu1 %v2408_v49, %s4158_s27 }
 0x3d3   : > { %2435 = vrot.lane.b32.xlu0 %v2431_v2, %s4158_s27 }
 0x3d4   : > { %2433 = vrot.lane.b32.xlu1 %v2430_v18, %s4158_s27 }
 0x3d7   : > { %2445 = vrot.lane.b32.xlu0 %v4662_v21, %s4159_s25 }
 0x3d8   : > { %2437 = vrot.lane.b32.xlu1 %v2432_v50, %s4158_s27  ;;  %s3843_s27 = sld [smem:[#allocation10 + $0xf]] }
 0x3dc   : > { %2447 = vrot.lane.b32.xlu1 %v4672_v25, %s4159_s25  ;;  %s3856_s25 = sld [smem:[#allocation10 + $0x198]] }
 0x3e8   : > { %v5291_v24 = vpop.permute.xlu0 %2096 }
 0x3e9   : > { %7127 = vst [vmem:[#allocation197_spill] sm:$0xff] %v5291_v24 }
 0x3ed   : > { %v5293_v15 = vpop.permute.xlu0 %2100 }
 0x3ee   : > { %7128 = vst [vmem:[#allocation198_spill] sm:$0xff] %v5293_v15  ;;  %v5295_v36 = vpop.permute.xlu1 %2098 }
 0x3ef   : > { %7129 = vst [vmem:[#allocation199_spill] sm:$0xff] %v5295_v36 }
 0x3f1   : > { %v5297_v13 = vpop.permute.xlu0 %2122 }
 0x3f2   : > { %7130 = vst [vmem:[#allocation200_spill] sm:$0xff] %v5297_v13  ;;  %v5299_v62 = vpop.permute.xlu1 %2120 }
 0x3f3   : > { %7131 = vst [vmem:[#allocation201_spill] sm:$0xff] %v5299_v62  ;;  %v2502_v62 = vstv %s3844_s5  ;;  %s3859_s5 = sld [smem:[#allocation10 + $0x10]] }
 0x3f5   : > { %v5301_v11 = vpop.permute.xlu0 %2143 }
 0x3f6   : > { %7132 = vst [vmem:[#allocation202_spill] sm:$0xff] %v5301_v11  ;;  %v5303_v12 = vpop.permute.xlu1 %2124 }
 0x3f7   : > { %7133 = vst [vmem:[#allocation203_spill] sm:$0xff] %v5303_v12 }
 0x3f9   : > { %v5305_v44 = vpop.permute.xlu0 %2147 }
 0x3fa   : > { %7134 = vst [vmem:[#allocation204_spill] sm:$0xff] %v5305_v44  ;;  %v5307_v42 = vpop.permute.xlu1 %2145 }
 0x3fb   : > { %7135 = vst [vmem:[#allocation205_spill] sm:$0xff] %v5307_v42 }
 0x3fd   : > { %v5309_v38 = vpop.permute.xlu0 %2168 }
 0x3fe   : > { %7136 = vst [vmem:[#allocation206_spill] sm:$0xff] %v5309_v38  ;;  %v5311_v29 = vpop.permute.xlu1 %2166 }
 0x3ff   : > { %7137 = vst [vmem:[#allocation207_spill] sm:$0xff] %v5311_v29 }
 0x401   : > { %v5313_v49 = vpop.permute.xlu0 %2186 }
 0x402   : > { %7138 = vst [vmem:[#allocation208_spill] sm:$0xff] %v5313_v49  ;;  %v5315_v58 = vpop.permute.xlu1 %2170 }
 0x403   : > { %7139 = vst [vmem:[#allocation209_spill] sm:$0xff] %v5315_v58 }
 0x405   : > { %v5317_v2 = vpop.permute.xlu0 %2190 }
 0x406   : > { %7140 = vst [vmem:[#allocation210_spill] sm:$0xff] %v5317_v2  ;;  %v5319_v18 = vpop.permute.xlu1 %2188 }
 0x407   : > { %7141 = vst [vmem:[#allocation211_spill] sm:$0xff] %v5319_v18 }
 0x409   : > { %v5321_v57 = vpop.permute.xlu0 %2211 }
 0x40a   : > { %7142 = vst [vmem:[#allocation212_spill] sm:$0xff] %v5321_v57  ;;  %v5323_v50 = vpop.permute.xlu1 %2209 }
 0x40b   : > { %7143 = vst [vmem:[#allocation213_spill] sm:$0xff] %v5323_v50 }
 0x40d   : > { %v5325_v12 = vpop.permute.xlu0 %2232 }
 0x40e   : > { %7144 = vst [vmem:[#allocation214_spill] sm:$0xff] %v5325_v12  ;;  %v5327_v44 = vpop.permute.xlu1 %2213 }
 0x40f   : > { %7145 = vst [vmem:[#allocation215_spill] sm:$0xff] %v5327_v44 }
 0x411   : > { %v5329_v11 = vpop.permute.xlu0 %2236 }
 0x412   : > { %7146 = vst [vmem:[#allocation216_spill] sm:$0xff] %v5329_v11  ;;  %v5331_v38 = vpop.permute.xlu1 %2234 }
 0x413   : > { %7147 = vst [vmem:[#allocation217_spill] sm:$0xff] %v5331_v38 }
 0x415   : > { %v5333_v29 = vpop.permute.xlu0 %2257 }
 0x416   : > { %7148 = vst [vmem:[#allocation218_spill] sm:$0xff] %v5333_v29  ;;  %v5335_v49 = vpop.permute.xlu1 %2255 }
 0x417   : > { %7149 = vst [vmem:[#allocation219_spill] sm:$0xff] %v5335_v49 }
 0x419   : > { %v5337_v58 = vpop.permute.xlu0 %2275 }
 0x41a   : > { %7150 = vst [vmem:[#allocation220_spill] sm:$0xff] %v5337_v58  ;;  %v5339_v2 = vpop.permute.xlu1 %2259 }
 0x41b   : > { %7151 = vst [vmem:[#allocation221_spill] sm:$0xff] %v5339_v2 }
 0x41d   : > { %v5341_v18 = vpop.permute.xlu0 %2279 }
 0x41e   : > { %7152 = vst [vmem:[#allocation222_spill] sm:$0xff] %v5341_v18  ;;  %v5343_v57 = vpop.permute.xlu1 %2277 }
 0x41f   : > { %7153 = vst [vmem:[#allocation223_spill] sm:$0xff] %v5343_v57 }
 0x421   : > { %v5345_v50 = vpop.permute.xlu0 %2300 }
 0x422   : > { %7154 = vst [vmem:[#allocation224_spill] sm:$0xff] %v5345_v50  ;;  %v5347_v12 = vpop.permute.xlu1 %2298 }
 0x423   : > { %7155 = vst [vmem:[#allocation225_spill] sm:$0xff] %v5347_v12 }
 0x425   : > { %v5349_v44 = vpop.permute.xlu0 %2321 }
 0x426   : > { %7156 = vst [vmem:[#allocation226_spill] sm:$0xff] %v5349_v44  ;;  %v5351_v11 = vpop.permute.xlu1 %2302 }
 0x427   : > { %7157 = vst [vmem:[#allocation227_spill] sm:$0xff] %v5351_v11 }
 0x429   : > { %v5353_v38 = vpop.permute.xlu0 %2325 }
 0x42a   : > { %7158 = vst [vmem:[#allocation228_spill] sm:$0xff] %v5353_v38  ;;  %v5355_v29 = vpop.permute.xlu1 %2323 }
 0x42b   : > { %7159 = vst [vmem:[#allocation229_spill] sm:$0xff] %v5355_v29 }
 0x42d   : > { %v5357_v49 = vpop.permute.xlu0 %2346 }
 0x42e   : > { %7160 = vst [vmem:[#allocation230_spill] sm:$0xff] %v5357_v49  ;;  %v5359_v58 = vpop.permute.xlu1 %2344 }
 0x42f   : > { %7161 = vst [vmem:[#allocation231_spill] sm:$0xff] %v5359_v58 }
 0x431   : > { %v5361_v2 = vpop.permute.xlu0 %2364 }
 0x432   : > { %7162 = vst [vmem:[#allocation232_spill] sm:$0xff] %v5361_v2  ;;  %v5363_v18 = vpop.permute.xlu1 %2348 }
 0x433   : > { %7163 = vst [vmem:[#allocation233_spill] sm:$0xff] %v5363_v18 }
 0x435   : > { %v5365_v57 = vpop.permute.xlu0 %2368 }
 0x436   : > { %7164 = vst [vmem:[#allocation234_spill] sm:$0xff] %v5365_v57  ;;  %v5367_v50 = vpop.permute.xlu1 %2366 }
 0x437   : > { %7165 = vst [vmem:[#allocation235_spill] sm:$0xff] %v5367_v50  ;;  %v2458_v50 = vstv %s3842_s29  ;;  %s3857_s29 = sld [smem:[#allocation10 + $0x1a1]] }
 0x439   : > { %v5369_v12 = vpop.permute.xlu0 %2389 }
 0x43a   : > { %7166 = vst [vmem:[#allocation236_spill] sm:$0xff] %v5369_v12  ;;  %v5371_v44 = vpop.permute.xlu1 %2387 }
 0x43b   : > { %7167 = vst [vmem:[#allocation237_spill] sm:$0xff] %v5371_v44 }
 0x43d   : > { %v5373_v11 = vpop.permute.xlu0 %2410 }
 0x43e   : > { %7168 = vst [vmem:[#allocation238_spill] sm:$0xff] %v5373_v11  ;;  %v5375_v38 = vpop.permute.xlu1 %2391 }
 0x43f   : > { %7169 = vst [vmem:[#allocation239_spill] sm:$0xff] %v5375_v38 }
 0x441   : > { %v5377_v29 = vpop.permute.xlu0 %2414 }
 0x442   : > { %7170 = vst [vmem:[#allocation240_spill] sm:$0xff] %v5377_v29  ;;  %v5379_v58 = vpop.permute.xlu1 %2412 }
 0x443   : > { %7171 = vst [vmem:[#allocation241_spill] sm:$0xff] %v5379_v58 }
 0x445   : > { %v5381_v2 = vpop.permute.xlu0 %2435 }
 0x446   : > { %7172 = vst [vmem:[#allocation242_spill] sm:$0xff] %v5381_v2  ;;  %v5383_v18 = vpop.permute.xlu1 %2433 }
 0x447   : > { %7173 = vst [vmem:[#allocation243_spill] sm:$0xff] %v5383_v18  ;;  %v2479_v18 = vstv %s3843_s27  ;;  %s3858_s27 = sld [smem:[#allocation10 + $0x7]] }
 0x449   : > { %v2446_v57 = vpop.permute.xlu0 %2445 }
 0x44a   : > { %v5386_v12 = vmul.f32 %v2446_v57, %v4379_v27  ;;  %v5388_v44 = vpop.permute.xlu1 %2437 }
 0x44b   : > { %7174 = vst [vmem:[#allocation244_spill] sm:$0xff] %v5388_v44 }
 0x44c   : > { %v2459_v38 = vmul.f32 %v2458_v50, %v5386_v12  ;;  %v2480_v15 = vmul.f32 %v2479_v18, %v5386_v12 }
 0x44e   : > { %2465 = vrot.lane.b32.xlu0 %v2459_v38, %s4160_s10  ;;  %v2448_v29 = vpop.permute.xlu1 %2447 }
 0x44f   : > { %v2450_v11 = vsel %vm2449_vm7, %v2446_v57, %v2448_v29  ;;  %v5393_v2 = vmul.f32 %v2448_v29, %v4385_v31  ;;  %v2503_v29 = vmul.f32 %v2502_v62, %v5386_v12  ;;  %v2486_v57 = vrot.slane %v2480_v15, 1 }
 0x450   : > { %v5396_v58 = vmul.f32 %v2450_v11, %v4383_v30 }
 0x451   : > { %v2461_v49 = vmul.f32 %v2458_v50, %v5393_v2  ;;  %v2482_v11 = vmul.f32 %v2479_v18, %v5393_v2  ;;  %v2505_v13 = vmul.f32 %v2502_v62, %v5393_v2 }
 0x452   : > { %v2460_v44 = vmul.f32 %v2458_v50, %v5396_v58  ;;  %v2481_v42 = vmul.f32 %v2479_v18, %v5396_v58  ;;  %v2509_v50 = vrot.slane %v2503_v29, 2  ;;  %v2504_v36 = vmul.f32 %v2502_v62, %v5396_v58 }
 0x453   : > { %2469 = vrot.lane.b32.xlu0 %v2461_v49, %s4160_s10  ;;  %v2488_v24 = vrot.slane %v2482_v11, 1  ;;  %v2548_v62 = vstv %s3846_s12  ;;  %s4161_s12 = smov 95  }
 0x454   : > { %2467 = vrot.lane.b32.xlu1 %v2460_v44, %s4160_s10  ;;  %v2487_v38 = vrot.slane %v2481_v42, 1  ;;  %v2525_v44 = vstv %s3845_s11  ;;  %v2511_v42 = vrot.slane %v2505_v13, 2  ;;  %v2510_v49 = vrot.slane %v2504_v36, 2  ;;  %s3860_s11 = sld [smem:[#allocation10 + $0x19]] }
 0x455   : > { %v2527_v15 = vmul.f32 %v2525_v44, %v5396_v58  ;;  %v2526_v18 = vmul.f32 %v2525_v44, %v5386_v12  ;;  %v2568_v13 = vstv %s3847_s21  ;;  %v2551_v11 = vmul.f32 %v2548_v62, %v5393_v2  ;;  %s3861_s21 = sld [smem:[#allocation10 + $0x22]] }
 0x457   : > { %2491 = vrot.lane.b32.xlu0 %v2487_v38, %s4160_s10  ;;  %v2533_v38 = vrot.slane %v2527_v15, 3  ;;  %v2532_v29 = vrot.slane %v2526_v18, 3  ;;  %v2591_v15 = vstv %s3848_s23  ;;  %s3863_s23 = sld [smem:[#allocation10 + $0x90]] }
 0x458   : > { %2489 = vrot.lane.b32.xlu1 %v2486_v57, %s4160_s10  ;;  %v2528_v57 = vmul.f32 %v2525_v44, %v5393_v2  ;;  %v2569_v44 = vmul.f32 %v2568_v13, %v5386_v12  ;;  %v2592_v18 = vmul.f32 %v2591_v15, %v5386_v12 }
 0x45a   : > { %v2534_v36 = vrot.slane %v2528_v57, 3  ;;  %v2598_v57 = vrot.slane %v2592_v18, 2 }
 0x45b   : > { %2512 = vrot.lane.b32.xlu0 %v2509_v50, %s4160_s10  ;;  %v2570_v50 = vmul.f32 %v2568_v13, %v5396_v58 }
 0x45c   : > { %2493 = vrot.lane.b32.xlu1 %v2488_v24, %s4160_s10  ;;  %v2549_v24 = vmul.f32 %v2548_v62, %v5386_v12 }
 0x45f   : > { %2516 = vrot.lane.b32.xlu0 %v2511_v42, %s4160_s10  ;;  %v2550_v42 = vmul.f32 %v2548_v62, %v5396_v58  ;;  %v2594_v62 = vmul.f32 %v2591_v15, %v5393_v2 }
 0x460   : > { %2514 = vrot.lane.b32.xlu1 %v2510_v49, %s4160_s10  ;;  %v2576_v49 = vrot.slane %v2570_v50, 1 }
 0x461   : > { %v2600_v50 = vrot.slane %v2594_v62, 2  ;;  %v2657_v62 = vstv %s3851_s9  ;;  %s3864_s9 = sld [smem:[#allocation10 + $0x99]] }
 0x463   : > { %2537 = vrot.lane.b32.xlu0 %v2533_v38, %s4160_s10  ;;  %v2575_v38 = vrot.slane %v2569_v44, 1 }
 0x464   : > { %2535 = vrot.lane.b32.xlu1 %v2532_v29, %s4160_s10  ;;  %v2571_v29 = vmul.f32 %v2568_v13, %v5393_v2 }
 0x467   : > { %2555 = vrot.lane.b32.xlu0 %v2549_v24, %s4160_s10  ;;  %v2577_v24 = vrot.slane %v2571_v29, 1 }
 0x468   : > { %2539 = vrot.lane.b32.xlu1 %v2534_v36, %s4160_s10  ;;  %v2593_v36 = vmul.f32 %v2591_v15, %v5396_v58  ;;  %v2637_v15 = vstv %s3850_s7  ;;  %s5516_s7 = sld [smem:[#allocation10 + $0x9]] }
 0x469   : > { %v2638_v29 = vmul.f32 %v2637_v15, %v5386_v12 }
 0x46a   : > { %v2599_v13 = vrot.slane %v2593_v36, 2  ;;  %v2659_v36 = vmul.f32 %v2657_v62, %v5396_v58 }
 0x46b   : > { %2559 = vrot.lane.b32.xlu0 %v2551_v11, %s4160_s10  ;;  %v2614_v11 = vstv %s3849_s28  ;;  %s5511_s28 = sld [smem:[#allocation10]] }
 0x46c   : > { %2557 = vrot.lane.b32.xlu1 %v2550_v42, %s4160_s10  ;;  %v2616_v42 = vmul.f32 %v2614_v11, %v5396_v58  ;;  %v2615_v44 = vmul.f32 %v2614_v11, %v5386_v12 }
 0x46e   : > { %v2621_v18 = vrot.slane %v2615_v44, 3 }
 0x46f   : > { %2580 = vrot.lane.b32.xlu0 %v2576_v49, %s4160_s10  ;;  %v2622_v49 = vrot.slane %v2616_v42, 3  ;;  %v2680_v42 = vstv %s3852_s13  ;;  %s5519_s13 = sld [smem:[#allocation10 + $0x12]] }
 0x470   : > { %2578 = vrot.lane.b32.xlu1 %v2575_v38, %s4160_s10  ;;  %v2617_v38 = vmul.f32 %v2614_v11, %v5393_v2  ;;  %v2658_v11 = vmul.f32 %v2657_v62, %v5386_v12  ;;  %v2681_v44 = vmul.f32 %v2680_v42, %v5386_v12 }
 0x473   : > { %2601 = vrot.lane.b32.xlu0 %v2598_v57, %s4160_s10  ;;  %v2623_v57 = vrot.slane %v2617_v38, 3  ;;  %v2687_v38 = vrot.slane %v2681_v44, 2 }
 0x474   : > { %2582 = vrot.lane.b32.xlu1 %v2577_v24, %s4160_s10  ;;  %v2640_v24 = vmul.f32 %v2637_v15, %v5393_v2 }
 0x477   : > { %2605 = vrot.lane.b32.xlu0 %v2600_v50, %s4160_s10  ;;  %v2639_v50 = vmul.f32 %v2637_v15, %v5396_v58  ;;  %v2683_v15 = vmul.f32 %v2680_v42, %v5393_v2 }
 0x478   : > { %2603 = vrot.lane.b32.xlu1 %v2599_v13, %s4160_s10  ;;  %v2665_v13 = vrot.slane %v2659_v36, 1 }
 0x479   : > { %v2689_v36 = vrot.slane %v2683_v15, 2  ;;  %v2746_v15 = vstv %s3855_s8  ;;  %s5530_s8 = sld [smem:[#allocation10 + $0x89]] }
 0x47b   : > { %2626 = vrot.lane.b32.xlu0 %v2622_v49, %s4160_s10  ;;  %v2664_v49 = vrot.slane %v2658_v11, 1 }
 0x47c   : > { %2624 = vrot.lane.b32.xlu1 %v2621_v18, %s4160_s10  ;;  %v2660_v18 = vmul.f32 %v2657_v62, %v5393_v2 }
 0x47f   : > { %2644 = vrot.lane.b32.xlu0 %v2638_v29, %s4160_s10  ;;  %v2666_v29 = vrot.slane %v2660_v18, 1 }
 0x480   : > { %2628 = vrot.lane.b32.xlu1 %v2623_v57, %s4160_s10  ;;  %v2682_v57 = vmul.f32 %v2680_v42, %v5396_v58  ;;  %v2726_v42 = vstv %s3854_s26  ;;  %s5525_s26 = sld [smem:[#allocation10 + $0x80]] }
 0x481   : > { %v2727_v18 = vmul.f32 %v2726_v42, %v5386_v12 }
 0x482   : > { %v2688_v62 = vrot.slane %v2682_v57, 2  ;;  %v2748_v57 = vmul.f32 %v2746_v15, %v5396_v58 }
 0x483   : > { %2648 = vrot.lane.b32.xlu0 %v2640_v24, %s4160_s10  ;;  %v2703_v24 = vstv %s3853_s14  ;;  %s5522_s14 = sld [smem:[#allocation10 + $0x1b]] }
 0x484   : > { %2646 = vrot.lane.b32.xlu1 %v2639_v50, %s4160_s10  ;;  %v2705_v50 = vmul.f32 %v2703_v24, %v5396_v58  ;;  %v2704_v11 = vmul.f32 %v2703_v24, %v5386_v12 }
 0x486   : > { %v2710_v44 = vrot.slane %v2704_v11, 3 }
 0x487   : > { %2669 = vrot.lane.b32.xlu0 %v2665_v13, %s4160_s10  ;;  %v2711_v13 = vrot.slane %v2705_v50, 3  ;;  %v2769_v50 = vstv %s3856_s25  ;;  %s5534_s25 = sld [smem:[#allocation10 + $0x92]] }
 0x488   : > { %2667 = vrot.lane.b32.xlu1 %v2664_v49, %s4160_s10  ;;  %v2706_v49 = vmul.f32 %v2703_v24, %v5393_v2  ;;  %v2747_v24 = vmul.f32 %v2746_v15, %v5386_v12  ;;  %v2770_v11 = vmul.f32 %v2769_v50, %v5386_v12 }
 0x48b   : > { %2690 = vrot.lane.b32.xlu0 %v2687_v38, %s4160_s10  ;;  %v2712_v38 = vrot.slane %v2706_v49, 3  ;;  %v2776_v49 = vrot.slane %v2770_v11, 2 }
 0x48c   : > { %2671 = vrot.lane.b32.xlu1 %v2666_v29, %s4160_s10  ;;  %v2729_v29 = vmul.f32 %v2726_v42, %v5393_v2 }
 0x48f   : > { %2694 = vrot.lane.b32.xlu0 %v2689_v36, %s4160_s10  ;;  %v2728_v36 = vmul.f32 %v2726_v42, %v5396_v58  ;;  %v2772_v42 = vmul.f32 %v2769_v50, %v5393_v2 }
 0x490   : > { %2692 = vrot.lane.b32.xlu1 %v2688_v62, %s4160_s10  ;;  %v2754_v62 = vrot.slane %v2748_v57, 1 }
 0x491   : > { %v2778_v57 = vrot.slane %v2772_v42, 2 }
 0x493   : > { %2715 = vrot.lane.b32.xlu0 %v2711_v13, %s4160_s10  ;;  %v2753_v13 = vrot.slane %v2747_v24, 1 }
 0x494   : > { %2713 = vrot.lane.b32.xlu1 %v2710_v44, %s4160_s10  ;;  %v2749_v44 = vmul.f32 %v2746_v15, %v5393_v2 }
 0x497   : > { %2733 = vrot.lane.b32.xlu0 %v2727_v18, %s4160_s10  ;;  %v2755_v18 = vrot.slane %v2749_v44, 1 }
 0x498   : > { %2717 = vrot.lane.b32.xlu1 %v2712_v38, %s4160_s10  ;;  %v2771_v38 = vmul.f32 %v2769_v50, %v5396_v58  ;;  %v2815_v50 = vstv %s3858_s27  ;;  %s5540_s27 = sld [smem:[#allocation10 + $0x100]] }
 0x49a   : > { %v2777_v15 = vrot.slane %v2771_v38, 2  ;;  %v2859_v38 = vstv %s3860_s11  ;;  %s3865_s11 = sld [smem:[#allocation10 + $0xa2]] }
 0x49b   : > { %2737 = vrot.lane.b32.xlu0 %v2729_v29, %s4160_s10  ;;  %v2792_v29 = vstv %s3857_s29  ;;  %s5537_s29 = sld [smem:[#allocation10 + $0x9b]] }
 0x49c   : > { %2735 = vrot.lane.b32.xlu1 %v2728_v36, %s4160_s10  ;;  %v2794_v36 = vmul.f32 %v2792_v29, %v5396_v58  ;;  %v2793_v24 = vmul.f32 %v2792_v29, %v5386_v12  ;;  %v2816_v58 = vmul.f32 %v2815_v50, %v4379_v27  ;;  %v2836_v12 = vstv %s3859_s5  ;;  %s5546_s5 = sld [smem:[#allocation10 + $0x109]] }
 0x49d   : > { %v2838_v42 = vmul.f32 %v2836_v12, %v4383_v30 }
 0x49e   : > { %v2799_v11 = vrot.slane %v2793_v24, 3 }
 0x49f   : > { %2758 = vrot.lane.b32.xlu0 %v2754_v62, %s4160_s10  ;;  %v2800_v62 = vrot.slane %v2794_v36, 3 }
 0x4a0   : > { %2756 = vrot.lane.b32.xlu1 %v2753_v13, %s4160_s10  ;;  %v2795_v13 = vmul.f32 %v2792_v29, %v5393_v2  ;;  %v2817_v2 = vmul.f32 %v2815_v50, %v4383_v30  ;;  %v2844_v29 = vrot.slane %v2838_v42, 1 }
 0x4a2   : > { %v2801_v44 = vrot.slane %v2795_v13, 3  ;;  %v2882_v13 = vstv %s3861_s21  ;;  %s5553_s21 = sld [smem:[#allocation10 + $0x112]] }
 0x4a3   : > { %2779 = vrot.lane.b32.xlu0 %v2776_v49, %s4160_s10  ;;  %v2818_v49 = vmul.f32 %v2815_v50, %v4385_v31  ;;  %v2861_v50 = vmul.f32 %v2859_v38, %v4383_v30 }
 0x4a4   : > { %2760 = vrot.lane.b32.xlu1 %v2755_v18, %s4160_s10  ;;  %v2837_v18 = vmul.f32 %v2836_v12, %v4379_v27 }
 0x4a6   : > { %v2843_v36 = vrot.slane %v2837_v18, 1 }
 0x4a7   : > { %2783 = vrot.lane.b32.xlu0 %v2778_v57, %s4160_s10  ;;  %v2860_v57 = vmul.f32 %v2859_v38, %v4379_v27 }
 0x4a8   : > { %2781 = vrot.lane.b32.xlu1 %v2777_v15, %s4160_s10  ;;  %v2839_v15 = vmul.f32 %v2836_v12, %v4385_v31  ;;  %v2867_v12 = vrot.slane %v2861_v50, 2  ;;  %v7197_v22 = vstv %s5553_s21 }
 0x4a9   : > { %v2866_v24 = vrot.slane %v2860_v57, 2 }
 0x4ab   : > { %2804 = vrot.lane.b32.xlu0 %v2800_v62, %s4160_s10  ;;  %v2862_v62 = vmul.f32 %v2859_v38, %v4385_v31 }
 0x4ac   : > { %2802 = vrot.lane.b32.xlu1 %v2799_v11, %s4160_s10  ;;  %v2845_v11 = vrot.slane %v2839_v15, 1 }
 0x4af   : > { %2822 = vrot.lane.b32.xlu0 %v2816_v58, %s4161_s12  ;;  %v2868_v58 = vrot.slane %v2862_v62, 2  ;;  %v2925_v62 = vstv %s3863_s23  ;;  %s5561_s23 = sld [smem:[#allocation10 + $0x180]] }
 0x4b0   : > { %2806 = vrot.lane.b32.xlu1 %v2801_v44, %s4160_s10  ;;  %s3862_s10 = sld [smem:[#allocation10 + $0x87]]  ;;  %v2884_v44 = vmul.f32 %v2882_v13, %v4383_v30 }
 0x4b3   : > { %2826 = vrot.lane.b32.xlu0 %v2818_v49, %s4161_s12  ;;  %v2883_v49 = vmul.f32 %v2882_v13, %v4379_v27 }
 0x4b4   : > { %2824 = vrot.lane.b32.xlu1 %v2817_v2, %s4161_s12  ;;  %v2890_v2 = vrot.slane %v2884_v44, 3 }
 0x4b5   : > { %v2889_v18 = vrot.slane %v2883_v49, 3  ;;  %v2948_v49 = vstv %s3864_s9  ;;  %s5566_s9 = sld [smem:[#allocation10 + $0x189]] }
 0x4b6   : > { %v2905_v38 = vstv %s3862_s10  ;;  %s5556_s10 = sld [smem:[#allocation10 + $0x11b]] }
 0x4b7   : > { %2848 = vrot.lane.b32.xlu0 %v2844_v29, %s4161_s12  ;;  %v2885_v29 = vmul.f32 %v2882_v13, %v4385_v31  ;;  %v2908_v50 = vmul.f32 %v2905_v38, %v4385_v31  ;;  %v2927_v13 = vmul.f32 %v2925_v62, %v4383_v30  ;;  %v2907_v44 = vmul.f32 %v2905_v38, %v4383_v30 }
 0x4b8   : > { %2846 = vrot.lane.b32.xlu1 %v2843_v36, %s4161_s12  ;;  %v2906_v36 = vmul.f32 %v2905_v38, %v4379_v27 }
 0x4bb   : > { %2869 = vrot.lane.b32.xlu0 %v2866_v24, %s4161_s12  ;;  %v2891_v24 = vrot.slane %v2885_v29, 3  ;;  %v2949_v29 = vmul.f32 %v2948_v49, %v4379_v27 }
 0x4bc   : > { %2850 = vrot.lane.b32.xlu1 %v2845_v11, %s4161_s12 }
 0x4bf   : > { %2873 = vrot.lane.b32.xlu0 %v2868_v58, %s4161_s12 }
 0x4c0   : > { %v5513_v42 = vpop.permute.xlu0 %2465  ;;  %2871 = vrot.lane.b32.xlu1 %v2867_v12, %s4161_s12  ;;  %v2926_v12 = vmul.f32 %v2925_v62, %v4379_v27 }
 0x4c1   : > { %7175 = vst [vmem:[#allocation245_spill] sm:$0xff] %v5513_v42 }
 0x4c3   : > { %2894 = vrot.lane.b32.xlu0 %v2890_v2, %s4161_s12 }
 0x4c4   : > { %2892 = vrot.lane.b32.xlu1 %v2889_v18, %s4161_s12  ;;  %v2933_v18 = vrot.slane %v2927_v13, 1  ;;  %v2955_v13 = vrot.slane %v2949_v29, 2 }
 0x4c5   : > { %v5527_v57 = vpop.permute.xlu0 %2469 }
 0x4c6   : > { %7176 = vst [vmem:[#allocation246_spill] sm:$0xff] %v5527_v57  ;;  %v5532_v15 = vpop.permute.xlu1 %2467  ;;  %v538_v57 = vstv %s5546_s5  ;;  %s3888_s5 = sld [smem:[#allocation10 + $0x19a]] }
 0x4c7   : > { %7177 = vst [vmem:[#allocation247_spill] sm:$0xff] %v5532_v15  ;;  %2912 = vrot.lane.b32.xlu0 %v2906_v36, %s4161_s12  ;;  %v2932_v36 = vrot.slane %v2926_v12, 1 }
 0x4c8   : > { %2896 = vrot.lane.b32.xlu1 %v2891_v24, %s4161_s12  ;;  %v2928_v24 = vmul.f32 %v2925_v62, %v4385_v31  ;;  %v2950_v62 = vmul.f32 %v2948_v49, %v4383_v30 }
 0x4c9   : > { %v5542_v11 = vpop.permute.xlu0 %2491 }
 0x4ca   : > { %7178 = vst [vmem:[#allocation248_spill] sm:$0xff] %v5542_v11  ;;  %v5548_v58 = vpop.permute.xlu1 %2489  ;;  %v2934_v12 = vrot.slane %v2928_v24, 1  ;;  %v5595_v24 = vmul.f32 %v4662_v21, %v4379_v27  ;;  %v478_v21 = vstv %s5522_s14  ;;  %s3886_s14 = sld [smem:[#allocation10 + $0x188]] }
 0x4cb   : > { %7179 = vst [vmem:[#allocation249_spill] sm:$0xff] %v5548_v58  ;;  %2916 = vrot.lane.b32.xlu0 %v2908_v50, %s4161_s12 }
 0x4cc   : > { %2914 = vrot.lane.b32.xlu1 %v2907_v44, %s4161_s12  ;;  %v2951_v44 = vmul.f32 %v2948_v49, %v4385_v31  ;;  %v539_v34 = vmul.f32 %v538_v57, %v5595_v24  ;;  %v551_v54 = vmul.f32 %v7197_v22, %v5595_v24  ;;  %v7199_v22 = vstv %s5537_s29 }
 0x4cd   : > { %v5558_v2 = vpop.permute.xlu0 %2512 }
 0x4ce   : > { %7180 = vst [vmem:[#allocation250_spill] sm:$0xff] %v5558_v2  ;;  %v5563_v38 = vpop.permute.xlu1 %2493 }
 0x4cf   : > { %7181 = vst [vmem:[#allocation251_spill] sm:$0xff] %v5563_v38  ;;  %2937 = vrot.lane.b32.xlu0 %v2933_v18, %s4161_s12  ;;  %v2971_v18 = vstv %s3865_s11  ;;  %s5600_s11 = sld [smem:[#allocation10 + $0x187]]  ;;  %v466_v38 = vstv %s5519_s13 }
 0x4d0   : > { %2935 = vrot.lane.b32.xlu1 %v2932_v36, %s4161_s12  ;;  %v2957_v36 = vrot.slane %v2951_v44, 2  ;;  %v2973_v49 = vmul.f32 %v2971_v18, %v4383_v30  ;;  %v448_v44 = vstv %s5511_s28  ;;  %s5616_s28 = sld [smem:[#allocation10 + $0x199]] }
 0x4d1   : > { %v5574_v50 = vpop.permute.xlu0 %2516  ;;  %s3879_s13 = sld [smem:[#allocation10 + $0x91]] }
 0x4d2   : > { %7182 = vst [vmem:[#allocation252_spill] sm:$0xff] %v5574_v50  ;;  %v5577_v2 = vpop.permute.xlu1 %2514  ;;  %v2972_v50 = vmul.f32 %v2971_v18, %v4379_v27  ;;  %v2979_v42 = vrot.slane %v2973_v49, 3 }
 0x4d3   : > { %7183 = vst [vmem:[#allocation253_spill] sm:$0xff] %v5577_v2  ;;  %2958 = vrot.lane.b32.xlu0 %v2955_v13, %s4161_s12  ;;  %v496_v2 = vstv %s5530_s8  ;;  %s3880_s8 = sld [smem:[#allocation10 + $0x9a]] }
 0x4d4   : > { %2939 = vrot.lane.b32.xlu1 %v2934_v12, %s4161_s12  ;;  %v2956_v12 = vrot.slane %v2950_v62, 2  ;;  %v2978_v62 = vrot.slane %v2972_v50, 3  ;;  %v5657_v50 = vmul.f32 %v478_v21, %v5595_v24 }
 0x4d5   : > { %v5588_v29 = vpop.permute.xlu0 %2537 }
 0x4d6   : > { %7184 = vst [vmem:[#allocation254_spill] sm:$0xff] %v5588_v29  ;;  %v5597_v13 = vpop.permute.xlu1 %2535  ;;  %v454_v29 = vstv %s5516_s7  ;;  %s5632_s7 = sld [smem:[#allocation10 + $0x1a2]] }
 0x4d7   : > { %7185 = vst [vmem:[#allocation255_spill] sm:$0xff] %v5597_v13  ;;  %2962 = vrot.lane.b32.xlu0 %v2957_v36, %s4161_s12  ;;  %v5611_v13 = vmul.f32 %v4672_v25, %v4383_v30  ;;  %v455_v25 = vmul.f32 %v454_v29, %v5595_v24  ;;  %v5644_v36 = vstv %s5583_s3  ;;  %s6506_s3 = sld [smem:[#allocation10 + $0x1a]] }
 0x4d8   : > { %2960 = vrot.lane.b32.xlu1 %v2956_v12, %s4161_s12  ;;  %v2974_v12 = vmul.f32 %v2971_v18, %v4385_v31  ;;  %v2995_v18 = vmul.f32 %v2994_v10, %v4379_v27  ;;  %v7193_v10 = vstv %s5534_s25  ;;  %s3887_s25 = sld [smem:[#allocation10 + $0x191]] }
 0x4d9   : > { %v5621_v11 = vpop.permute.xlu0 %2555  ;;  %v456_v49 = vmul.f32 %v454_v29, %v5611_v13  ;;  %v459_v39 = vrot.slane %v455_v25, 1  ;;  %v497_v29 = vmul.f32 %v496_v2, %v5595_v24  ;;  %v449_v25 = vmul.f32 %v448_v44, %v5595_v24 }
 0x4da   : > { %7186 = vst [vmem:[#allocation256_spill] sm:$0xff] %v5621_v11  ;;  %v5624_v15 = vpop.permute.xlu1 %2539  ;;  %v580_v11 = vstv %s5566_s9  ;;  %v2980_v43 = vrot.slane %v2974_v12, 3  ;;  %v450_v3 = vmul.f32 %v448_v44, %v5611_v13  ;;  %v5670_v12 = vstv %s5616_s28  ;;  %s3896_s9 = sshll.u32 %s4211_s19, 8 }
 0x4db   : > { %7187 = vst [vmem:[#allocation257_spill] sm:$0xff] %v5624_v15  ;;  %2983 = vrot.lane.b32.xlu0 %v2979_v42, %s4161_s12  ;;  %v5647_v42 = vstv %s5586_s20  ;;  %v5653_v15 = vstv %s5591_s17  ;;  %v460_v17 = vrot.slane %v456_v49, 1  ;;  %v5674_v0 = vmul.f32 %v478_v21, %v5611_v13  ;;  %s6535_s17 = sld [smem:[#allocation10 + $0x23]] }
 0x4dc   : > { %2981 = vrot.lane.b32.xlu1 %v2978_v62, %s4161_s12  ;;  %v467_v62 = vmul.f32 %v466_v38, %v5595_v24  ;;  %v3016_v44 = vmul.f32 %v5644_v36, %v4383_v30  ;;  %v463_v49 = vadd.f32 %v459_v39, %v449_v25  ;;  %v501_v37 = vrot.slane %v497_v29, 1  ;;  %s6577_s20 = sld [smem:[#allocation10 + $0x88]] }
 0x4dd   : > { %v5640_v33 = vpop.permute.xlu0 %2559  ;;  %v5690_v40 = vstv %s5632_s7  ;;  %v464_v39 = vadd.f32 %v460_v17, %v450_v3  ;;  %v7192_v29 = vstv %s5525_s26  ;;  %v510_v51 = vmul.f32 %v7193_v10, %v5611_v13 }
 0x4de   : > { %7188 = vst [vmem:[#allocation258_spill] sm:$0xff] %v5640_v33  ;;  %v5650_v58 = vpop.permute.xlu1 %2557  ;;  %v5661_v33 = vstv %s5600_s11  ;;  %v471_v21 = vrot.slane %v467_v62, 2  ;;  %v491_v25 = vmul.f32 %v7192_v29, %v5595_v24  ;;  %v3022_v17 = vrot.slane %v3016_v44, 1 }
 0x4df   : > { %7189 = vst [vmem:[#allocation259_spill] sm:$0xff] %v5650_v58  ;;  %3001 = vrot.lane.b32.xlu0 %v2995_v18, %s4161_s12  ;;  %v468_v58 = vmul.f32 %v466_v38, %v5611_v13  ;;  %v3015_v38 = vmul.f32 %v5644_v36, %v4379_v27  ;;  %v581_v44 = vmul.f32 %v580_v11, %v5595_v24 }
 0x4e0   : > { %2985 = vrot.lane.b32.xlu1 %v2980_v43, %s4161_s12  ;;  %v5708_v3 = vadd.f32 %v471_v21, %v463_v49  ;;  %v505_v29 = vadd.f32 %v501_v37, %v491_v25  ;;  %v543_v21 = vrot.slane %v539_v34, 1  ;;  %v582_v25 = vmul.f32 %v580_v11, %v5611_v13 }
 0x4e1   : > { %v5676_v18 = vpop.permute.xlu0 %2580  ;;  %v472_v62 = vrot.slane %v468_v58, 2  ;;  %v7201_v11 = vstv %s5540_s27  ;;  %s3881_s27 = sld [smem:[#allocation10 + $0xa3]] }
 0x4e2   : > { %7190 = vst [vmem:[#allocation260_spill] sm:$0xff] %v5676_v18  ;;  %v5681_v43 = vpop.permute.xlu1 %2578  ;;  %v498_v18 = vmul.f32 %v496_v2, %v5611_v13  ;;  %v7194_v2 = vstv %s5537_s29  ;;  %s3884_s29 = sld [smem:[#allocation10 + $0x11a]] }
 0x4e3   : > { %7191 = vst [vmem:[#allocation261_spill] sm:$0xff] %v5681_v43  ;;  %3005 = vrot.lane.b32.xlu0 %v2997_v32, %s4161_s12  ;;  %v509_v43 = vmul.f32 %v7193_v10, %v5595_v24  ;;  %v5704_v32 = vmul.f32 %v7194_v2, %v5595_v24  ;;  %v540_v2 = vmul.f32 %v538_v57, %v5611_v13 }
 0x4e4   : > { %3003 = vrot.lane.b32.xlu1 %v2996_v4, %s4161_s12  ;;  %v3021_v4 = vrot.slane %v3015_v38, 1  ;;  %v502_v58 = vrot.slane %v498_v18, 1  ;;  %v476_v49 = vadd.f32 %v472_v62, %v464_v39  ;;  %v7198_v18 = vstv %s5525_s26  ;;  %s3883_s26 = sld [smem:[#allocation10 + $0x111]] }
 0x4e5   : > { %v5706_v7 = vpop.permute.xlu0 %2601  ;;  %v513_v37 = vrot.slane %v509_v43, 2  ;;  %v525_v38 = vrot.slane %v5704_v32, 3  ;;  %v492_v10 = vmul.f32 %v7198_v18, %v5611_v13  ;;  %v3038_v43 = vmul.f32 %v5647_v42, %v4379_v27 }
 0x4e6   : > { %7195 = vst [vmem:[#allocation262_spill] sm:$0xff] %v5706_v7  ;;  %v5713_v48 = vpop.permute.xlu1 %2582  ;;  %v514_v39 = vrot.slane %v510_v51, 2  ;;  %v533_v62 = vmul.f32 %v7201_v11, %v5595_v24  ;;  %v555_v18 = vrot.slane %v551_v54, 2  ;;  %v7205_v54 = vstv %s5561_s23  ;;  %s3719_s23 = sshll.u32 %s4313_s6, 4 }
 0x4e7   : > { %7196 = vst [vmem:[#allocation263_spill] sm:$0xff] %v5713_v48  ;;  %3026 = vrot.lane.b32.xlu0 %v3022_v17, %s4161_s12  ;;  %v522_v48 = vmul.f32 %v7199_v22, %v5611_v13  ;;  %v517_v34 = vadd.f32 %v513_v37, %v505_v29  ;;  %v3017_v17 = vmul.f32 %v5644_v36, %v4385_v31  ;;  %v544_v22 = vrot.slane %v540_v2, 1  ;;  %s251_s11 = scalar_lea.vmem [#allocation11], %s3719_s23 }
 0x4e8   : > { %3024 = vrot.lane.b32.xlu1 %v3021_v4, %s4161_s12  ;;  %v506_v4 = vadd.f32 %v502_v58, %v492_v10  ;;  %v547_v51 = vadd.f32 %v543_v21, %v533_v62  ;;  %v7203_v29 = vmov %v7201_v11  ;;  %v7204_v11 = vstv %s5553_s21  ;;  %s3885_s21 = sld [smem:[#allocation10 + $0x123]]  ;;  %s3601_s28 = sshll.u32 %s251_s11, 4  ;;  %s6789_s28 = int_to_ptr.vmem [resolvable:$true] %s3601_s28 }
 0x4e9   : > { %v5730_v57 = vpop.permute.xlu0 %2605  ;;  %v534_v37 = vmul.f32 %v7203_v29, %v5611_v13  ;;  %v552_v7 = vmul.f32 %v7204_v11, %v5611_v13  ;;  %v575_v36 = vmul.f32 %v7205_v54, %v5595_v24  ;;  %v7206_v58 = vstv %s5569_s0  ;;  %s6468_s0 = sld [smem:[#allocation10 + $0x8]]  ;;  %s4068_s19 = scalar_lea.vmem %s6789_s28, 256 }
 0x4ea   : > { %7200 = vst [vmem:[#allocation264_spill] sm:$0xff] %v5730_v57  ;;  %v5737_v32 = vpop.permute.xlu1 %2603  ;;  %v585_v57 = vrot.slane %v581_v44, 1  ;;  %v593_v2 = vmul.f32 %v7206_v58, %v5595_v24  ;;  %v3044_v44 = vrot.slane %v3038_v43, 2  ;;  %v3040_v21 = vmul.f32 %v5647_v42, %v4385_v31  ;;  %p4069_p13 = scmp.ne.s32.totalorder %s6789_s28, %s4068_s19 }
 0x4eb   : > { %7202 = vst [vmem:[#allocation265_spill] sm:$0xff] %v5737_v32  ;;  %3173 = vrot.lane.b32.xlu0 %v4341_v5, %s4162_s2  ;;  %v586_v32 = vrot.slane %v582_v25, 1  ;;  %v7208_v10 = vmov %v7205_v54  ;;  %v7209_v25 = vmov %v7206_v58  ;;  %v3023_v11 = vrot.slane %v3017_v17, 1 }
 0x4ec   : > { %3171 = vrot.lane.b32.xlu1 %v4344_v6, %s4162_s2  ;;  %v576_v62 = vmul.f32 %v7208_v10, %v5611_v13  ;;  %v594_v6 = vmul.f32 %v7209_v25, %v5611_v13  ;;  %v3039_v54 = vmul.f32 %v5647_v42, %v4383_v30  ;;  %v518_v58 = vadd.f32 %v514_v39, %v506_v4  ;;  %p4070_p0 = pnand %p4069_p13, %p7471_p9 }
 0x4ed   : > { %v5755_v5 = vpop.permute.xlu0 %2626  ;;  %v548_v26 = vadd.f32 %v544_v22, %v534_v37  ;;  %v589_v14 = vadd.f32 %v585_v57, %v575_v36  ;;  %v559_v10 = vadd.f32 %v555_v18, %v547_v51  ;;  %v556_v9 = vrot.slane %v552_v7, 2 }
 0x4ee   : > { %7207 = vst [vmem:[#allocation266_spill] sm:$0xff] %v5755_v5  ;;  %v5765_v29 = vpop.permute.xlu1 %2624  ;;  %v7211_v5 = vstv %s5556_s10  ;;  %v590_v23 = vadd.f32 %v586_v32, %v576_v62  ;;  %v597_v17 = vrot.slane %v593_v2, 2  ;;  %v7213_v42 = vstv %s5572_s1  ;;  %s6478_s1 = sld [smem:[#allocation10 + $0x11]]  ;;  %p4071_p3 = pneg %p4070_p0 }
 0x4ef   : > { %7210 = vst [vmem:[#allocation267_spill] sm:$0xff] %v5765_v29  ;;  %v563_v43 = vmul.f32 %v7211_v5, %v5595_v24  ;;  %3047 = vrot.lane.b32.xlu0 %v3044_v44, %s4161_s12  ;;  %v7212_v20 = vmov %v7211_v5  ;;  %v605_v39 = vmul.f32 %v7213_v42, %v5595_v24  ;;  %v3046_v29 = vrot.slane %v3040_v21, 2  ;;  %s3889_s10 = sld [smem:[#allocation10 + $0x1a3]] }
 0x4f0   : > { %v564_v25 = vmul.f32 %v7212_v20, %v5611_v13  ;;  %3028 = vrot.lane.b32.xlu1 %v3023_v11, %s4161_s12  ;;  %v3062_v57 = vmul.f32 %v5653_v15, %v4383_v30  ;;  %v598_v22 = vrot.slane %v594_v6, 2  ;;  %v7214_v18 = vmov %v7213_v42 }
 0x4f1   : > { %v5780_v4 = vpop.permute.xlu0 %2644  ;;  %v606_v7 = vmul.f32 %v7214_v18, %v5611_v13  ;;  %v3045_v20 = vrot.slane %v3039_v54, 2  ;;  %v3061_v32 = vmul.f32 %v5653_v15, %v4379_v27  ;;  %v7215_v37 = vrot.slane %v5657_v50, 3 }
 0x4f2   : > { %v5787_v51 = vpop.permute.xlu1 %2628  ;;  %v526_v36 = vrot.slane %v522_v48, 3  ;;  %v560_v2 = vadd.f32 %v556_v9, %v548_v26  ;;  %v601_v5 = vadd.f32 %v597_v17, %v589_v14  ;;  %v7216_v44 = vrot.slane %v5674_v0, 3 }
 0x4f3   : > { %v487_v24 = vadd.f32 %v7215_v37, %v5708_v3  ;;  %3051 = vrot.lane.b32.xlu0 %v3046_v29, %s4161_s12  ;;  %v5797_v62 = vadd.f32 %v525_v38, %v517_v34  ;;  %v567_v13 = vrot.slane %v563_v43, 3  ;;  %v602_v6 = vadd.f32 %v598_v22, %v590_v23 }
 0x4f4   : > { %v488_v21 = vadd.f32 %v7216_v44, %v476_v49  ;;  %3049 = vrot.lane.b32.xlu1 %v3045_v20, %s4161_s12  ;;  %v5800_v11 = vadd.f32 %v526_v36, %v518_v58  ;;  %v568_v54 = vrot.slane %v564_v25, 3  ;;  %v609_v42 = vrot.slane %v605_v39, 3 }
 0x4f5   : > { %v5802_v50 = vpop.permute.xlu0 %2648  ;;  %v3068_v48 = vrot.slane %v3062_v57, 3  ;;  %v5804_v9 = vadd.f32 %v567_v13, %v559_v10  ;;  %v610_v14 = vrot.slane %v606_v7, 3  ;;  %v3067_v0 = vrot.slane %v3061_v32, 3 }
 0x4f6   : > { %v5806_v26 = vpop.permute.xlu1 %2646  ;;  %v3063_v3 = vmul.f32 %v5653_v15, %v4385_v31  ;;  %v630_v23 = vsel %vm629_vm8, %v4512_v47, %v4520_v53  ;;  %v5813_v49 = vadd.f32 %v568_v54, %v560_v2  ;;  %v5815_v38 = vadd.f32 %v609_v42, %v601_v5 }
 0x4f7   : > { %3072 = vrot.lane.b32.xlu0 %v3068_v48, %s4161_s12  ;;  %v3105_v34 = vmul.f32 %v5664_v19, %v4383_v30  ;;  %v5820_v29 = vadd.f32 %v610_v14, %v602_v6  ;;  %v3104_v15 = vmul.f32 %v5664_v19, %v4379_v27  ;;  %v5827_v47 = vmul.f32 %v5670_v12, %v4379_v27 }
 0x4f8   : > { %3070 = vrot.lane.b32.xlu1 %v3067_v0, %s4161_s12  ;;  %v653_v58 = vsel %vm629_vm8, %v4552_v28, %v4572_v45  ;;  %v3084_v10 = vmul.f32 %v5661_v33, %v4379_v27  ;;  %v3086_v25 = vmul.f32 %v5661_v33, %v4385_v31  ;;  %v3085_v17 = vmul.f32 %v5661_v33, %v4383_v30 }
 0x4f9   : > { %v5832_v43 = vpop.permute.xlu0 %2669  ;;  %v634_v39 = vadd.f32 %v630_v23, %v487_v24  ;;  %v3069_v22 = vrot.slane %v3063_v3, 3  ;;  %v5844_v18 = vmul.f32 %v5664_v19, %v4385_v31  ;;  %v5848_v28 = vmul.f32 %v5670_v12, %v4385_v31  ;;  %v7219_v23 = vld [vmem:[#allocation22_spill] sm:$0xff] }
 0x4fa   : > { %v5840_v57 = vpop.permute.xlu1 %2667  ;;  %v631_v7 = vsel %vm629_vm8, %v4520_v53, %v4518_v52  ;;  %v676_v33 = vsel %vm629_vm8, %v4582_v55, %v4567_v41  ;;  %v3111_v20 = vrot.slane %v3105_v34, 1  ;;  %v5859_v32 = vmul.f32 %v5670_v12, %v4383_v30  ;;  %v7220_v34 = vld [vmem:[#allocation23_spill] sm:$0xff] }
 0x4fb   : > { %3090 = vrot.lane.b32.xlu0 %v3084_v10, %s4161_s12  ;;  %v657_v19 = vadd.f32 %v653_v58, %v634_v39  ;;  %v3110_v37 = vrot.slane %v3104_v15, 1  ;;  %v3133_v24 = vrot.slane %v5827_v47, 2  ;;  %v5865_v52 = vmul.f32 %v5690_v40, %v4383_v30 }
 0x4fc   : > { %3074 = vrot.lane.b32.xlu1 %v3069_v22, %s4161_s12  ;;  %v654_v53 = vsel %vm629_vm8, %v4572_v45, %v4560_v35  ;;  %v699_v55 = vsel %vm629_vm8, %v4574_v46, %v4598_v16  ;;  %v5877_v36 = vmul.f32 %v5690_v40, %v4379_v27  ;;  %v5881_v2 = vmul.f32 %v5690_v40, %v4385_v31  ;;  %v7223_v22 = vld [vmem:[#allocation63_spill] sm:$0xff] }
 0x4fd   : > { %v5873_v12 = vpop.permute.xlu0 %2690  ;;  %v635_v5 = vadd.f32 %v631_v7, %v488_v21  ;;  %v680_v44 = vadd.f32 %v676_v33, %v657_v19  ;;  %v3112_v35 = vrot.slane %v5844_v18, 1  ;;  %v3135_v45 = vrot.slane %v5848_v28, 2  ;;  %v7225_v7 = vld [vmem:[#allocation24_spill] sm:$0xff]  ;;  %v7226_v33 = vld [vmem:[#allocation26_spill] sm:$0xff]  ;;  %v7253_v28 = vld [vmem:[#allocation111_spill] sm:$0xff] }
 0x4fe   : > { %v5883_v13 = vpop.permute.xlu1 %2671  ;;  %v719_v46 = vsel %vm629_vm8, %v4526_v59, %v4528_v60  ;;  %v677_v6 = vsel %vm629_vm8, %v4567_v41, %v4590_v63  ;;  %v1008_v40 = vsel %vm1007_vm9, %v4691_v1, %v4697_v61  ;;  %v3134_v21 = vrot.slane %v5859_v32, 2  ;;  %v7217_v63 = vld [vmem:[#allocation60_spill] sm:$0xff]  ;;  %v7218_v1 = vld [vmem:[#allocation59_spill] sm:$0xff] }
 0x4ff   : > { %3094 = vrot.lane.b32.xlu0 %v3086_v25, %s4161_s12  ;;  %v720_v54 = vsel %vm629_vm8, %v4528_v60, %v4534_v8  ;;  %v658_v42 = vadd.f32 %v654_v53, %v635_v5  ;;  %v703_v48 = vadd.f32 %v699_v55, %v680_v44  ;;  %v3157_v59 = vrot.slane %v5865_v52, 3  ;;  %v7227_v5 = vld [vmem:[#allocation27_spill] sm:$0xff]  ;;  %v7228_v44 = vld [vmem:[#allocation61_spill] sm:$0xff] }
 0x500   : > { %3092 = vrot.lane.b32.xlu1 %v3085_v17, %s4161_s12  ;;  %v700_v41 = vsel %vm629_vm8, %v4598_v16, %v4584_v56  ;;  %v1031_v14 = vsel %vm1007_vm9, %v7218_v1, %v7217_v63  ;;  %v3156_v3 = vrot.slane %v5877_v36, 3  ;;  %v3158_v60 = vrot.slane %v5881_v2, 3  ;;  %v7221_v16 = vld [vmem:[#allocation25_spill] sm:$0xff]  ;;  %v7222_v17 = vld [vmem:[#allocation55_spill] sm:$0xff] }
 0x501   : > { %v5909_v0 = vpop.permute.xlu0 %2694  ;;  %v723_v8 = vadd.f32 %v719_v46, %v5797_v62  ;;  %v808_v15 = vsel %vm629_vm8, %v7220_v34, %v7219_v23  ;;  %v681_v47 = vadd.f32 %v677_v6, %v658_v42  ;;  %v1012_v58 = vadd.f32 %v1008_v40, %v703_v48  ;;  %v7224_v62 = vld [vmem:[#allocation62_spill] sm:$0xff]  ;;  %v7230_v6 = vld [vmem:[#allocation65_spill] sm:$0xff]  ;;  %v7232_v48 = vld [vmem:[#allocation28_spill] sm:$0xff] }
 0x502   : > { %v5917_v10 = vpop.permute.xlu1 %2692  ;;  %v724_v56 = vadd.f32 %v720_v54, %v5800_v11  ;;  %v809_v25 = vsel %vm629_vm8, %v7219_v23, %v7221_v16  ;;  %v1009_v39 = vsel %vm1007_vm9, %v4697_v61, %v7222_v17  ;;  %v1054_v18 = vsel %vm1007_vm9, %v7224_v62, %v7223_v22  ;;  %v7231_v42 = vld [vmem:[#allocation30_spill] sm:$0xff]  ;;  %v7236_v16 = vld [vmem:[#allocation101_spill] sm:$0xff]  ;;  %v7237_v62 = vld [vmem:[#allocation31_spill] sm:$0xff] }
 0x503   : > { %3115 = vrot.lane.b32.xlu0 %v3111_v20, %s4161_s12  ;;  %v897_v19 = vsel %vm629_vm8, %v7226_v33, %v7225_v7  ;;  %v704_v53 = vadd.f32 %v700_v41, %v681_v47  ;;  %v1035_v11 = vadd.f32 %v1031_v14, %v1012_v58  ;;  %v812_v55 = vadd.f32 %v808_v15, %v5804_v9  ;;  %v7229_v20 = vld [vmem:[#allocation66_spill] sm:$0xff]  ;;  %v7233_v41 = vld [vmem:[#allocation29_spill] sm:$0xff]  ;;  %v7234_v15 = vld [vmem:[#allocation64_spill] sm:$0xff] }
 0x504   : > { %3113 = vrot.lane.b32.xlu1 %v3110_v37, %s4161_s12  ;;  %v898_v61 = vsel %vm629_vm8, %v7225_v7, %v7227_v5  ;;  %v1032_v46 = vsel %vm1007_vm9, %v7217_v63, %v7228_v44  ;;  %v1077_v40 = vsel %vm1007_vm9, %v7230_v6, %v7229_v20  ;;  %v742_v37 = vsel %vm629_vm8, %v7232_v48, %v7231_v42  ;;  %v7235_v58 = vld [vmem:[#allocation103_spill] sm:$0xff]  ;;  %v7242_v5 = vld [vmem:[#allocation34_spill] sm:$0xff]  ;;  %v7243_v44 = vld [vmem:[#allocation36_spill] sm:$0xff] }
 0x505   : > { %v5944_v54 = vpop.permute.xlu0 %2715  ;;  %v743_v9 = vsel %vm629_vm8, %v7231_v42, %v7233_v41  ;;  %v1013_v1 = vadd.f32 %v1009_v39, %v704_v53  ;;  %v1058_v14 = vadd.f32 %v1054_v18, %v1035_v11  ;;  %v813_v63 = vadd.f32 %v809_v25, %v5813_v49  ;;  %v7238_v18 = vld [vmem:[#allocation32_spill] sm:$0xff]  ;;  %v7241_v11 = vld [vmem:[#allocation105_spill] sm:$0xff]  ;;  %v7246_v48 = vld [vmem:[#allocation102_spill] sm:$0xff] }
 0x506   : > { %v5952_v23 = vpop.permute.xlu1 %2713  ;;  %v5956_v34 = vadd.f32 %v897_v19, %v5815_v38  ;;  %v1055_v47 = vsel %vm1007_vm9, %v7223_v22, %v7234_v15  ;;  %v1377_v17 = vsel %vm1376_vm10, %v7236_v16, %v7235_v58  ;;  %v5966_v39 = vadd.f32 %v898_v61, %v5820_v29  ;;  %v7239_v22 = vld [vmem:[#allocation67_spill] sm:$0xff]  ;;  %v7240_v53 = vld [vmem:[#allocation104_spill] sm:$0xff]  ;;  %v7247_v41 = vld [vmem:[#allocation109_spill] sm:$0xff] }
 0x507   : > { %3136 = vrot.lane.b32.xlu0 %v3133_v24, %s4161_s12  ;;  %v765_v49 = vsel %vm629_vm8, %v7238_v18, %v7237_v62  ;;  %v1036_v25 = vadd.f32 %v1032_v46, %v1013_v1  ;;  %v1081_v38 = vadd.f32 %v1077_v40, %v1058_v14  ;;  %v746_v7 = vadd.f32 %v742_v37, %v723_v8  ;;  %v7244_v46 = vld [vmem:[#allocation33_spill] sm:$0xff]  ;;  %v7249_v14 = vld [vmem:[#allocation38_spill] sm:$0xff]  ;;  %v7251_v18 = vld [vmem:[#allocation107_spill] sm:$0xff] }
 0x508   : > { %3117 = vrot.lane.b32.xlu1 %v3112_v35, %s4161_s12  ;;  %v747_v33 = vadd.f32 %v743_v9, %v724_v56  ;;  %v1078_v19 = vsel %vm1007_vm9, %v7229_v20, %v7239_v22  ;;  %v1400_v24 = vsel %vm1376_vm10, %v7241_v11, %v7240_v53  ;;  %v766_v61 = vsel %vm629_vm8, %v7237_v62, %v7242_v5  ;;  %v7245_v20 = vld [vmem:[#allocation35_spill] sm:$0xff]  ;;  %v7248_v9 = vld [vmem:[#allocation106_spill] sm:$0xff]  ;;  %v7250_v15 = vld [vmem:[#allocation37_spill] sm:$0xff] }
 0x509   : > { %v5978_v29 = vpop.permute.xlu0 %2733  ;;  %v788_v35 = vsel %vm629_vm8, %v7244_v46, %v7243_v44  ;;  %v1059_v8 = vadd.f32 %v1055_v47, %v1036_v25  ;;  %v1381_v56 = vadd.f32 %v1377_v17, %v1081_v38  ;;  %v769_v40 = vadd.f32 %v765_v49, %v746_v7  ;;  %v7252_v25 = vld [vmem:[#allocation110_spill] sm:$0xff]  ;;  %v7254_v7 = vld [vmem:[#allocation39_spill] sm:$0xff]  ;;  %v7256_v11 = vld [vmem:[#allocation40_spill] sm:$0xff] }
 0x50a   : > { %v5986_v6 = vpop.permute.xlu1 %2717  ;;  %v789_v42 = vsel %vm629_vm8, %v7243_v44, %v7245_v20  ;;  %v1378_v37 = vsel %vm1376_vm10, %v7235_v58, %v7246_v48  ;;  %v1423_v1 = vsel %vm1376_vm10, %v7248_v9, %v7247_v41  ;;  %v831_v47 = vsel %vm629_vm8, %v7250_v15, %v7249_v14  ;;  %v7258_v46 = vld [vmem:[#allocation151_spill] sm:$0xff]  ;;  %v7261_v20 = vld [vmem:[#allocation44_spill] sm:$0xff]  ;;  %v7278_v2 = vld [vmem:[#allocation57_spill] sm:$0xff] }
 0x50b   : > { %3140 = vrot.lane.b32.xlu0 %v3135_v45, %s4161_s12  ;;  %v1082_v16 = vadd.f32 %v1078_v19, %v1059_v8  ;;  %v1404_v17 = vadd.f32 %v1400_v24, %v1381_v56  ;;  %v770_v58 = vadd.f32 %v766_v61, %v747_v33  ;;  %v792_v62 = vadd.f32 %v788_v35, %v769_v40  ;;  %v7255_v19 = vld [vmem:[#allocation41_spill] sm:$0xff]  ;;  %v7257_v61 = vld [vmem:[#allocation108_spill] sm:$0xff]  ;;  %v7260_v56 = vld [vmem:[#allocation42_spill] sm:$0xff] }
 0x50c   : > { %3138 = vrot.lane.b32.xlu1 %v3134_v21, %s4161_s12  ;;  %v1401_v49 = vsel %vm1376_vm10, %v7240_v53, %v7251_v18  ;;  %v1446_v45 = vsel %vm1376_vm10, %v7253_v28, %v7252_v25  ;;  %v832_v22 = vsel %vm629_vm8, %v7249_v14, %v7254_v7  ;;  %v854_v32 = vsel %vm629_vm8, %v7256_v11, %v7255_v19  ;;  %v7259_v35 = vld [vmem:[#allocation148_spill] sm:$0xff]  ;;  %v7262_v48 = vld [vmem:[#allocation43_spill] sm:$0xff]  ;;  %v7265_v14 = vld [vmem:[#allocation153_spill] sm:$0xff] }
 0x50d   : > { %v6012_v38 = vpop.permute.xlu0 %2737  ;;  %v1382_v21 = vadd.f32 %v1378_v37, %v1082_v16  ;;  %v1427_v33 = vadd.f32 %v1423_v1, %v1404_v17  ;;  %v793_v5 = vadd.f32 %v789_v42, %v770_v58  ;;  %v835_v53 = vadd.f32 %v831_v47, %v812_v55  ;;  %v7263_v1 = vld [vmem:[#allocation113_spill] sm:$0xff]  ;;  %v7267_v58 = vld [vmem:[#allocation46_spill] sm:$0xff]  ;;  %v7268_v18 = vld [vmem:[#allocation47_spill] sm:$0xff] }
 0x50e   : > { %v6020_v24 = vpop.permute.xlu1 %2735  ;;  %v1424_v44 = vsel %vm1376_vm10, %v7247_v41, %v7257_v61  ;;  %v1734_v8 = vsel %vm1733_vm11, %v7259_v35, %v7258_v46  ;;  %v855_v40 = vsel %vm629_vm8, %v7255_v19, %v7260_v56  ;;  %v877_v55 = vsel %vm629_vm8, %v7262_v48, %v7261_v20  ;;  %v7266_v16 = vld [vmem:[#allocation45_spill] sm:$0xff]  ;;  %v7271_v19 = vld [vmem:[#allocation154_spill] sm:$0xff]  ;;  %v7275_v56 = vld [vmem:[#allocation159_spill] sm:$0xff] }
 0x50f   : > { %3161 = vrot.lane.b32.xlu0 %v3157_v59, %s4161_s12  ;;  %v1405_v42 = vadd.f32 %v1401_v49, %v1382_v21  ;;  %v1450_v37 = vadd.f32 %v1446_v45, %v1427_v33  ;;  %v836_v41 = vadd.f32 %v832_v22, %v813_v63  ;;  %v858_v9 = vadd.f32 %v854_v32, %v835_v53  ;;  %v7264_v59 = vld [vmem:[#allocation152_spill] sm:$0xff]  ;;  %v7269_v45 = vld [vmem:[#allocation150_spill] sm:$0xff]  ;;  %v7270_v22 = vld [vmem:[#allocation157_spill] sm:$0xff] }
 0x510   : > { %3159 = vrot.lane.b32.xlu1 %v3156_v3, %s4161_s12  ;;  %v1447_v52 = vsel %vm1376_vm10, %v7252_v25, %v7263_v1  ;;  %v1757_v15 = vsel %vm1733_vm11, %v7265_v14, %v7264_v59  ;;  %v878_v17 = vsel %vm629_vm8, %v7261_v20, %v7266_v16  ;;  %v920_v36 = vsel %vm629_vm8, %v7268_v18, %v7267_v58  ;;  %v7272_v32 = vld [vmem:[#allocation49_spill] sm:$0xff]  ;;  %v7276_v48 = vld [vmem:[#allocation51_spill] sm:$0xff]  ;;  %v7281_v14 = vld [vmem:[#allocation156_spill] sm:$0xff] }
 0x511   : > { %v6046_v47 = vpop.permute.xlu0 %2758  ;;  %v1428_v3 = vadd.f32 %v1424_v44, %v1405_v42  ;;  %v1738_v63 = vadd.f32 %v1734_v8, %v1450_v37  ;;  %v859_v28 = vadd.f32 %v855_v40, %v836_v41  ;;  %v6056_v25 = vadd.f32 %v877_v55, %v858_v9  ;;  %v7274_v8 = vld [vmem:[#allocation158_spill] sm:$0xff]  ;;  %v7277_v55 = vld [vmem:[#allocation48_spill] sm:$0xff]  ;;  %v7282_v16 = vld [vmem:[#allocation199_spill] sm:$0xff] }
 0x512   : > { %v6054_v49 = vpop.permute.xlu1 %2756  ;;  %v1735_v7 = vsel %vm1733_vm11, %v7258_v46, %v7269_v45  ;;  %v1780_v11 = vsel %vm1733_vm11, %v7271_v19, %v7270_v22  ;;  %v921_v21 = vsel %vm629_vm8, %v7267_v58, %v7272_v32  ;;  %v924_v44 = vadd.f32 %v920_v36, %v5956_v34  ;;  %v7273_v46 = vld [vmem:[#allocation155_spill] sm:$0xff]  ;;  %v7284_v18 = vld [vmem:[#allocation50_spill] sm:$0xff]  ;;  %v7288_v32 = vld [vmem:[#allocation200_spill] sm:$0xff] }
 0x513   : > { %v1451_v33 = vadd.f32 %v1447_v52, %v1428_v3  ;;  %v1761_v53 = vadd.f32 %v1757_v15, %v1738_v63  ;;  %v6070_v61 = vadd.f32 %v878_v17, %v859_v28  ;;  %v1758_v35 = vsel %vm1733_vm11, %v7264_v59, %v7273_v46  ;;  %v7280_v52 = vld [vmem:[#allocation58_spill] sm:$0xff]  ;;  %v7283_v17 = vld [vmem:[#allocation197_spill] sm:$0xff]  ;;  %v7285_v3 = vld [vmem:[#allocation68_spill] sm:$0xff] }
 0x514   : > { %3163 = vrot.lane.b32.xlu1 %v3158_v60, %s4161_s12  ;;  %v1803_v40 = vsel %vm1733_vm11, %v7275_v56, %v7274_v8  ;;  %v943_v42 = vsel %vm629_vm8, %v7277_v55, %v7276_v48  ;;  %v7279_v60 = vld [vmem:[#allocation56_spill] sm:$0xff]  ;;  %v925_v1 = vadd.f32 %v921_v21, %v5966_v39  ;;  %v1098_v59 = vsel %vm1007_vm9, %v7278_v2, %v7280_v52  ;;  %v7286_v63 = vld [vmem:[#allocation69_spill] sm:$0xff]  ;;  %v7290_v56 = vld [vmem:[#allocation71_spill] sm:$0xff]  ;;  %s3882_s12 = sld [smem:[#allocation10 + $0x108]] }
 0x515   : > { %v6079_v20 = vpop.permute.xlu0 %2779  ;;  %v1097_v37 = vsel %vm1007_vm9, %v7279_v60, %v7278_v2  ;;  %v1739_v41 = vadd.f32 %v1735_v7, %v1451_v33  ;;  %v1784_v34 = vadd.f32 %v1780_v11, %v1761_v53  ;;  %v1781_v15 = vsel %vm1733_vm11, %v7270_v22, %v7281_v14  ;;  %v7287_v11 = vld [vmem:[#allocation161_spill] sm:$0xff]  ;;  %v7293_v2 = vld [vmem:[#allocation198_spill] sm:$0xff] }
 0x516   : > { %v6087_v9 = vpop.permute.xlu1 %2760  ;;  %v2103_v58 = vsel %vm2102_vm12, %v7283_v17, %v7282_v16  ;;  %v944_v36 = vsel %vm629_vm8, %v7276_v48, %v7284_v18  ;;  %v1120_v39 = vsel %vm1007_vm9, %v7286_v63, %v7285_v3  ;;  %v6105_v7 = vadd.f32 %v943_v42, %v924_v44  ;;  %v7289_v21 = vld [vmem:[#allocation201_spill] sm:$0xff]  ;;  %v7292_v42 = vld [vmem:[#allocation70_spill] sm:$0xff] }
 0x517   : > { %v1762_v28 = vadd.f32 %v1758_v35, %v1739_v41  ;;  %v1807_v45 = vadd.f32 %v1803_v40, %v1784_v34  ;;  %v1101_v19 = vadd.f32 %v1097_v37, %v792_v62  ;;  %v1804_v22 = vsel %vm1733_vm11, %v7274_v8, %v7287_v11  ;;  %v7291_v55 = vld [vmem:[#allocation73_spill] sm:$0xff]  ;;  %v7295_v41 = vld [vmem:[#allocation202_spill] sm:$0xff]  ;;  %v7296_v34 = vld [vmem:[#allocation72_spill] sm:$0xff] }
 0x518   : > { %v2126_v33 = vsel %vm2102_vm12, %v7289_v21, %v7288_v32  ;;  %v1102_v46 = vadd.f32 %v1098_v59, %v793_v5  ;;  %v1121_v48 = vsel %vm1007_vm9, %v7285_v3, %v7290_v56  ;;  %v1143_v8 = vsel %vm1007_vm9, %v7292_v42, %v7291_v55  ;;  %v7294_v37 = vld [vmem:[#allocation205_spill] sm:$0xff]  ;;  %v7297_v17 = vld [vmem:[#allocation74_spill] sm:$0xff]  ;;  %v7299_v3 = vld [vmem:[#allocation203_spill] sm:$0xff] }
 0x519   : > { %v6113_v53 = vpop.permute.xlu0 %2783  ;;  %v1785_v35 = vadd.f32 %v1781_v15, %v1762_v28  ;;  %v2107_v40 = vadd.f32 %v2103_v58, %v1807_v45  ;;  %v1124_v62 = vadd.f32 %v1120_v39, %v1101_v19  ;;  %v2104_v60 = vsel %vm2102_vm12, %v7282_v16, %v7293_v2  ;;  %v7298_v58 = vld [vmem:[#allocation75_spill] sm:$0xff]  ;;  %v7300_v63 = vld [vmem:[#allocation206_spill] sm:$0xff]  ;;  %v7302_v11 = vld [vmem:[#allocation77_spill] sm:$0xff] }
 0x51a   : > { %v6118_v44 = vpop.permute.xlu1 %2781  ;;  %v2149_v5 = vsel %vm2102_vm12, %v7295_v41, %v7294_v37  ;;  %v1144_v52 = vsel %vm1007_vm9, %v7291_v55, %v7296_v34  ;;  %v1125_v15 = vadd.f32 %v1121_v48, %v1102_v46  ;;  %v1166_v18 = vsel %vm1007_vm9, %v7298_v58, %v7297_v17  ;;  %v7301_v39 = vld [vmem:[#allocation207_spill] sm:$0xff]  ;;  %v7307_v2 = vld [vmem:[#allocation245_spill] sm:$0xff]  ;;  %v7308_v41 = vld [vmem:[#allocation114_spill] sm:$0xff] }
 0x51b   : > { %v1808_v59 = vadd.f32 %v1804_v22, %v1785_v35  ;;  %v2130_v14 = vadd.f32 %v2126_v33, %v2107_v40  ;;  %v2127_v16 = vsel %vm2102_vm12, %v7288_v32, %v7299_v3  ;;  %v2172_v28 = vsel %vm2102_vm12, %v7301_v39, %v7300_v63  ;;  %v7303_v48 = vld [vmem:[#allocation115_spill] sm:$0xff]  ;;  %v7304_v35 = vld [vmem:[#allocation112_spill] sm:$0xff]  ;;  %v7313_v3 = vld [vmem:[#allocation249_spill] sm:$0xff] }
 0x51c   : > { %v1147_v19 = vadd.f32 %v1143_v8, %v1124_v62  ;;  %v1167_v22 = vsel %vm1007_vm9, %v7297_v17, %v7302_v11  ;;  %v1148_v56 = vadd.f32 %v1144_v52, %v1125_v15  ;;  %v1466_v32 = vsel %vm1376_vm10, %v7304_v35, %v7303_v48  ;;  %v7305_v40 = vld [vmem:[#allocation204_spill] sm:$0xff]  ;;  %v7306_v42 = vld [vmem:[#allocation247_spill] sm:$0xff]  ;;  %v7311_v17 = vld [vmem:[#allocation209_spill] sm:$0xff] }
 0x51d   : > { %v6141_v45 = vpop.permute.xlu0 %2804  ;;  %v2108_v21 = vadd.f32 %v2104_v60, %v1808_v59  ;;  %v2153_v33 = vadd.f32 %v2149_v5, %v2130_v14  ;;  %v2150_v55 = vsel %vm2102_vm12, %v7294_v37, %v7305_v40  ;;  %v2472_v62 = vsel %vm2471_vm13, %v7307_v2, %v7306_v42  ;;  %v7309_v59 = vld [vmem:[#allocation116_spill] sm:$0xff]  ;;  %v7310_v14 = vld [vmem:[#allocation117_spill] sm:$0xff]  ;;  %v7317_v35 = vld [vmem:[#allocation246_spill] sm:$0xff] }
 0x51e   : > { %v6146_v46 = vpop.permute.xlu1 %2802  ;;  %v1170_v8 = vadd.f32 %v1166_v18, %v1147_v19  ;;  %v1467_v60 = vsel %vm1376_vm10, %v7303_v48, %v7308_v41  ;;  %v1171_v52 = vadd.f32 %v1167_v22, %v1148_v56  ;;  %v1489_v15 = vsel %vm1376_vm10, %v7310_v14, %v7309_v59  ;;  %v7312_v58 = vld [vmem:[#allocation248_spill] sm:$0xff]  ;;  %v7318_v40 = vld [vmem:[#allocation253_spill] sm:$0xff]  ;;  %v7319_v2 = vld [vmem:[#allocation250_spill] sm:$0xff] }
 0x51f   : > { %v2131_v5 = vadd.f32 %v2127_v16, %v2108_v21  ;;  %v2176_v34 = vadd.f32 %v2172_v28, %v2153_v33  ;;  %v2173_v37 = vsel %vm2102_vm12, %v7300_v63, %v7311_v17  ;;  %v2495_v39 = vsel %vm2471_vm13, %v7313_v3, %v7312_v58  ;;  %v7315_v21 = vld [vmem:[#allocation121_spill] sm:$0xff]  ;;  %v7316_v33 = vld [vmem:[#allocation118_spill] sm:$0xff]  ;;  %v7325_v14 = vld [vmem:[#allocation255_spill] sm:$0xff] }
 0x520   : > { %v6169_v19 = vadd.f32 %v944_v36, %v925_v1  ;;  %v1470_v11 = vadd.f32 %v1466_v32, %v1170_v8  ;;  %v1471_v22 = vadd.f32 %v1467_v60, %v1171_v52  ;;  %v1512_v56 = vsel %vm1376_vm10, %v7316_v33, %v7315_v21  ;;  %v7321_v8 = vld [vmem:[#allocation122_spill] sm:$0xff]  ;;  %v7322_v60 = vld [vmem:[#allocation123_spill] sm:$0xff]  ;;  %v7328_v33 = vld [vmem:[#allocation160_spill] sm:$0xff] }
 0x521   : > { %v2823_v18 = vpop.permute.xlu0 %2822  ;;  %v2154_v48 = vadd.f32 %v2150_v55, %v2131_v5  ;;  %v2476_v16 = vadd.f32 %v2472_v62, %v2176_v34  ;;  %v2473_v63 = vsel %vm2471_vm13, %v7306_v42, %v7317_v35  ;;  %v2518_v41 = vsel %vm2471_vm13, %v7319_v2, %v7318_v40  ;;  %v7320_v55 = vld [vmem:[#allocation119_spill] sm:$0xff]  ;;  %v7324_v52 = vld [vmem:[#allocation254_spill] sm:$0xff]  ;;  %v7329_v2 = vld [vmem:[#allocation252_spill] sm:$0xff] }
 0x522   : > { %v6171_v28 = vpop.permute.xlu1 %2806  ;;  %v1493_v1 = vadd.f32 %v1489_v15, %v1470_v11  ;;  %v1490_v62 = vsel %vm1376_vm10, %v7309_v59, %v7320_v55  ;;  %v1535_v5 = vsel %vm1376_vm10, %v7322_v60, %v7321_v8  ;;  %v7323_v34 = vld [vmem:[#allocation251_spill] sm:$0xff]  ;;  %v2541_v17 = vsel %vm2471_vm13, %v7325_v14, %v7324_v52 }
 0x523   : > { %7314 = vst [vmem:[#allocation60_spill] sm:$0xff] %v6171_v28  ;;  %v2177_v36 = vadd.f32 %v2173_v37, %v2154_v48  ;;  %v2499_v32 = vadd.f32 %v2495_v39, %v2476_v16  ;;  %v2496_v42 = vsel %vm2471_vm13, %v7312_v58, %v7323_v34  ;;  %v7326_v37 = vld [vmem:[#allocation120_spill] sm:$0xff]  ;;  %v7327_v16 = vld [vmem:[#allocation163_spill] sm:$0xff]  ;;  %v2519_v58 = vsel %vm2471_vm13, %v7318_v40, %v7329_v2  ;;  %v7339_v2 = vld [vmem:[#allocation169_spill] sm:$0xff] }
 0x524   : > { %v1513_v3 = vsel %vm1376_vm10, %v7315_v21, %v7326_v37  ;;  %v1516_v39 = vadd.f32 %v1512_v56, %v1493_v1  ;;  %v1823_v35 = vsel %vm1733_vm11, %v7328_v33, %v7327_v16  ;;  %v1494_v34 = vadd.f32 %v1490_v62, %v1471_v22  ;;  %v7330_v56 = vld [vmem:[#allocation52_spill] sm:$0xff]  ;;  %v7332_v1 = vld [vmem:[#allocation125_spill] sm:$0xff] }
 0x525   : > { %v2827_v15 = vpop.permute.xlu0 %2826  ;;  %v2477_v11 = vadd.f32 %v2473_v63, %v2177_v36  ;;  %v2522_v59 = vadd.f32 %v2518_v41, %v2499_v32  ;;  %v7331_v63 = vld [vmem:[#allocation53_spill] sm:$0xff]  ;;  %v1536_v36 = vsel %vm1376_vm10, %v7321_v8, %v7332_v1  ;;  %v7333_v32 = vld [vmem:[#allocation164_spill] sm:$0xff] }
 0x526   : > { %v2825_v48 = vpop.permute.xlu1 %2824  ;;  %v1539_v14 = vadd.f32 %v1535_v5, %v1516_v39  ;;  %v966_v41 = vsel %vm629_vm8, %v7331_v63, %v7330_v56  ;;  %v7334_v37 = vld [vmem:[#allocation165_spill] sm:$0xff]  ;;  %v1517_v62 = vadd.f32 %v1513_v3, %v1494_v34  ;;  %v7336_v39 = vld [vmem:[#allocation79_spill] sm:$0xff]  ;;  %v7340_v63 = vld [vmem:[#allocation166_spill] sm:$0xff] }
 0x527   : > { %v2829_v55 = vsel %vm2828_vm14, %v2823_v18, %v2825_v48  ;;  %v2830_v60 = vsel %vm2828_vm14, %v2825_v48, %v2827_v15  ;;  %v2500_v28 = vadd.f32 %v2496_v42, %v2477_v11  ;;  %v2545_v21 = vadd.f32 %v2541_v17, %v2522_v59  ;;  %v7335_v33 = vld [vmem:[#allocation257_spill] sm:$0xff]  ;;  %v7337_v11 = vld [vmem:[#allocation76_spill] sm:$0xff]  ;;  %v7338_v48 = vld [vmem:[#allocation162_spill] sm:$0xff] }
 0x528   : > { %v1846_v40 = vsel %vm1733_vm11, %v7334_v37, %v7333_v32  ;;  %v2542_v18 = vsel %vm2471_vm13, %v7324_v52, %v7335_v33  ;;  %v1827_v5 = vadd.f32 %v1823_v35, %v1539_v14  ;;  %v1186_v59 = vsel %vm1007_vm9, %v7337_v11, %v7336_v39  ;;  %v7342_v14 = vld [vmem:[#allocation167_spill] sm:$0xff] }
 0x529   : > { %v2849_v22 = vpop.permute.xlu0 %2848  ;;  %v2523_v42 = vadd.f32 %v2519_v58, %v2500_v28  ;;  %v2833_v17 = vadd.f32 %v2829_v55, %v2545_v21  ;;  %v1824_v8 = vsel %vm1733_vm11, %v7327_v16, %v7338_v48  ;;  %v1869_v1 = vsel %vm1733_vm11, %v7340_v63, %v7339_v2  ;;  %v7341_v55 = vld [vmem:[#allocation78_spill] sm:$0xff]  ;;  %v7344_v33 = vld [vmem:[#allocation171_spill] sm:$0xff]  ;;  %v7349_v48 = vld [vmem:[#allocation208_spill] sm:$0xff] }
 0x52a   : > { %v2847_v15 = vpop.permute.xlu1 %2846  ;;  %v1540_v37 = vadd.f32 %v1536_v36, %v1517_v62  ;;  %v1850_v3 = vadd.f32 %v1846_v40, %v1827_v5  ;;  %v6228_v58 = vadd.f32 %v966_v41, %v6105_v7  ;;  %v1187_v34 = vsel %vm1007_vm9, %v7336_v39, %v7341_v55  ;;  %v7343_v21 = vld [vmem:[#allocation170_spill] sm:$0xff]  ;;  %v7345_v36 = vld [vmem:[#allocation80_spill] sm:$0xff]  ;;  %v7346_v40 = vld [vmem:[#allocation81_spill] sm:$0xff] }
 0x52b   : > { %v2852_v52 = vsel %vm2828_vm14, %v2847_v15, %v2849_v22  ;;  %v2546_v35 = vadd.f32 %v2542_v18, %v2523_v42  ;;  %v1847_v16 = vsel %vm1733_vm11, %v7333_v32, %v7342_v14  ;;  %v1892_v11 = vsel %vm1733_vm11, %v7344_v33, %v7343_v21  ;;  %v7348_v32 = vld [vmem:[#allocation211_spill] sm:$0xff]  ;;  %v7350_v55 = vld [vmem:[#allocation54_spill] sm:$0xff] }
 0x52c   : > { %v2856_v28 = vadd.f32 %v2852_v52, %v2833_v17  ;;  %v1209_v18 = vsel %vm1007_vm9, %v7346_v40, %v7345_v36  ;;  %v1828_v62 = vadd.f32 %v1824_v8, %v1540_v37  ;;  %v1873_v7 = vadd.f32 %v1869_v1, %v1850_v3  ;;  %v7347_v17 = vld [vmem:[#allocation168_spill] sm:$0xff] }
 0x52d   : > { %v2870_v15 = vpop.permute.xlu0 %2869  ;;  %v2834_v41 = vadd.f32 %v2830_v60, %v2546_v35  ;;  %v1190_v42 = vadd.f32 %v1186_v59, %v6056_v25  ;;  %v1870_v39 = vsel %vm1733_vm11, %v7339_v2, %v7347_v17  ;;  %v2192_v63 = vsel %vm2102_vm12, %v7349_v48, %v7348_v32  ;;  %v7351_v59 = vld [vmem:[#allocation173_spill] sm:$0xff]  ;;  %v7352_v3 = vld [vmem:[#allocation212_spill] sm:$0xff] }
 0x52e   : > { %v2851_v5 = vpop.permute.xlu1 %2850  ;;  %v967_v14 = vsel %vm629_vm8, %v7330_v56, %v7350_v55  ;;  %v1851_v8 = vadd.f32 %v1847_v16, %v1828_v62  ;;  %v1896_v1 = vadd.f32 %v1892_v11, %v1873_v7  ;;  %v1191_v37 = vadd.f32 %v1187_v34, %v6070_v61  ;;  %v7353_v35 = vld [vmem:[#allocation213_spill] sm:$0xff]  ;;  %v7356_v16 = vld [vmem:[#allocation82_spill] sm:$0xff] }
 0x52f   : > { %v2853_v52 = vsel %vm2828_vm14, %v2849_v22, %v2851_v5  ;;  %v1213_v25 = vadd.f32 %v1209_v18, %v1190_v42  ;;  %v1893_v2 = vsel %vm1733_vm11, %v7343_v21, %v7351_v59  ;;  %v2215_v33 = vsel %vm2102_vm12, %v7353_v35, %v7352_v3  ;;  %v7354_v22 = vld [vmem:[#allocation83_spill] sm:$0xff]  ;;  %v7355_v56 = vld [vmem:[#allocation85_spill] sm:$0xff]  ;;  %v7357_v18 = vld [vmem:[#allocation210_spill] sm:$0xff] }
 0x530   : > { %v2857_v60 = vadd.f32 %v2853_v52, %v2834_v41  ;;  %v1210_v5 = vsel %vm1007_vm9, %v7345_v36, %v7354_v22  ;;  %v1232_v11 = vsel %vm1007_vm9, %v7356_v16, %v7355_v56  ;;  %v1874_v62 = vadd.f32 %v1870_v39, %v1851_v8  ;;  %v7358_v7 = vld [vmem:[#allocation217_spill] sm:$0xff]  ;;  %v7359_v41 = vld [vmem:[#allocation214_spill] sm:$0xff]  ;;  %v7364_v16 = vld [vmem:[#allocation219_spill] sm:$0xff] }
 0x531   : > { %v2874_v40 = vpop.permute.xlu0 %2873  ;;  %v2196_v61 = vadd.f32 %v2192_v63, %v1896_v1  ;;  %v2193_v21 = vsel %vm2102_vm12, %v7348_v32, %v7357_v18  ;;  %v2238_v42 = vsel %vm2102_vm12, %v7359_v41, %v7358_v7  ;;  %v1214_v35 = vadd.f32 %v1210_v5, %v1191_v37  ;;  %v7360_v39 = vld [vmem:[#allocation86_spill] sm:$0xff]  ;;  %v7361_v63 = vld [vmem:[#allocation87_spill] sm:$0xff]  ;;  %v7365_v41 = vld [vmem:[#allocation84_spill] sm:$0xff] }
 0x532   : > { %v2872_v34 = vpop.permute.xlu1 %2871  ;;  %v1897_v36 = vadd.f32 %v1893_v2, %v1874_v62  ;;  %v1255_v8 = vsel %vm1007_vm9, %v7361_v63, %v7360_v39  ;;  %v7362_v1 = vld [vmem:[#allocation215_spill] sm:$0xff]  ;;  %v7363_v22 = vld [vmem:[#allocation218_spill] sm:$0xff]  ;;  %v1233_v2 = vsel %vm1007_vm9, %v7355_v56, %v7365_v41  ;;  %v7367_v5 = vld [vmem:[#allocation124_spill] sm:$0xff] }
 0x533   : > { %v2875_v17 = vsel %vm2828_vm14, %v2870_v15, %v2872_v34  ;;  %v2876_v48 = vsel %vm2828_vm14, %v2872_v34, %v2874_v40  ;;  %v2219_v52 = vadd.f32 %v2215_v33, %v2196_v61  ;;  %v2216_v32 = vsel %vm2102_vm12, %v7352_v3, %v7362_v1  ;;  %v7366_v40 = vld [vmem:[#allocation127_spill] sm:$0xff]  ;;  %v7368_v61 = vld [vmem:[#allocation216_spill] sm:$0xff] }
 0x534   : > { %v2879_v55 = vadd.f32 %v2875_v17, %v2856_v28  ;;  %v2880_v59 = vadd.f32 %v2876_v48, %v2857_v60  ;;  %v2261_v18 = vsel %vm2102_vm12, %v7364_v16, %v7363_v22  ;;  %v1236_v28 = vadd.f32 %v1232_v11, %v1213_v25  ;;  %v7369_v34 = vld [vmem:[#allocation259_spill] sm:$0xff]  ;;  %v7370_v17 = vld [vmem:[#allocation256_spill] sm:$0xff]  ;;  %v7374_v16 = vld [vmem:[#allocation221_spill] sm:$0xff] }
 0x535   : > { %v2895_v15 = vpop.permute.xlu0 %2894  ;;  %v2197_v60 = vadd.f32 %v2193_v21, %v1897_v36  ;;  %v2242_v37 = vadd.f32 %v2238_v42, %v2219_v52  ;;  %v1555_v62 = vsel %vm1376_vm10, %v7367_v5, %v7366_v40  ;;  %v2239_v3 = vsel %vm2102_vm12, %v7358_v7, %v7368_v61  ;;  %v7372_v42 = vld [vmem:[#allocation128_spill] sm:$0xff]  ;;  %v7373_v36 = vld [vmem:[#allocation129_spill] sm:$0xff]  ;;  %v7379_v61 = vld [vmem:[#allocation258_spill] sm:$0xff] }
 0x536   : > { %v2893_v33 = vpop.permute.xlu1 %2892  ;;  %v2561_v48 = vsel %vm2471_vm13, %v7370_v17, %v7369_v34  ;;  %v1259_v1 = vadd.f32 %v1255_v8, %v1236_v28  ;;  %v6299_v21 = vadd.f32 %v967_v14, %v6169_v19  ;;  %v1578_v52 = vsel %vm1376_vm10, %v7373_v36, %v7372_v42  ;;  %v7375_v41 = vld [vmem:[#allocation260_spill] sm:$0xff]  ;;  %v7376_v5 = vld [vmem:[#allocation261_spill] sm:$0xff]  ;;  %v7378_v14 = vld [vmem:[#allocation130_spill] sm:$0xff] }
 0x537   : > { %v2898_v63 = vsel %vm2828_vm14, %v2893_v33, %v2895_v15  ;;  %v2220_v56 = vadd.f32 %v2216_v32, %v2197_v60  ;;  %v2265_v25 = vadd.f32 %v2261_v18, %v2242_v37  ;;  %v2262_v7 = vsel %vm2102_vm12, %v7363_v22, %v7374_v16  ;;  %v7377_v19 = vld [vmem:[#allocation133_spill] sm:$0xff]  ;;  %v7381_v22 = vld [vmem:[#allocation262_spill] sm:$0xff] }
 0x538   : > { %v6296_v11 = vadd.f32 %v2898_v63, %v2879_v55  ;;  %v2584_v33 = vsel %vm2471_vm13, %v7376_v5, %v7375_v41  ;;  %v1237_v32 = vadd.f32 %v1233_v2, %v1214_v35  ;;  %v1559_v18 = vadd.f32 %v1555_v62, %v1259_v1  ;;  %v7380_v63 = vld [vmem:[#allocation265_spill] sm:$0xff]  ;;  %v7384_v1 = vld [vmem:[#allocation134_spill] sm:$0xff] }
 0x539   : > { %v2913_v8 = vpop.permute.xlu0 %2912  ;;  %v2243_v55 = vadd.f32 %v2239_v3, %v2220_v56  ;;  %v2565_v28 = vadd.f32 %v2561_v48, %v2265_v25  ;;  %v1601_v37 = vsel %vm1376_vm10, %v7378_v14, %v7377_v19  ;;  %v2562_v17 = vsel %vm2471_vm13, %v7369_v34, %v7379_v61  ;;  %v7383_v3 = vld [vmem:[#allocation89_spill] sm:$0xff]  ;;  %v7385_v56 = vld [vmem:[#allocation135_spill] sm:$0xff]  ;;  %v7387_v61 = vld [vmem:[#allocation266_spill] sm:$0xff] }
 0x53a   : > { %7371 = vst [vmem:[#allocation59_spill] sm:$0xff] %v6296_v11  ;;  %v2897_v60 = vpop.permute.xlu1 %2896  ;;  %v2607_v36 = vsel %vm2471_vm13, %v7381_v22, %v7380_v63  ;;  %v1582_v5 = vadd.f32 %v1578_v52, %v1559_v18  ;;  %v1256_v48 = vsel %vm1007_vm9, %v7360_v39, %v7383_v3  ;;  %v1624_v25 = vsel %vm1376_vm10, %v7385_v56, %v7384_v1  ;;  %v7386_v34 = vld [vmem:[#allocation263_spill] sm:$0xff]  ;;  %v7392_v3 = vld [vmem:[#allocation264_spill] sm:$0xff] }
 0x53b   : > { %v2899_v16 = vsel %vm2828_vm14, %v2895_v15, %v2897_v60  ;;  %v2266_v35 = vadd.f32 %v2262_v7, %v2243_v55  ;;  %v2588_v2 = vadd.f32 %v2584_v33, %v2565_v28  ;;  %v2585_v14 = vsel %vm2471_vm13, %v7375_v41, %v7386_v34  ;;  %v7388_v22 = vld [vmem:[#allocation267_spill] sm:$0xff]  ;;  %v7389_v7 = vld [vmem:[#allocation126_spill] sm:$0xff]  ;;  %v7391_v60 = vld [vmem:[#allocation172_spill] sm:$0xff] }
 0x53c   : > { %v6320_v62 = vadd.f32 %v2899_v16, %v2880_v59  ;;  %v2630_v15 = vsel %vm2471_vm13, %v7388_v22, %v7387_v61  ;;  %v1556_v59 = vsel %vm1376_vm10, %v7366_v40, %v7389_v7  ;;  %v1605_v33 = vadd.f32 %v1601_v37, %v1582_v5  ;;  %v7390_v28 = vld [vmem:[#allocation175_spill] sm:$0xff]  ;;  %v7397_v7 = vld [vmem:[#allocation177_spill] sm:$0xff] }
 0x53d   : > { %v2917_v52 = vpop.permute.xlu0 %2916  ;;  %v2566_v18 = vadd.f32 %v2562_v17, %v2266_v35  ;;  %v2611_v39 = vadd.f32 %v2607_v36, %v2588_v2  ;;  %v1912_v16 = vsel %vm1733_vm11, %v7391_v60, %v7390_v28  ;;  %v2608_v41 = vsel %vm2471_vm13, %v7380_v63, %v7392_v3  ;;  %v7393_v37 = vld [vmem:[#allocation91_spill] sm:$0xff]  ;;  %v7394_v17 = vld [vmem:[#allocation88_spill] sm:$0xff]  ;;  %v7401_v60 = vld [vmem:[#allocation178_spill] sm:$0xff] }
 0x53e   : > { %7382 = vst [vmem:[#allocation22_spill] sm:$0xff] %v6320_v62  ;;  %v2915_v55 = vpop.permute.xlu1 %2914  ;;  %v1260_v22 = vadd.f32 %v1256_v48, %v1237_v32  ;;  %v1628_v62 = vadd.f32 %v1624_v25, %v1605_v33  ;;  %v1275_v36 = vsel %vm1007_vm9, %v7394_v17, %v7393_v37  ;;  %v7395_v5 = vld [vmem:[#allocation131_spill] sm:$0xff]  ;;  %v7396_v2 = vld [vmem:[#allocation176_spill] sm:$0xff]  ;;  %v7398_v33 = vld [vmem:[#allocation90_spill] sm:$0xff] }
 0x53f   : > { %v2918_v56 = vsel %vm2828_vm14, %v2913_v8, %v2915_v55  ;;  %v2919_v34 = vsel %vm2828_vm14, %v2915_v55, %v2917_v52  ;;  %v2589_v11 = vadd.f32 %v2585_v14, %v2566_v18  ;;  %v2634_v40 = vadd.f32 %v2630_v15, %v2611_v39  ;;  %v7399_v39 = vld [vmem:[#allocation132_spill] sm:$0xff]  ;;  %v7400_v55 = vld [vmem:[#allocation181_spill] sm:$0xff]  ;;  %v7406_v17 = vld [vmem:[#allocation183_spill] sm:$0xff] }
 0x540   : > { %v1579_v35 = vsel %vm1376_vm10, %v7372_v42, %v7395_v5  ;;  %v1935_v63 = vsel %vm1733_vm11, %v7397_v7, %v7396_v2  ;;  %v2631_v8 = vsel %vm2471_vm13, %v7387_v61, %v5787_v51  ;;  %v1560_v48 = vadd.f32 %v1556_v59, %v1260_v22 }
 0x541   : > { %v2938_v32 = vpop.permute.xlu0 %2937  ;;  %v1916_v25 = vadd.f32 %v1912_v16, %v1628_v62  ;;  %v2612_v14 = vadd.f32 %v2608_v41, %v2589_v11  ;;  %v2922_v15 = vadd.f32 %v2918_v56, %v2634_v40  ;;  %v1276_v18 = vsel %vm1007_vm9, %v7393_v37, %v7398_v33  ;;  %v7402_v41 = vld [vmem:[#allocation92_spill] sm:$0xff]  ;;  %v7403_v56 = vld [vmem:[#allocation93_spill] sm:$0xff]  ;;  %v7405_v37 = vld [vmem:[#allocation182_spill] sm:$0xff] }
 0x542   : > { %v2936_v52 = vpop.permute.xlu1 %2935  ;;  %v1602_v42 = vsel %vm1376_vm10, %v7377_v19, %v7399_v39  ;;  %v1958_v3 = vsel %vm1733_vm11, %v7401_v60, %v7400_v55  ;;  %v1583_v61 = vadd.f32 %v1579_v35, %v1560_v48  ;;  %v1279_v16 = vadd.f32 %v1275_v36, %v6228_v58  ;;  %v7404_v40 = vld [vmem:[#allocation137_spill] sm:$0xff] }
 0x543   : > { %v2941_v51 = vsel %vm2828_vm14, %v2936_v52, %v2938_v32  ;;  %v1939_v59 = vadd.f32 %v1935_v63, %v1916_v25  ;;  %v2635_v62 = vadd.f32 %v2631_v8, %v2612_v14  ;;  %v1298_v22 = vsel %vm1007_vm9, %v7403_v56, %v7402_v41  ;;  %v7407_v52 = vld [vmem:[#allocation95_spill] sm:$0xff]  ;;  %v7408_v25 = vld [vmem:[#allocation174_spill] sm:$0xff] }
 0x544   : > { %v2945_v11 = vadd.f32 %v2941_v51, %v2922_v15  ;;  %v1625_v19 = vsel %vm1376_vm10, %v7384_v1, %v7404_v40  ;;  %v1981_v5 = vsel %vm1733_vm11, %v7406_v17, %v7405_v37  ;;  %v1299_v35 = vsel %vm1007_vm9, %v7402_v41, %v7407_v52  ;;  %v7409_v1 = vld [vmem:[#allocation223_spill] sm:$0xff]  ;;  %v7410_v15 = vld [vmem:[#allocation220_spill] sm:$0xff]  ;;  %v7418_v52 = vld [vmem:[#allocation229_spill] sm:$0xff] }
 0x545   : > { %v2959_v7 = vpop.permute.xlu0 %2958  ;;  %v1606_v63 = vadd.f32 %v1602_v42, %v1583_v61  ;;  %v1962_v8 = vadd.f32 %v1958_v3, %v1939_v59  ;;  %v2923_v58 = vadd.f32 %v2919_v34, %v2635_v62  ;;  %v1280_v48 = vadd.f32 %v1276_v18, %v6299_v21  ;;  %v7411_v3 = vld [vmem:[#allocation179_spill] sm:$0xff]  ;;  %v7412_v21 = vld [vmem:[#allocation224_spill] sm:$0xff]  ;;  %v7413_v18 = vld [vmem:[#allocation225_spill] sm:$0xff] }
 0x546   : > { %v2940_v36 = vpop.permute.xlu1 %2939  ;;  %v1913_v14 = vsel %vm1733_vm11, %v7390_v28, %v7408_v25  ;;  %v2281_v33 = vsel %vm2102_vm12, %v7410_v15, %v7409_v1  ;;  %v1302_v41 = vadd.f32 %v1298_v22, %v1279_v16  ;;  %v1936_v34 = vsel %vm1733_vm11, %v7396_v2, %v7411_v3  ;;  %v7414_v59 = vld [vmem:[#allocation97_spill] sm:$0xff]  ;;  %v7415_v62 = vld [vmem:[#allocation94_spill] sm:$0xff]  ;;  %v7416_v17 = vld [vmem:[#allocation96_spill] sm:$0xff] }
 0x547   : > { %v2942_v39 = vsel %vm2828_vm14, %v2938_v32, %v2940_v36  ;;  %v1629_v60 = vadd.f32 %v1625_v19, %v1606_v63  ;;  %v1985_v51 = vadd.f32 %v1981_v5, %v1962_v8  ;;  %v1303_v42 = vadd.f32 %v1299_v35, %v1280_v48  ;;  %v7417_v5 = vld [vmem:[#allocation180_spill] sm:$0xff]  ;;  %v7419_v35 = vld [vmem:[#allocation226_spill] sm:$0xff] }
 0x548   : > { %v2946_v56 = vadd.f32 %v2942_v39, %v2923_v58  ;;  %v2304_v61 = vsel %vm2102_vm12, %v7413_v18, %v7412_v21  ;;  %v1321_v40 = vsel %vm1007_vm9, %v7415_v62, %v7414_v59  ;;  %v1322_v32 = vsel %vm1007_vm9, %v7414_v59, %v7416_v17  ;;  %v7423_v3 = vld [vmem:[#allocation230_spill] sm:$0xff]  ;;  %v7424_v18 = vld [vmem:[#allocation231_spill] sm:$0xff] }
 0x549   : > { %v2963_v28 = vpop.permute.xlu0 %2962  ;;  %v1917_v19 = vadd.f32 %v1913_v14, %v1629_v60  ;;  %v2285_v16 = vadd.f32 %v2281_v33, %v1985_v51  ;;  %v1959_v2 = vsel %vm1733_vm11, %v7400_v55, %v7417_v5  ;;  %v2327_v63 = vsel %vm2102_vm12, %v7419_v35, %v7418_v52  ;;  %v7420_v14 = vld [vmem:[#allocation98_spill] sm:$0xff]  ;;  %v7421_v33 = vld [vmem:[#allocation99_spill] sm:$0xff]  ;;  %v7422_v51 = vld [vmem:[#allocation185_spill] sm:$0xff] }
 0x54a   : > { %v2961_v22 = vpop.permute.xlu1 %2960  ;;  %v1325_v39 = vadd.f32 %v1321_v40, %v1302_v41  ;;  %v1344_v60 = vsel %vm1007_vm9, %v7421_v33, %v7420_v14  ;;  %v1982_v55 = vsel %vm1733_vm11, %v7405_v37, %v7422_v51  ;;  %v2350_v59 = vsel %vm2102_vm12, %v7424_v18, %v7423_v3  ;;  %v7427_v40 = vld [vmem:[#allocation136_spill] sm:$0xff]  ;;  %v7429_v35 = vld [vmem:[#allocation138_spill] sm:$0xff] }
 0x54b   : > { %v2964_v8 = vsel %vm2828_vm14, %v2959_v7, %v2961_v22  ;;  %v2965_v58 = vsel %vm2828_vm14, %v2961_v22, %v2963_v28  ;;  %v1940_v36 = vadd.f32 %v1936_v34, %v1917_v19  ;;  %v2308_v48 = vadd.f32 %v2304_v61, %v2285_v16  ;;  %v7425_v28 = vld [vmem:[#allocation100_spill] sm:$0xff]  ;;  %v7426_v61 = vld [vmem:[#allocation139_spill] sm:$0xff]  ;;  %v7428_v19 = vld [vmem:[#allocation222_spill] sm:$0xff] }
 0x54c   : > { %v2968_v25 = vadd.f32 %v2964_v8, %v2945_v11  ;;  %v2969_v15 = vadd.f32 %v2965_v58, %v2946_v56  ;;  %v1326_v62 = vadd.f32 %v1322_v32, %v1303_v42  ;;  %v1345_v11 = vsel %vm1007_vm9, %v7420_v14, %v7425_v28  ;;  %v7430_v8 = vld [vmem:[#allocation227_spill] sm:$0xff] }
 0x54d   : > { %v2984_v7 = vpop.permute.xlu0 %2983  ;;  %v1963_v56 = vadd.f32 %v1959_v2, %v1940_v36  ;;  %v2331_v41 = vadd.f32 %v2327_v63, %v2308_v48  ;;  %v1644_v17 = vsel %vm1376_vm10, %v7427_v40, %v7426_v61  ;;  %v2282_v37 = vsel %vm2102_vm12, %v7409_v1, %v7428_v19 }
 0x54e   : > { %v2982_v34 = vpop.permute.xlu1 %2981  ;;  %v2650_v16 = vsel %vm2471_vm13, %v5780_v4, %v5806_v26  ;;  %v1348_v32 = vadd.f32 %v1344_v60, %v1325_v39  ;;  %v1645_v63 = vsel %vm1376_vm10, %v7426_v61, %v7429_v35  ;;  %v2305_v58 = vsel %vm2102_vm12, %v7412_v21, %v7430_v8  ;;  %v7432_v60 = vld [vmem:[#allocation141_spill] sm:$0xff]  ;;  %v7436_v61 = vld [vmem:[#allocation142_spill] sm:$0xff] }
 0x54f   : > { %v2987_v42 = vsel %vm2828_vm14, %v2982_v34, %v2984_v7  ;;  %v1986_v22 = vadd.f32 %v1982_v55, %v1963_v56  ;;  %v2354_v5 = vadd.f32 %v2350_v59, %v2331_v41  ;;  %v2673_v1 = vsel %vm2471_vm13, %v5840_v57, %v5832_v43  ;;  %v7433_v55 = vld [vmem:[#allocation228_spill] sm:$0xff]  ;;  %v7434_v56 = vld [vmem:[#allocation143_spill] sm:$0xff]  ;;  %v7435_v34 = vld [vmem:[#allocation145_spill] sm:$0xff] }
 0x550   : > { %v6430_v2 = vadd.f32 %v2987_v42, %v2968_v25  ;;  %v1349_v36 = vadd.f32 %v1345_v11, %v1326_v62  ;;  %v1648_v48 = vadd.f32 %v1644_v17, %v1348_v32  ;;  %v7431_v25 = vld [vmem:[#allocation140_spill] sm:$0xff]  ;;  %v2328_v18 = vsel %vm2102_vm12, %v7418_v52, %v7433_v55  ;;  %v7437_v52 = vld [vmem:[#allocation233_spill] sm:$0xff] }
 0x551   : > { %v3002_v4 = vpop.permute.xlu0 %3001  ;;  %v2286_v39 = vadd.f32 %v2282_v37, %v1986_v22  ;;  %v2654_v14 = vadd.f32 %v2650_v16, %v2354_v5  ;;  %v1667_v51 = vsel %vm1376_vm10, %v7432_v60, %v7431_v25  ;;  %v2696_v21 = vsel %vm2471_vm13, %v5873_v12, %v5917_v10  ;;  %v7439_v22 = vld [vmem:[#allocation146_spill] sm:$0xff]  ;;  %v7440_v5 = vld [vmem:[#allocation147_spill] sm:$0xff]  ;;  %v7443_v55 = vld [vmem:[#allocation184_spill] sm:$0xff] }
 0x552   : > { %v2986_v33 = vpop.permute.xlu1 %2985  ;;  %v1649_v59 = vadd.f32 %v1645_v63, %v1349_v36  ;;  %v1668_v41 = vsel %vm1376_vm10, %v7431_v25, %v7434_v56  ;;  %v1690_v40 = vsel %vm1376_vm10, %v7436_v61, %v7435_v34  ;;  %v2351_v17 = vsel %vm2102_vm12, %v7423_v3, %v7437_v52  ;;  %v7445_v56 = vld [vmem:[#allocation188_spill] sm:$0xff]  ;;  %v7447_v61 = vld [vmem:[#allocation191_spill] sm:$0xff] }
 0x553   : > { %v2988_v57 = vsel %vm2828_vm14, %v2984_v7, %v2986_v33  ;;  %v2309_v62 = vadd.f32 %v2305_v58, %v2286_v39  ;;  %v2677_v28 = vadd.f32 %v2673_v1, %v2654_v14  ;;  %v2719_v12 = vsel %vm2471_vm13, %v5952_v23, %v5944_v54 }
 0x554   : > { %v6451_v11 = vadd.f32 %v2988_v57, %v2969_v15  ;;  %v1671_v19 = vadd.f32 %v1667_v51, %v1648_v48  ;;  %v7438_v15 = vld [vmem:[#allocation144_spill] sm:$0xff]  ;;  %v1713_v35 = vsel %vm1376_vm10, %v7440_v5, %v7439_v22  ;;  %v2651_v3 = vsel %vm2471_vm13, %v5806_v26, %v5802_v50  ;;  %v7441_v48 = vld [vmem:[#allocation149_spill] sm:$0xff]  ;;  %v7442_v51 = vld [vmem:[#allocation187_spill] sm:$0xff] }
 0x555   : > { %v3006_v7 = vpop.permute.xlu0 %3005  ;;  %v1691_v37 = vsel %vm1376_vm10, %v7435_v34, %v7438_v15  ;;  %v2332_v16 = vadd.f32 %v2328_v18, %v2309_v62  ;;  %v2700_v42 = vadd.f32 %v2696_v21, %v2677_v28  ;;  %v1672_v8 = vadd.f32 %v1668_v41, %v1649_v59  ;;  %v7444_v21 = vld [vmem:[#allocation186_spill] sm:$0xff]  ;;  %v7446_v41 = vld [vmem:[#allocation189_spill] sm:$0xff] }
 0x556   : > { %v3004_v32 = vpop.permute.xlu1 %3003  ;;  %v1694_v58 = vadd.f32 %v1690_v40, %v1671_v19  ;;  %v1714_v39 = vsel %vm1376_vm10, %v7439_v22, %v7441_v48  ;;  %v2674_v14 = vsel %vm2471_vm13, %v5832_v43, %v5883_v13  ;;  %v2001_v18 = vsel %vm1733_vm11, %v7443_v55, %v7442_v51  ;;  %v7448_v15 = vld [vmem:[#allocation193_spill] sm:$0xff] }
 0x557   : > { %v3007_v23 = vsel %vm2828_vm14, %v3002_v4, %v3004_v32  ;;  %v3008_v63 = vsel %vm2828_vm14, %v3004_v32, %v3006_v7  ;;  %v2355_v1 = vadd.f32 %v2351_v17, %v2332_v16  ;;  %v2723_v36 = vadd.f32 %v2719_v12, %v2700_v42 }
 0x558   : > { %v1695_v50 = vadd.f32 %v1691_v37, %v1672_v8  ;;  %v1717_v26 = vadd.f32 %v1713_v35, %v1694_v58  ;;  %v2002_v57 = vsel %vm1733_vm11, %v7442_v51, %v7444_v21  ;;  %v2697_v59 = vsel %vm2471_vm13, %v5917_v10, %v5909_v0  ;;  %v7449_v37 = vld [vmem:[#allocation190_spill] sm:$0xff]  ;;  %v7452_v58 = vld [vmem:[#allocation195_spill] sm:$0xff] }
 0x559   : > { %v3027_v33 = vpop.permute.xlu0 %3026  ;;  %v2655_v4 = vadd.f32 %v2651_v3, %v2355_v1  ;;  %v3011_v25 = vadd.f32 %v3007_v23, %v2723_v36  ;;  %v2024_v34 = vsel %vm1733_vm11, %v7446_v41, %v7445_v56  ;;  %v2025_v40 = vsel %vm1733_vm11, %v7445_v56, %v7447_v61  ;;  %v7450_v3 = vld [vmem:[#allocation192_spill] sm:$0xff]  ;;  %v7451_v8 = vld [vmem:[#allocation194_spill] sm:$0xff] }
 0x55a   : > { %v3025_v60 = vpop.permute.xlu1 %3024  ;;  %v1718_v13 = vadd.f32 %v1714_v39, %v1695_v50  ;;  %v2720_v52 = vsel %vm2471_vm13, %v5944_v54, %v5986_v6  ;;  %v2005_v10 = vadd.f32 %v2001_v18, %v1717_v26  ;;  %v3184_v19 = vstv %s6468_s0  ;;  %v7455_v18 = vld [vmem:[#allocation196_spill] sm:$0xff]  ;;  %s6787_s0 = scalar_lea.hbm %s6834_s4, %s3896_s9 }
 0x55b   : > { %v3030_v43 = vsel %vm2828_vm14, %v3025_v60, %v3027_v33  ;;  %v2678_v62 = vadd.f32 %v2674_v14, %v2655_v4  ;;  %v2047_v16 = vsel %vm1733_vm11, %v7449_v37, %v7448_v15  ;;  %v3205_v22 = vstv %s6478_s1  ;;  %v7453_v4 = vld [vmem:[#allocation235_spill] sm:$0xff]  ;;  %s3587_s1 = scalar_lea.sflag [#allocation4], %s4313_s6 }
 0x55c   : > { %v3034_v28 = vadd.f32 %v3030_v43, %v3011_v25  ;;  %v2006_v17 = vadd.f32 %v2002_v57, %v1718_v13  ;;  %v2028_v5 = vadd.f32 %v2024_v34, %v2005_v10  ;;  %v2048_v23 = vsel %vm1733_vm11, %v7448_v15, %v7450_v3  ;;  %v7454_v25 = vld [vmem:[#allocation232_spill] sm:$0xff]  ;;  %v7459_v10 = vld [vmem:[#allocation241_spill] sm:$0xff] }
 0x55d   : > { %v3174_v0 = vpop.permute.xlu0 %3173  ;;  %v2701_v12 = vadd.f32 %v2697_v59, %v2678_v62  ;;  %v2070_v1 = vsel %vm1733_vm11, %v7452_v58, %v7451_v8  ;;  %v2370_v60 = vsel %vm2102_vm12, %v7454_v25, %v7453_v4  ;;  %v2071_v21 = vsel %vm1733_vm11, %v7451_v8, %v7455_v18  ;;  %v7456_v57 = vld [vmem:[#allocation236_spill] sm:$0xff]  ;;  %v7457_v59 = vld [vmem:[#allocation237_spill] sm:$0xff] }
 0x55e   : > { %v3172_v7 = vpop.permute.xlu1 %3171  ;;  %v2029_v35 = vadd.f32 %v2025_v40, %v2006_v17  ;;  %v6525_v36 = vmul.f32 %v3174_v0, %v4385_v31  ;;  %v2051_v39 = vadd.f32 %v2047_v16, %v2028_v5  ;;  %v2393_v43 = vsel %vm2102_vm12, %v7457_v59, %v7456_v57  ;;  %v7460_v17 = vld [vmem:[#allocation238_spill] sm:$0xff] }
 0x55f   : > { %v3176_v42 = vsel %vm3175_vm15, %v3172_v7, %v3174_v0  ;;  %v6512_v32 = vmul.f32 %v3172_v7, %v4379_v27  ;;  %v2724_v54 = vadd.f32 %v2720_v52, %v2701_v12  ;;  %v3228_v40 = vstv %s6506_s3  ;;  %v7458_v52 = vld [vmem:[#allocation234_spill] sm:$0xff]  ;;  %s4164_s3 = smov [#allocation11]  }
 0x560   : > { %v6516_v6 = vmul.f32 %v3176_v42, %v4383_v30  ;;  %v2052_v31 = vadd.f32 %v2048_v23, %v2029_v35  ;;  %v2074_v55 = vadd.f32 %v2070_v1, %v2051_v39  ;;  %v3187_v13 = vmul.f32 %v3184_v19, %v6525_v36  ;;  %v7462_v35 = vld [vmem:[#allocation242_spill] sm:$0xff] }
 0x561   : > { %v3048_v27 = vpop.permute.xlu0 %3047  ;;  %v3185_v48 = vmul.f32 %v3184_v19, %v6512_v32  ;;  %v3012_v14 = vadd.f32 %v3008_v63, %v2724_v54  ;;  %v3206_v26 = vmul.f32 %v3205_v22, %v6512_v32  ;;  %v3208_v61 = vmul.f32 %v3205_v22, %v6525_v36  ;;  %v7463_v54 = vld [vmem:[#allocation243_spill] sm:$0xff] }
 0x562   : > { %v3029_v50 = vpop.permute.xlu1 %3028  ;;  %v3186_v30 = vmul.f32 %v3184_v19, %v6516_v6  ;;  %v3207_v62 = vmul.f32 %v3205_v22, %v6516_v6  ;;  %v2374_v56 = vadd.f32 %v2370_v60, %v2074_v55  ;;  %v2371_v0 = vsel %vm2102_vm12, %v7453_v4, %v7458_v52  ;;  %v7461_v22 = vld [vmem:[#allocation239_spill] sm:$0xff] }
 0x563   : > { %v3031_v51 = vsel %vm2828_vm14, %v3027_v33, %v3029_v50  ;;  %3191 = vrot.lane.b32.xlu0 %v3185_v48, %s4163_s16  ;;  %v3212_v34 = vrot.slane %v3206_v26, 1  ;;  %v2416_v12 = vsel %vm2102_vm12, %v7460_v17, %v7459_v10  ;;  %v2075_v15 = vadd.f32 %v2071_v21, %v2052_v31  ;;  %v7465_v31 = vld [vmem:[#allocation244_spill] sm:$0xff] }
 0x564   : > { %v3035_v63 = vadd.f32 %v3031_v51, %v3012_v14  ;;  %3193 = vrot.lane.b32.xlu1 %v3186_v30, %s4163_s16  ;;  %v2397_v37 = vadd.f32 %v2393_v43, %v2374_v56  ;;  %v2394_v5 = vsel %vm2102_vm12, %v7456_v57, %v7461_v22  ;;  %v2439_v3 = vsel %vm2102_vm12, %v7463_v54, %v7462_v35  ;;  %v7464_v14 = vld [vmem:[#allocation240_spill] sm:$0xff] }
 0x565   : > { %v3052_v33 = vpop.permute.xlu0 %3051  ;;  %v3213_v8 = vrot.slane %v3207_v62, 1  ;;  %v3229_v58 = vmul.f32 %v3228_v40, %v6512_v32  ;;  %v2375_v1 = vadd.f32 %v2371_v0, %v2075_v15  ;;  %v3230_v39 = vmul.f32 %v3228_v40, %v6516_v6 }
 0x566   : > { %v3050_v41 = vpop.permute.xlu1 %3049  ;;  %v2417_v50 = vsel %vm2102_vm12, %v7459_v10, %v7464_v14  ;;  %v2739_v30 = vsel %vm2471_vm13, %v5978_v29, %v6020_v24  ;;  %v6575_v4 = vstv %s6535_s17  ;;  %v2440_v55 = vsel %vm2102_vm12, %v7462_v35, %v7465_v31 }
 0x567   : > { %v3053_v7 = vsel %vm2828_vm14, %v3048_v27, %v3050_v41  ;;  %v3054_v19 = vsel %vm2828_vm14, %v3050_v41, %v3052_v33  ;;  %3195 = vrot.lane.b32.xlu0 %v3187_v13, %s4163_s16  ;;  %v2420_v27 = vadd.f32 %v2416_v12, %v2397_v37  ;;  %v2398_v25 = vadd.f32 %v2394_v5, %v2375_v1  ;;  %v7466_v37 = vld [vmem:[#allocation60_spill] sm:$0xff] }
 0x568   : > { %v3057_v16 = vadd.f32 %v3053_v7, %v3034_v28  ;;  %v3058_v42 = vadd.f32 %v3054_v19, %v3035_v63  ;;  %3215 = vrot.lane.b32.xlu1 %v3212_v34, %s4163_s16  ;;  %v3214_v28 = vrot.slane %v3208_v61, 1  ;;  %v2762_v29 = vsel %vm2471_vm13, %v6054_v49, %v6046_v47 }
 0x569   : > { %v3073_v23 = vpop.permute.xlu0 %3072  ;;  %v2443_v60 = vadd.f32 %v2439_v3, %v2420_v27  ;;  %v3235_v18 = vrot.slane %v3229_v58, 2  ;;  %v3231_v21 = vmul.f32 %v3228_v40, %v6525_v36  ;;  %v2421_v57 = vadd.f32 %v2417_v50, %v2398_v25 }
 0x56a   : > { %v3071_v48 = vpop.permute.xlu1 %3070  ;;  %v3236_v33 = vrot.slane %v3230_v39, 2  ;;  %v3252_v13 = vmul.f32 %v6575_v4, %v6512_v32  ;;  %v2740_v62 = vsel %vm2471_vm13, %v6020_v24, %v6012_v38  ;;  %v2785_v56 = vsel %vm2471_vm13, %v6079_v20, %v6118_v44 }
 0x56b   : > { %v3076_v26 = vsel %vm2828_vm14, %v3071_v48, %v3073_v23  ;;  %3217 = vrot.lane.b32.xlu0 %v3213_v8, %s4163_s16  ;;  %v2743_v59 = vadd.f32 %v2739_v30, %v2443_v60  ;;  %v2444_v41 = vadd.f32 %v2440_v55, %v2421_v57  ;;  %v2763_v40 = vsel %vm2471_vm13, %v6046_v47, %v6087_v9 }
 0x56c   : > { %v6579_v51 = vadd.f32 %v3076_v26, %v3057_v16  ;;  %3219 = vrot.lane.b32.xlu1 %v3214_v28, %s4163_s16  ;;  %v2808_v38 = vsel %vm2471_vm13, %v6146_v46, %v6141_v45  ;;  %v3237_v20 = vrot.slane %v3231_v21, 2  ;;  %v3253_v52 = vmul.f32 %v6575_v4, %v6516_v6 }
 0x56d   : > { %v3091_v63 = vpop.permute.xlu0 %3090  ;;  %v2766_v34 = vadd.f32 %v2762_v29, %v2743_v59  ;;  %v2744_v0 = vadd.f32 %v2740_v62, %v2444_v41  ;;  %v3258_v12 = vrot.slane %v3252_v13, 3  ;;  %v2786_v7 = vsel %vm2471_vm13, %v6118_v44, %v6113_v53 }
 0x56e   : > { %v3075_v43 = vpop.permute.xlu1 %3074  ;;  %v3274_v46 = vstv %s6577_s20  ;;  %v2809_v16 = vsel %vm2471_vm13, %v6141_v45, %v7466_v37  ;;  %v3259_v22 = vrot.slane %v3253_v52, 3  ;;  %v3363_v48 = vstv %s3882_s12 }
 0x56f   : > { %v3077_v49 = vsel %vm2828_vm14, %v3073_v23, %v3075_v43  ;;  %3238 = vrot.lane.b32.xlu0 %v3235_v18, %s4163_s16  ;;  %v2789_v10 = vadd.f32 %v2785_v56, %v2766_v34  ;;  %v2767_v19 = vadd.f32 %v2763_v40, %v2744_v0  ;;  %v3275_v35 = vmul.f32 %v3274_v46, %v6512_v32 }
 0x570   : > { %v6599_v61 = vadd.f32 %v3077_v49, %v3058_v42  ;;  %3240 = vrot.lane.b32.xlu1 %v3236_v33, %s4163_s16  ;;  %v3276_v58 = vmul.f32 %v3274_v46, %v6516_v6  ;;  %v3277_v27 = vmul.f32 %v3274_v46, %v6525_v36  ;;  %v3294_v39 = vstv %s3879_s13 }
 0x571   : > { %v3095_v24 = vpop.permute.xlu0 %3094  ;;  %v2812_v15 = vadd.f32 %v2808_v38, %v2789_v10  ;;  %v2790_v5 = vadd.f32 %v2786_v7, %v2767_v19  ;;  %v3364_v30 = vmul.f32 %v3363_v48, %v6512_v32  ;;  %v3365_v25 = vmul.f32 %v3363_v48, %v6516_v6 }
 0x572   : > { %v3093_v17 = vpop.permute.xlu1 %3092  ;;  %v3295_v60 = vmul.f32 %v3294_v39, %v6512_v32  ;;  %v3366_v21 = vmul.f32 %v3363_v48, %v6525_v36  ;;  %v3296_v57 = vmul.f32 %v3294_v39, %v6516_v6  ;;  %v3297_v33 = vmul.f32 %v3294_v39, %v6525_v36 }
 0x573   : > { %v3096_v47 = vsel %vm2828_vm14, %v3091_v63, %v3093_v17  ;;  %v3097_v9 = vsel %vm2828_vm14, %v3093_v17, %v3095_v24  ;;  %3242 = vrot.lane.b32.xlu0 %v3237_v20, %s4163_s16  ;;  %v2813_v3 = vadd.f32 %v2809_v16, %v2790_v5  ;;  %v3452_v41 = vstv %s3886_s14 }
 0x574   : > { %3261 = vrot.lane.b32.xlu1 %v3258_v12, %s4163_s16  ;;  %v3100_v53 = vadd.f32 %v3096_v47, %v2812_v15  ;;  %v3301_v43 = vrot.slane %v3295_v60, 1  ;;  %v3302_v56 = vrot.slane %v3296_v57, 1  ;;  %v3303_v49 = vrot.slane %v3297_v33, 1 }
 0x575   : > { %v3116_v42 = vpop.permute.xlu0 %3115  ;;  %v3101_v1 = vadd.f32 %v3097_v9, %v2813_v3  ;;  %v3383_v34 = vstv %s3883_s26  ;;  %v3453_v40 = vmul.f32 %v3452_v41, %v6512_v32  ;;  %v3454_v38 = vmul.f32 %v3452_v41, %v6516_v6 }
 0x576   : > { %v3114_v44 = vpop.permute.xlu1 %3113  ;;  %v3384_v24 = vmul.f32 %v3383_v34, %v6512_v32  ;;  %v3455_v20 = vmul.f32 %v3452_v41, %v6525_v36  ;;  %v3385_v52 = vmul.f32 %v3383_v34, %v6516_v6  ;;  %v3386_v10 = vmul.f32 %v3383_v34, %v6525_v36 }
 0x577   : > { %v3119_v54 = vsel %vm2828_vm14, %v3114_v44, %v3116_v42  ;;  %3263 = vrot.lane.b32.xlu0 %v3259_v22, %s4163_s16  ;;  %v3317_v17 = vstv %s3880_s8  ;;  %v3472_v46 = vstv %s3887_s25  ;;  %v3406_v44 = vstv %s3884_s29 }
 0x578   : > { %v3123_v23 = vadd.f32 %v3119_v54, %v3100_v53  ;;  %3281 = vrot.lane.b32.xlu1 %v3275_v35, %s4163_s16  ;;  %v3390_v0 = vrot.slane %v3384_v24, 1  ;;  %v3391_v12 = vrot.slane %v3385_v52, 1  ;;  %v3318_v7 = vmul.f32 %v3317_v17, %v6512_v32 }
 0x579   : > { %v3137_v8 = vpop.permute.xlu0 %3136  ;;  %v3392_v47 = vrot.slane %v3386_v10, 1  ;;  %v3319_v9 = vmul.f32 %v3317_v17, %v6516_v6  ;;  %v3320_v15 = vmul.f32 %v3317_v17, %v6525_v36  ;;  %v3473_v16 = vmul.f32 %v3472_v46, %v6512_v32 }
 0x57a   : > { %v3118_v45 = vpop.permute.xlu1 %3117  ;;  %v3324_v19 = vrot.slane %v3318_v7, 2  ;;  %v3474_v22 = vmul.f32 %v3472_v46, %v6516_v6  ;;  %v3475_v53 = vmul.f32 %v3472_v46, %v6525_v36  ;;  %v3254_v54 = vmul.f32 %v6575_v4, %v6525_v36  ;;  %v7468_v46 = vld [vmem:[#allocation22_spill] sm:$0xff] }
 0x57b   : > { %v3120_v28 = vsel %vm2828_vm14, %v3116_v42, %v3118_v45  ;;  %3283 = vrot.lane.b32.xlu0 %v3276_v58, %s4163_s16  ;;  %v3325_v37 = vrot.slane %v3319_v9, 2  ;;  %v3326_v42 = vrot.slane %v3320_v15, 2  ;;  %v3479_v5 = vrot.slane %v3473_v16, 1 }
 0x57c   : > { %v3124_v14 = vadd.f32 %v3120_v28, %v3101_v1  ;;  %3285 = vrot.lane.b32.xlu1 %v3277_v27, %s4163_s16  ;;  %v3480_v35 = vrot.slane %v3474_v22, 1  ;;  %v3481_v3 = vrot.slane %v3475_v53, 1  ;;  %v3408_v58 = vmul.f32 %v3406_v44, %v6516_v6 }
 0x57d   : > { %v3141_v50 = vpop.permute.xlu0 %3140  ;;  %v3409_v45 = vmul.f32 %v3406_v44, %v6525_v36  ;;  %v3340_v27 = vstv %s3881_s27 }
 0x57e   : > { %v3139_v26 = vpop.permute.xlu1 %3138  ;;  %v3414_v4 = vrot.slane %v3408_v58, 2  ;;  %v3341_v48 = vmul.f32 %v3340_v27, %v6512_v32  ;;  %v3342_v39 = vmul.f32 %v3340_v27, %v6516_v6 }
 0x57f   : > { %v3142_v31 = vsel %vm2828_vm14, %v3137_v8, %v3139_v26  ;;  %v3143_v55 = vsel %vm2828_vm14, %v3139_v26, %v3141_v50  ;;  %3370 = vrot.lane.b32.xlu0 %v3364_v30, %s4163_s16  ;;  %v3260_v8 = vrot.slane %v3254_v54, 3  ;;  %v3415_v28 = vrot.slane %v3409_v45, 2 }
 0x580   : > { %v3146_v29 = vadd.f32 %v3142_v31, %v3123_v23  ;;  %v6636_v63 = vadd.f32 %v3143_v55, %v3124_v14  ;;  %3372 = vrot.lane.b32.xlu1 %v3365_v25, %s4163_s16  ;;  %v3407_v23 = vmul.f32 %v3406_v44, %v6512_v32  ;;  %v3495_v14 = vstv %s3888_s5 }
 0x581   : > { %v6639_v18 = vpop.permute.xlu0 %3161  ;;  %v3347_v50 = vrot.slane %v3341_v48, 3  ;;  %v3343_v30 = vmul.f32 %v3340_v27, %v6525_v36  ;;  %v3348_v26 = vrot.slane %v3342_v39, 3  ;;  %v3496_v25 = vmul.f32 %v3495_v14, %v6512_v32 }
 0x582   : > { %v3160_v59 = vpop.permute.xlu1 %3159  ;;  %v3413_v1 = vrot.slane %v3407_v23, 2  ;;  %v3497_v31 = vmul.f32 %v3495_v14, %v6516_v6 }
 0x583   : > { %v3165_v13 = vsel %vm2828_vm14, %v3160_v59, %v6639_v18  ;;  %3374 = vrot.lane.b32.xlu0 %v3366_v21, %s4163_s16  ;;  %v3349_v60 = vrot.slane %v3343_v30, 3  ;;  %v3502_v55 = vrot.slane %v3496_v25, 2  ;;  %v3429_v21 = vstv %s3885_s21 }
 0x584   : > { %v6647_v62 = vadd.f32 %v3165_v13, %v3146_v29  ;;  %3304 = vrot.lane.b32.xlu1 %v3301_v43, %s4163_s16  ;;  %v3498_v29 = vmul.f32 %v3495_v14, %v6525_v36  ;;  %v3503_v57 = vrot.slane %v3497_v31, 2  ;;  %v3430_v59 = vmul.f32 %v3429_v21, %v6512_v32 }
 0x585   : > { %v3431_v33 = vmul.f32 %v3429_v21, %v6516_v6  ;;  %v3518_v13 = vstv %s3889_s10 }
 0x586   : > { %v3504_v43 = vrot.slane %v3498_v29, 2  ;;  %v3519_v34 = vmul.f32 %v3518_v13, %v6512_v32  ;;  %v6709_v32 = vpop.permute.xlu1 %3163 }
 0x587   : > { %3306 = vrot.lane.b32.xlu0 %v3302_v56, %s4163_s16  ;;  %v3436_v56 = vrot.slane %v3430_v59, 3  ;;  %v3437_v41 = vrot.slane %v3431_v33, 3 }
 0x588   : > { %3308 = vrot.lane.b32.xlu1 %v3303_v49, %s4163_s16  ;;  %v3432_v49 = vmul.f32 %v3429_v21, %v6525_v36  ;;  %v3525_v24 = vrot.slane %v3519_v34, 3 }
 0x58b   : > { %3459 = vrot.lane.b32.xlu0 %v3453_v40, %s4163_s16  ;;  %v3438_v40 = vrot.slane %v3432_v49, 3 }
 0x58c   : > { %3461 = vrot.lane.b32.xlu1 %v3454_v38, %s4163_s16  ;;  %v3520_v38 = vmul.f32 %v3518_v13, %v6516_v6 }
 0x58e   : > { %v3526_v52 = vrot.slane %v3520_v38, 3 }
 0x58f   : > { %3463 = vrot.lane.b32.xlu0 %v3455_v20, %s4163_s16  ;;  %v3521_v20 = vmul.f32 %v3518_v13, %v6525_v36 }
 0x590   : > { %3393 = vrot.lane.b32.xlu1 %v3390_v0, %s4163_s16 }
 0x591   : > { %v3527_v0 = vrot.slane %v3521_v20, 3 }
 0x593   : > { %3395 = vrot.lane.b32.xlu0 %v3391_v12, %s4163_s16  ;;  %v7467_v12 = vld [vmem:[#allocation59_spill] sm:$0xff] }
 0x594   : > { %3397 = vrot.lane.b32.xlu1 %v3392_v47, %s4163_s16 }
 0x597   : > { %3327 = vrot.lane.b32.xlu0 %v3324_v19, %s4163_s16 }
 0x598   : > { %3329 = vrot.lane.b32.xlu1 %v3325_v37, %s4163_s16 }
 0x59b   : > { %3331 = vrot.lane.b32.xlu0 %v3326_v42, %s4163_s16 }
 0x59c   : > { %3482 = vrot.lane.b32.xlu1 %v3479_v5, %s4163_s16 }
 0x59f   : > { %3484 = vrot.lane.b32.xlu0 %v3480_v35, %s4163_s16 }
 0x5a0   : > { %3486 = vrot.lane.b32.xlu1 %v3481_v3, %s4163_s16 }
 0x5a3   : > { %3265 = vrot.lane.b32.xlu0 %v3260_v8, %s4163_s16 }
 0x5a4   : > { %3416 = vrot.lane.b32.xlu1 %v3413_v1, %s4163_s16 }
 0x5a7   : > { %3418 = vrot.lane.b32.xlu0 %v3414_v4, %s4163_s16 }
 0x5a8   : > { %3420 = vrot.lane.b32.xlu1 %v3415_v28, %s4163_s16 }
 0x5ab   : > { %3350 = vrot.lane.b32.xlu0 %v3347_v50, %s4163_s16 }
 0x5ac   : > { %3352 = vrot.lane.b32.xlu1 %v3348_v26, %s4163_s16 }
 0x5af   : > { %3354 = vrot.lane.b32.xlu0 %v3349_v60, %s4163_s16 }
 0x5b0   : > { %3505 = vrot.lane.b32.xlu1 %v3502_v55, %s4163_s16 }
 0x5b3   : > { %3507 = vrot.lane.b32.xlu0 %v3503_v57, %s4163_s16 }
 0x5b4   : > { %3509 = vrot.lane.b32.xlu1 %v3504_v43, %s4163_s16 }
 0x5b7   : > { %3439 = vrot.lane.b32.xlu0 %v3436_v56, %s4163_s16 }
 0x5b8   : > { %3441 = vrot.lane.b32.xlu1 %v3437_v41, %s4163_s16 }
 0x5bb   : > { %3443 = vrot.lane.b32.xlu0 %v3438_v40, %s4163_s16 }
 0x5bc   : > { %3528 = vrot.lane.b32.xlu1 %v3525_v24, %s4163_s16 }
 0x5bf   : > { %3530 = vrot.lane.b32.xlu0 %v3526_v52, %s4163_s16 }
 0x5c0   : > { %3532 = vrot.lane.b32.xlu1 %v3527_v0, %s4163_s16  ;;  %s4072_s16 = sshll.u32 %s4164_s3, 4  ;;  %s4073_s16 = int_to_ptr.vmem [resolvable:$false] %s4072_s16 }
 0x5c1   : > { %s4074_s17 = scalar_lea.vmem %s4073_s16, 512  ;;  %p4075_p2 = scmp.lt.s32.totalorder %s6789_s28, %s4073_s16 }
 0x5c2   : > { %p4076_p10 = scmp.lt.s32.totalorder %s4074_s17, %s4068_s19 }
 0x5c4   : > { %p4077_p12 = por %p4076_p10, %p4075_p2 }
 0x5c6   : > { %p4078_p1 = pnand %p4077_p12, %p4071_p3 }
 0x5d5   : > { %v3192_v10 = vpop.permute.xlu0 %3191 }
 0x5d6   : > { %v3194_v17 = vpop.permute.xlu1 %3193 }
 0x5d7   : > { %v3198_v6 = vsel %vm3197_vm0, %v3192_v10, %v3194_v17 }
 0x5d8   : > { %v3202_v7 = vadd.f32 %v3198_v6, %v7467_v12 }
 0x5d9   : > { %v3196_v36 = vpop.permute.xlu0 %3195 }
 0x5da   : > { %v3199_v47 = vsel %vm3197_vm0, %v3194_v17, %v3196_v36  ;;  %v3216_v9 = vpop.permute.xlu1 %3215 }
 0x5db   : > { %v3203_v19 = vadd.f32 %v3199_v47, %v7468_v46 }
 0x5dd   : > { %v3218_v15 = vpop.permute.xlu0 %3217 }
 0x5de   : > { %v3221_v37 = vsel %vm3197_vm0, %v3216_v9, %v3218_v15  ;;  %v3220_v16 = vpop.permute.xlu1 %3219 }
 0x5df   : > { %v3225_v42 = vadd.f32 %v3221_v37, %v3202_v7  ;;  %v3222_v22 = vsel %vm3197_vm0, %v3218_v15, %v3220_v16 }
 0x5e0   : > { %v3226_v5 = vadd.f32 %v3222_v22, %v3203_v19 }
 0x5e1   : > { %v3239_v53 = vpop.permute.xlu0 %3238 }
 0x5e2   : > { %v3241_v44 = vpop.permute.xlu1 %3240 }
 0x5e3   : > { %v3244_v35 = vsel %vm3197_vm0, %v3239_v53, %v3241_v44 }
 0x5e4   : > { %v3248_v54 = vadd.f32 %v3244_v35, %v3225_v42 }
 0x5e5   : > { %v3243_v3 = vpop.permute.xlu0 %3242 }
 0x5e6   : > { %v3245_v23 = vsel %vm3197_vm0, %v3241_v44, %v3243_v3  ;;  %v3262_v8 = vpop.permute.xlu1 %3261 }
 0x5e7   : > { %v3249_v58 = vadd.f32 %v3245_v23, %v3226_v5 }
 0x5e9   : > { %v3264_v1 = vpop.permute.xlu0 %3263 }
 0x5ea   : > { %v3267_v45 = vsel %vm3197_vm0, %v3262_v8, %v3264_v1  ;;  %v3282_v27 = vpop.permute.xlu1 %3281 }
 0x5eb   : > { %v3271_v4 = vadd.f32 %v3267_v45, %v3248_v54 }
 0x5ed   : > { %v3284_v48 = vpop.permute.xlu0 %3283  ;;  %v3540_v36 = vmax.f32 %v3271_v4, 0.0 }
 0x5ee   : > { %v3286_v28 = vpop.permute.xlu1 %3285  ;;  %v3287_v38 = vsel %vm3197_vm0, %v3282_v27, %v3284_v48 }
 0x5ef   : > { %v3291_v0 = vadd.f32 %v3287_v38, %v6430_v2  ;;  %v3288_v10 = vsel %vm3197_vm0, %v3284_v48, %v3286_v28  ;;  %v3550_v22 = vrot.slane %v3540_v36, 4 }
 0x5f0   : > { %v3292_v47 = vadd.f32 %v3288_v10, %v6451_v11 }
 0x5f1   : > { %v3371_v39 = vpop.permute.xlu0 %3370 }
 0x5f2   : > { %v3373_v14 = vpop.permute.xlu1 %3372 }
 0x5f3   : > { %v3376_v11 = vsel %vm3197_vm0, %v3371_v39, %v3373_v14 }
 0x5f4   : > { %v3380_v48 = vadd.f32 %v3376_v11, %v6579_v51 }
 0x5f5   : > { %v3375_v50 = vpop.permute.xlu0 %3374 }
 0x5f6   : > { %v3305_v30 = vpop.permute.xlu1 %3304  ;;  %v3377_v28 = vsel %vm3197_vm0, %v3373_v14, %v3375_v50 }
 0x5f7   : > { %v3381_v51 = vadd.f32 %v3377_v28, %v6599_v61 }
 0x5f9   : > { %v3307_v26 = vpop.permute.xlu0 %3306 }
 0x5fa   : > { %v3309_v25 = vpop.permute.xlu1 %3308  ;;  %v3310_v20 = vsel %vm3197_vm0, %v3305_v30, %v3307_v26 }
 0x5fb   : > { %v3314_v12 = vadd.f32 %v3310_v20, %v3291_v0  ;;  %v3311_v7 = vsel %vm3197_vm0, %v3307_v26, %v3309_v25 }
 0x5fc   : > { %v3315_v37 = vadd.f32 %v3311_v7, %v3292_v47 }
 0x5fd   : > { %v6720_v60 = vpop.permute.xlu0 %3459 }
 0x5fe   : > { %v6722_v31 = vpop.permute.xlu1 %3461 }
 0x601   : > { %v6724_v55 = vpop.permute.xlu0 %3463 }
 0x602   : > { %v3394_v29 = vpop.permute.xlu1 %3393 }
 0x605   : > { %v3396_v21 = vpop.permute.xlu0 %3395 }
 0x606   : > { %v3398_v57 = vpop.permute.xlu1 %3397  ;;  %v3399_v45 = vsel %vm3197_vm0, %v3394_v29, %v3396_v21  ;;  %v3166_v29 = vsel %vm2828_vm14, %v6639_v18, %v6709_v32 }
 0x607   : > { %v3170_v61 = vadd.f32 %v3166_v29, %v6636_v63 }
 0x609   : > { %v3328_v59 = vpop.permute.xlu0 %3327 }
 0x60a   : > { %v3330_v43 = vpop.permute.xlu1 %3329 }
 0x60b   : > { %v3333_v6 = vsel %vm3197_vm0, %v3328_v59, %v3330_v43  ;;  %v3403_v59 = vadd.f32 %v3399_v45, %v3380_v48 }
 0x60c   : > { %v3337_v46 = vadd.f32 %v3333_v6, %v3314_v12 }
 0x60d   : > { %v3332_v33 = vpop.permute.xlu0 %3331 }
 0x60e   : > { %v6726_v13 = vpop.permute.xlu1 %3482  ;;  %v3334_v19 = vsel %vm3197_vm0, %v3330_v43, %v3332_v33  ;;  %v3400_v43 = vsel %vm3197_vm0, %v3396_v21, %v3398_v57  ;;  %v7470_v33 = vld [vmem:[#allocation21_spill] sm:$0xff]  ;;  %v3466_v57 = vsel %vm3197_vm0, %v6722_v31, %v6724_v55 }
 0x60f   : > { %v3338_v5 = vadd.f32 %v3334_v19, %v3315_v37 }
 0x611   : > { %v6728_v56 = vpop.permute.xlu0 %3484 }
 0x612   : > { %v6730_v49 = vpop.permute.xlu1 %3486  ;;  %v3488_v32 = vsel %vm3197_vm0, %v6726_v13, %v6728_v56 }
 0x615   : > { %v3266_v41 = vpop.permute.xlu0 %3265 }
 0x616   : > { %v3268_v34 = vsel %vm3197_vm0, %v3264_v1, %v3266_v41  ;;  %v3417_v40 = vpop.permute.xlu1 %3416 }
 0x617   : > { %v3272_v24 = vadd.f32 %v3268_v34, %v3249_v58  ;;  %v7469_v58 = vld [vmem:[#allocation20_spill] sm:$0xff]  ;;  %v3465_v34 = vsel %vm3197_vm0, %v6720_v60, %v6722_v31  ;;  %v3470_v31 = vadd.f32 %v3466_v57, %v3170_v61 }
 0x618   : > { %v3573_v1 = vsel %vm3572_vm1, %v7469_v58, %v3550_v22  ;;  %v3469_v60 = vadd.f32 %v3465_v34, %v6647_v62 }
 0x619   : > { %v3419_v52 = vpop.permute.xlu0 %3418  ;;  %v3541_v2 = vmax.f32 %v3272_v24, 0.0  ;;  %v3404_v24 = vadd.f32 %v3400_v43, %v3381_v51 }
 0x61a   : > { %v3421_v17 = vpop.permute.xlu1 %3420  ;;  %v3422_v39 = vsel %vm3197_vm0, %v3417_v40, %v3419_v52  ;;  %v3492_v12 = vadd.f32 %v3488_v32, %v3469_v60 }
 0x61b   : > { %v3551_v23 = vrot.slane %v3541_v2, 4  ;;  %v3426_v40 = vadd.f32 %v3422_v39, %v3403_v59  ;;  %v3423_v38 = vsel %vm3197_vm0, %v3419_v52, %v3421_v17  ;;  %v3489_v52 = vsel %vm3197_vm0, %v6728_v56, %v6730_v49 }
 0x61c   : > { %v3427_v0 = vadd.f32 %v3423_v38, %v3404_v24  ;;  %v3493_v36 = vadd.f32 %v3489_v52, %v3470_v31 }
 0x61d   : > { %v3351_v9 = vpop.permute.xlu0 %3350  ;;  %v3574_v41 = vsel %vm3572_vm1, %v7470_v33, %v3551_v23 }
 0x61e   : > { %v3353_v15 = vpop.permute.xlu1 %3352 }
 0x61f   : > { %v3356_v16 = vsel %vm3197_vm0, %v3351_v9, %v3353_v15 }
 0x620   : > { %v3360_v42 = vadd.f32 %v3356_v16, %v3337_v46 }
 0x621   : > { %v3355_v53 = vpop.permute.xlu0 %3354 }
 0x622   : > { %v3542_v44 = vmax.f32 %v3360_v42, 0.0  ;;  %v3357_v35 = vsel %vm3197_vm0, %v3353_v15, %v3355_v53  ;;  %v3506_v54 = vpop.permute.xlu1 %3505 }
 0x623   : > { %v3361_v3 = vadd.f32 %v3357_v35, %v3338_v5 }
 0x624   : > { %v3556_v8 = vrot.slane %v3542_v44, 3 }
 0x625   : > { %v3543_v27 = vmax.f32 %v3361_v3, 0.0  ;;  %v3508_v4 = vpop.permute.xlu0 %3507 }
 0x626   : > { %v3576_v30 = vsel %vm3575_vm2, %v3573_v1, %v3556_v8  ;;  %v3510_v26 = vpop.permute.xlu1 %3509  ;;  %v3511_v55 = vsel %vm3197_vm0, %v3506_v54, %v3508_v4 }
 0x627   : > { %v3557_v25 = vrot.slane %v3543_v27, 3  ;;  %v3512_v13 = vsel %vm3197_vm0, %v3508_v4, %v3510_v26  ;;  %v3515_v47 = vadd.f32 %v3511_v55, %v3492_v12 }
 0x628   : > { %v3516_v9 = vadd.f32 %v3512_v13, %v3493_v36 }
 0x629   : > { %v3577_v14 = vsel %vm3575_vm2, %v3574_v41, %v3557_v25  ;;  %v3440_v50 = vpop.permute.xlu0 %3439 }
 0x62a   : > { %v3442_v21 = vpop.permute.xlu1 %3441 }
 0x62b   : > { %v3445_v18 = vsel %vm3197_vm0, %v3440_v50, %v3442_v21 }
 0x62c   : > { %v3449_v20 = vadd.f32 %v3445_v18, %v3426_v40 }
 0x62d   : > { %v3444_v10 = vpop.permute.xlu0 %3443 }
 0x62e   : > { %v3544_v17 = vmax.f32 %v3449_v20, 0.0  ;;  %v3446_v63 = vsel %vm3197_vm0, %v3442_v21, %v3444_v10  ;;  %v3529_v6 = vpop.permute.xlu1 %3528 }
 0x62f   : > { %v3450_v7 = vadd.f32 %v3446_v63, %v3427_v0 }
 0x630   : > { %v3562_v62 = vrot.slane %v3544_v17, 2 }
 0x631   : > { %v3545_v56 = vmax.f32 %v3450_v7, 0.0  ;;  %v3531_v49 = vpop.permute.xlu0 %3530 }
 0x632   : > { %v3579_v46 = vsel %vm3578_vm3, %v3576_v30, %v3562_v62  ;;  %v3534_v19 = vsel %vm3197_vm0, %v3529_v6, %v3531_v49  ;;  %v3533_v15 = vpop.permute.xlu1 %3532 }
 0x633   : > { %v3563_v37 = vrot.slane %v3545_v56, 2  ;;  %v3538_v16 = vadd.f32 %v3534_v19, %v3515_v47  ;;  %v3535_v2 = vsel %vm3197_vm0, %v3531_v49, %v3533_v15 }
 0x634   : > { %v3539_v42 = vadd.f32 %v3535_v2, %v3516_v9 }
 0x635   : > { %v3580_v22 = vsel %vm3578_vm3, %v3577_v14, %v3563_v37  ;;  %v3546_v5 = vmax.f32 %v3538_v16, 0.0 }
 0x636   : > { %v3547_v53 = vmax.f32 %v3539_v42, 0.0 }
 0x637   : > { %v3568_v44 = vrot.slane %v3546_v5, 1 }
 0x638   : > { %v3569_v35 = vrot.slane %v3547_v53, 1 }
 0x639   : > { %v3582_v54 = vsel %vm3581_vm4, %v3579_v46, %v3568_v44 }
 0x63a   : > { %v3583_v11 = vsel %vm3581_vm4, %v3580_v22, %v3569_v35  ;;  %3584 = vst [vmem:[%s251_s11] sm:$0xff] %v3582_v54 }
 0x63b   : > { %3585 = vst [vmem:[%s251_s11 + $0x8] sm:$0xff] %v3583_v11 }
 0x63c   : > { %4081 = shalt.err (!%p4078_p1)
}
 0x63d   : > { %s4082_s20 = scalar_lea.hbm %s6787_s0, 256  ;;  %s4086_s13 = scalar_lea.hbm %s6834_s4, 512 }
 0x63e   : > { %p4083_p4 = scmp.ne.s32.totalorder %s6787_s0, %s4082_s20  ;;  %p4087_p5 = scmp.lt.s32.totalorder %s6787_s0, %s6834_s4 }
 0x63f   : > { %p4088_p11 = scmp.lt.s32.totalorder %s4086_s13, %s4082_s20 }
 0x640   : > { %p4084_p6 = pnand %p4083_p4, %p7471_p9 }
 0x641   : > { %p4089_p7 = por %p4088_p11, %p4087_p5 }
 0x642   : > { %p4085_p8 = pneg %p4084_p6 }
 0x644   : > { %p4090_p13 = pnand %p4089_p7, %p4085_p8 }
 0x646   : > { %4093 = shalt.err (!%p4090_p13)
}
 0x647   : > { %3911 = dma.vmem_to_hbm [thread:$0]  (%p7471_p9), %s6789_s28, 256, %s6787_s0, %s3587_s1  }
 0x648 PF: > { %s3613_s8 = sand.u32 1, %s4132_s15   ;;  %p7472_p0 = scmp.ne.s32.totalorder %s6932_s22, 0 }
 0x649   : > { %p7473_p3 = scmp.ge.s32.totalorder %s4144_s18, 2  ;;  %s3614_s25 = scalar_lea.sflag [#allocation4], %s3613_s8 }
 0x64b   : > { %p3928_p2 = pnand %p7473_p3, %p7472_p0 }
 0x64d   : > { %p3929_p10 = pneg %p3928_p2 }
 0x64f   : > { %4127 = dma.done.wait (%p3929_p10), %s3614_s25, 256  }
 0x650   : > { %4129 = vsyncadd (%p3929_p10), %s3614_s25, 4294967040  ;;  %s7474_s15 = sld [smem:[#allocation17_spill]]  ;;  %p20_p12 = scmp.ge.s32.totalorder %s4247_s30, 4  }
 0x651   : > { %s7475_s16 = sld [smem:[#allocation18_spill]]  ;;  %s7477_s18 = smov %s4247_s30 }
 0x652   : > { %s7476_s17 = sld [smem:[#allocation19_spill]]  ;;  %22 = sbr.rel (!%p20_p12) target bundleno = 13 (0xd), region = 96 }
 0x657   :  { %3619 = vsyncpa [#allocation3], 1 }
 0x658   :  { %3621 = vsyncpa [#allocation3 + $0x1], 1 }
 0x659   :  { %3622 = vsyncpa [#allocation8], 1 }
 0x65a   :  { %3623 = vsyncpa [#allocation4], 1 }
 0x65b   :  { %3625 = vsyncpa [#allocation4 + $0x1], 1 }
 0x65c   :  { %3626 = vsyncpa [#allocation5], 1 }
 0x65d   :  { %3628 = vsyncpa [#allocation5 + $0x1], 1 }
 0x65e   :  { %3629 = vsyncpa [#allocation6], 1 }
 0x65f   :  { %3631 = vsyncpa [#allocation6 + $0x1], 1 }

</bundles_post_ra>
